<compile_context>
chip_gen: v7x
topology: tpu7x:2x2x1
jax: 0.10.0
libtpu: 0.0.40
codegen_flags: <defaults>
</compile_context>

<pallas_src>
import functools
import math

import jax
import jax.numpy as jnp
from jax.experimental import pallas as pl
from jax.experimental.pallas import tpu as pltpu


_PARALLEL1 = pltpu.CompilerParams(dimension_semantics=("parallel",))
_VMEM_LIMIT = 48 * 1024 * 1024   # < v7x 64 MiB physical, > v5e 16 MiB default scoped


# ----------------------------- Pallas kernels ------------------------------

def _conv1_kernel(xp_ref, w_ref, b_ref, o_ref, *, t_out):
    """Conv1d(k=3, s=1, pad=1) + ReLU.  Input (1, T+2, Cp) bf16 (channel+time padded).
    Output (1, T+2, D) bf16, time-padded with zero boundary rows so the stride-2
    "fold" view for conv2 is a free reshape of this kernel's output."""
    x = xp_ref[0].astype(jnp.float32)                              # (T+2, Cp)
    # Three shifted slabs concatenated on lanes -> single K = 3*Cp matmul.
    xcat = jnp.concatenate(
        [x[0:t_out], x[1:t_out + 1], x[2:t_out + 2]], axis=-1).astype(jnp.bfloat16)
    y = jnp.dot(xcat, w_ref[...], preferred_element_type=jnp.float32) + b_ref[...]
    y = jnp.maximum(y, 0.0)                                        # (T, D) f32
    zrow = jnp.zeros((1, y.shape[-1]), jnp.float32)
    o_ref[0] = jnp.concatenate([zrow, y, zrow], axis=0).astype(o_ref.dtype)


def _conv2_kernel(xf_ref, wa_ref, wb_ref, b_ref, o_ref, *, t_out, d_model):
    """Conv1d(k=3, s=2, pad=1) + ReLU on the folded (1, T/2+1, 2D) view of conv1's
    time-padded output:  out[t] = fold[t] @ Wa + fold[t+1][:, :D] @ Wb."""
    x = xf_ref[0].astype(jnp.float32)                              # (T/2+1, 2D)
    xa = x[0:t_out, :].astype(jnp.bfloat16)                        # (T/2, 2D)
    xb = x[1:t_out + 1, 0:d_model].astype(jnp.bfloat16)            # (T/2, D) lane-aligned
    y = jnp.dot(xa, wa_ref[...], preferred_element_type=jnp.float32)
    y = y + jnp.dot(xb, wb_ref[...], preferred_element_type=jnp.float32)
    y = y + b_ref[...]
    o_ref[0] = jnp.maximum(y, 0.0).astype(o_ref.dtype)


def _attn_block_kernel(xf_ref, xq_ref, wq_ref, wk_ref, wv_ref, bq_ref, bk_ref, bv_ref,
                       wo_ref, bo_ref, g_ref, be_ref, o_ref, k_scr, v_scr,
                       *, n_heads, eps):
    """Fused self-attention block, one (batch, query-tile) grid step:
    per-head QKV proj -> softmax attention -> out proj -> residual add -> LayerNorm.
    K/V for the full sequence are projected once per batch element (query-tile 0) into
    head-major VMEM scratch and reused across query tiles ("arbitrary" inner axis)."""
    qi = pl.program_id(1)
    dh = wq_ref.shape[-1]
    scale = 1.0 / math.sqrt(dh)

    @pl.when(qi == 0)
    def _():
        xf = xf_ref[0]                                             # (T, D) bf16
        for h in range(n_heads):                                   # small static loop
            k_h = jnp.dot(xf, wk_ref[h], preferred_element_type=jnp.float32) + bk_ref[h]
            v_h = jnp.dot(xf, wv_ref[h], preferred_element_type=jnp.float32) + bv_ref[h]
            k_scr[h] = k_h.astype(jnp.bfloat16)
            v_scr[h] = v_h.astype(jnp.bfloat16)

    xq = xq_ref[0]                                                 # (tq, D) bf16
    heads = []
    for h in range(n_heads):
        q_h = (jnp.dot(xq, wq_ref[h], preferred_element_type=jnp.float32)
               + bq_ref[h]) * scale                                # (tq, dh) f32
        s = jax.lax.dot_general(q_h.astype(jnp.bfloat16), k_scr[h],
                                (((1,), (1,)), ((), ())),
                                preferred_element_type=jnp.float32)  # (tq, T)
        m = jnp.max(s, axis=-1, keepdims=True)
        p = jnp.exp(s - m)
        p = p * pl.reciprocal(jnp.sum(p, axis=-1, keepdims=True), approx=True)
        heads.append(jnp.dot(p.astype(jnp.bfloat16), v_scr[h],
                             preferred_element_type=jnp.float32))  # (tq, dh)
    attn = jnp.concatenate(heads, axis=-1).astype(jnp.bfloat16)    # (tq, D)

    out = jnp.dot(attn, wo_ref[...], preferred_element_type=jnp.float32) + bo_ref[...]
    z = xq.astype(jnp.float32) + out
    mu = jnp.mean(z, axis=-1, keepdims=True)
    var = jnp.mean(jnp.square(z - mu), axis=-1, keepdims=True)
    y = (z - mu) * jax.lax.rsqrt(var + eps) * g_ref[...] + be_ref[...]
    o_ref[0] = y.astype(o_ref.dtype)


def _ffn_block_kernel(x_ref, w1_ref, b1_ref, w2_ref, b2_ref, g_ref, be_ref, o_ref, *, eps):
    """Fused feed-forward block on a (tm, D) row tile: FF1+ReLU -> FF2 -> add -> LN."""
    x = x_ref[...]                                                 # (tm, D) bf16
    h = jnp.dot(x, w1_ref[...], preferred_element_type=jnp.float32) + b1_ref[...]
    h = jnp.maximum(h, 0.0).astype(jnp.bfloat16)
    y = jnp.dot(h, w2_ref[...], preferred_element_type=jnp.float32) + b2_ref[...]
    z = x.astype(jnp.float32) + y
    mu = jnp.mean(z, axis=-1, keepdims=True)
    var = jnp.mean(jnp.square(z - mu), axis=-1, keepdims=True)
    o_ref[...] = ((z - mu) * jax.lax.rsqrt(var + eps) * g_ref[...]
                  + be_ref[...]).astype(o_ref.dtype)


def _pool_cls_kernel(x_ref, g_ref, be_ref, w_ref, wb_ref, o_ref, *, eps):
    """Fused time mean-pool + LayerNorm + classifier for one batch element."""
    x = x_ref[0].astype(jnp.float32)                               # (T, D)
    m = jnp.mean(x, axis=0, keepdims=True)                         # (1, D)
    mu = jnp.mean(m, axis=-1, keepdims=True)
    var = jnp.mean(jnp.square(m - mu), axis=-1, keepdims=True)
    hnorm = (m - mu) * jax.lax.rsqrt(var + eps) * g_ref[...] + be_ref[...]
    o_ref[0] = (jnp.dot(hnorm.astype(jnp.bfloat16), w_ref[...],
                        preferred_element_type=jnp.float32) + wb_ref[...])


# --------------------------- pallas_call wrappers ---------------------------

def conv1(xp, w, bias):
    """xp: (B, T+2, Cp) bf16 (time- and channel-padded); w: (3*Cp, D) bf16."""
    B, Tp2, Cp = xp.shape
    T = Tp2 - 2
    D = w.shape[-1]
    return pl.pallas_call(
        functools.partial(_conv1_kernel, t_out=T),
        out_shape=jax.ShapeDtypeStruct((B, Tp2, D), jnp.bfloat16),   # time-padded output
        grid=(B,),
        in_specs=[
            pl.BlockSpec((1, Tp2, Cp), lambda b: (b, 0, 0)),
            pl.BlockSpec((3 * Cp, D), lambda b: (0, 0)),
            pl.BlockSpec((1, D), lambda b: (0, 0)),
        ],
        out_specs=pl.BlockSpec((1, Tp2, D), lambda b: (b, 0, 0)),
        compiler_params=_PARALLEL1,
    )(xp, w, bias)


def conv2(xf, wa, wb, bias):
    """xf: (B, T/2+1, 2D) folded view of conv1's padded output; wa: (2D, D); wb: (D, D)."""
    B, T2p1, twoD = xf.shape
    T2 = T2p1 - 1
    D = wa.shape[-1]
    return pl.pallas_call(
        functools.partial(_conv2_kernel, t_out=T2, d_model=D),
        out_shape=jax.ShapeDtypeStruct((B, T2, D), jnp.bfloat16),
        grid=(B,),
        in_specs=[
            pl.BlockSpec((1, T2p1, twoD), lambda b: (b, 0, 0)),
            pl.BlockSpec((twoD, D), lambda b: (0, 0)),
            pl.BlockSpec((D, D), lambda b: (0, 0)),
            pl.BlockSpec((1, D), lambda b: (0, 0)),
        ],
        out_specs=pl.BlockSpec((1, T2, D), lambda b: (b, 0, 0)),
        compiler_params=_PARALLEL1,
    )(xf, wa, wb, bias)


def _seq_tile(t, max_tile=256):
    """Query-tile size: full sequence if small, otherwise a divisor <= max_tile."""
    if t <= max_tile:
        return t
    for c in (256, 128, 64, 32, 16, 8):
        if t % c == 0:
            return c
    return t


def attention_block(x, lp, n_heads, eps=1e-5):
    """x: (B, T, D) bf16.  grid = (batch, query-tile); K/V scratch persists over tiles."""
    B, T, D = x.shape
    assert D % n_heads == 0
    dh = D // n_heads
    tq = _seq_tile(T)
    nq = T // tq
    return pl.pallas_call(
        functools.partial(_attn_block_kernel, n_heads=n_heads, eps=eps),
        out_shape=jax.ShapeDtypeStruct((B, T, D), jnp.bfloat16),
        grid=(B, nq),
        in_specs=[
            pl.BlockSpec((1, T, D), lambda b, q: (b, 0, 0)),      # full seq (K/V proj)
            pl.BlockSpec((1, tq, D), lambda b, q: (b, q, 0)),     # query tile
            pl.BlockSpec((n_heads, D, dh), lambda b, q: (0, 0, 0)),
            pl.BlockSpec((n_heads, D, dh), lambda b, q: (0, 0, 0)),
            pl.BlockSpec((n_heads, D, dh), lambda b, q: (0, 0, 0)),
            pl.BlockSpec((n_heads, 1, dh), lambda b, q: (0, 0, 0)),
            pl.BlockSpec((n_heads, 1, dh), lambda b, q: (0, 0, 0)),
            pl.BlockSpec((n_heads, 1, dh), lambda b, q: (0, 0, 0)),
            pl.BlockSpec((D, D), lambda b, q: (0, 0)),
            pl.BlockSpec((1, D), lambda b, q: (0, 0)),
            pl.BlockSpec((1, D), lambda b, q: (0, 0)),
            pl.BlockSpec((1, D), lambda b, q: (0, 0)),
        ],
        out_specs=pl.BlockSpec((1, tq, D), lambda b, q: (b, q, 0)),
        scratch_shapes=[
            pltpu.VMEM((n_heads, T, dh), jnp.bfloat16),           # K, head-major
            pltpu.VMEM((n_heads, T, dh), jnp.bfloat16),           # V, head-major
        ],
        compiler_params=pltpu.CompilerParams(
            dimension_semantics=("parallel", "arbitrary"),
            vmem_limit_bytes=_VMEM_LIMIT),
    )(x, x, lp["wq"], lp["wk"], lp["wv"], lp["bq"], lp["bk"], lp["bv"],
      lp["wo"], lp["bo"], lp["ln1_g"], lp["ln1_b"])


def _row_tile(m, max_tile=512):
    """FFN row tile: one full-size step for small M, else largest divisor <= 512
    (v7x VMEM budget: double-buffered (tm,D) in/out + (tm,F) hidden + resident w1/w2)."""
    if m <= max_tile:
        return m
    for t in (512, 256, 128, 64, 32, 16, 8):
        if m % t == 0:
            return t
    return m


def ffn_block(x2, lp, eps=1e-5):
    """x2: (B*T, D) bf16 flattened rows, tiled over a parallel row grid."""
    M, D = x2.shape
    F = lp["w1"].shape[-1]
    tm = _row_tile(M)
    return pl.pallas_call(
        functools.partial(_ffn_block_kernel, eps=eps),
        out_shape=jax.ShapeDtypeStruct((M, D), jnp.bfloat16),
        grid=(M // tm,),
        in_specs=[
            pl.BlockSpec((tm, D), lambda i: (i, 0)),
            pl.BlockSpec((D, F), lambda i: (0, 0)),
            pl.BlockSpec((1, F), lambda i: (0, 0)),
            pl.BlockSpec((F, D), lambda i: (0, 0)),
            pl.BlockSpec((1, D), lambda i: (0, 0)),
            pl.BlockSpec((1, D), lambda i: (0, 0)),
            pl.BlockSpec((1, D), lambda i: (0, 0)),
        ],
        out_specs=pl.BlockSpec((tm, D), lambda i: (i, 0)),
        compiler_params=pltpu.CompilerParams(
            dimension_semantics=("parallel",),
            vmem_limit_bytes=_VMEM_LIMIT),
    )(x2, lp["w1"], lp["b1"], lp["w2"], lp["b2"], lp["ln2_g"], lp["ln2_b"])


def pool_classify(x, pp, eps=1e-5):
    """mean over T -> LayerNorm -> Linear -> logits.  x: (B, T, D) bf16."""
    B, T, D = x.shape
    NL = pp["cls_w"].shape[-1]
    out = pl.pallas_call(
        functools.partial(_pool_cls_kernel, eps=eps),
        out_shape=jax.ShapeDtypeStruct((B, 1, NL), jnp.float32),
        grid=(B,),
        in_specs=[
            pl.BlockSpec((1, T, D), lambda b: (b, 0, 0)),
            pl.BlockSpec((1, D), lambda b: (0, 0)),
            pl.BlockSpec((1, D), lambda b: (0, 0)),
            pl.BlockSpec((D, NL), lambda b: (0, 0)),
            pl.BlockSpec((1, NL), lambda b: (0, 0)),
        ],
        out_specs=pl.BlockSpec((1, 1, NL), lambda b: (b, 0, 0)),
        compiler_params=_PARALLEL1,
    )(x, pp["cls_ln_g"], pp["cls_ln_b"], pp["cls_w"], pp["cls_b"])
    return out.reshape(B, NL)


# ------------------------------- forward pass -------------------------------

def encoder_classifier_forward(prepared, input_features, labels=None, *, n_heads):
    # input_features: (B, 80, T) -- PyTorch NCW; internally channels-last (B, T, C).
    B, Cin, T = input_features.shape
    assert T % 2 == 0, "time length must be even for the stride-2 conv fold"
    cpad = (-Cin) % 128

    # channels-last + channel pad (lane-dense) + time pad, single small XLA op, bf16.
    x = jnp.transpose(input_features, (0, 2, 1))
    xp = jnp.pad(x, ((0, 0), (1, 1), (0, cpad))).astype(jnp.bfloat16)    # (B, T+2, 128)

    # Conv1d(80 -> D, k=3, pad=1) + ReLU; output already time-padded (zero rows).
    y1p = conv1(xp, prepared["conv1_w"], prepared["conv1_b"])            # (B, T+2, D) bf16
    D = y1p.shape[-1]

    # Conv1d(D -> D, k=3, stride=2, pad=1) + ReLU via the free "fold" view.
    xf = y1p.reshape(B, (T + 2) // 2, 2 * D)                             # free reshape
    h = conv2(xf, prepared["conv2_wa"], prepared["conv2_wb"], prepared["conv2_b"])
    T2 = h.shape[1]                                                      # (B, T/2, D)

    # TransformerEncoder (post-norm, relu, eval-mode): 2 fused kernels per layer.
    for lp in prepared["layers"]:
        h = attention_block(h, lp, n_heads)
        h = ffn_block(h.reshape(B * T2, D), lp).reshape(B, T2, D)

    # mean over time -> LayerNorm -> Linear
    logits = pool_classify(h, prepared)

    loss = None
    if labels is not None:
        # CrossEntropyLoss (mean reduction) -- tiny scalar reduction, plain JAX glue.
        logp = jax.nn.log_softmax(logits, axis=-1)
        loss = -jnp.mean(jnp.take_along_axis(logp, labels[:, None], axis=-1))
    return {"logits": logits, "loss": loss, "labels": labels}


# ------------------------------ params handling ------------------------------

def init_params(key, cfg):
    """PyTorch-layout float32 parameters (same structure as the nn.Module)."""
    D, H, L = cfg["d_model"], cfg["n_heads"], cfg["n_layers"]
    F, NL = cfg["dim_feedforward"], cfg["num_labels"]

    def norm(k, shape, scale=0.05):
        return scale * jax.random.normal(k, shape, jnp.float32)

    keys = jax.random.split(key, 8 + L)
    params = {
        "conv1_w": norm(keys[0], (D, 80, 3)),
        "conv1_b": norm(keys[1], (D,)),
        "conv2_w": norm(keys[2], (D, D, 3)),
        "conv2_b": norm(keys[3], (D,)),
        "cls_ln_g": jnp.ones((D,), jnp.float32),
        "cls_ln_b": jnp.zeros((D,), jnp.float32),
        "cls_w": norm(keys[4], (NL, D)),
        "cls_b": norm(keys[5], (NL,)),
        "layers": [],
    }
    for l in range(L):
        lk = jax.random.split(keys[8 + l], 8)
        params["layers"].append({
            "in_proj_w": norm(lk[0], (3 * D, D)),
            "in_proj_b": norm(lk[1], (3 * D,)),
            "out_proj_w": norm(lk[2], (D, D)),
            "out_proj_b": norm(lk[3], (D,)),
            "ln1_g": jnp.ones((D,), jnp.float32),
            "ln1_b": jnp.zeros((D,), jnp.float32),
            "ln2_g": jnp.ones((D,), jnp.float32),
            "ln2_b": jnp.zeros((D,), jnp.float32),
            "ff1_w": norm(lk[4], (F, D)),
            "ff1_b": norm(lk[5], (F,)),
            "ff2_w": norm(lk[6], (D, F)),
            "ff2_b": norm(lk[7], (D,)),
        })
    return params


def prepare_params(params, n_heads):
    """One-time conversion to kernel layout: pre-transpose, cast matmul weights to
    bf16, pad & fuse conv1 taps (lane-dense K=3*128), drop the zero half of conv2's Wb,
    and pre-split per-head Q/K/V weights; LN params / biases stay f32."""
    f32, bf16 = jnp.float32, jnp.bfloat16
    D = params["conv1_w"].shape[0]
    cin = params["conv1_w"].shape[1]
    cpad = (-cin) % 128
    dh = D // n_heads

    w1 = params["conv1_w"]                                               # (D, Cin, 3)
    taps = [jnp.pad(w1[:, :, k].T, ((0, cpad), (0, 0))) for k in range(3)]
    conv1_w = jnp.concatenate(taps, axis=0).astype(bf16)                 # (3*128, D)

    w2 = params["conv2_w"]                                               # (D, D, 3)
    conv2_wa = jnp.concatenate([w2[:, :, 0].T, w2[:, :, 1].T], axis=0).astype(bf16)
    conv2_wb = w2[:, :, 2].T.astype(bf16)                                # (D, D), no zeros

    prepared = {
        "conv1_w": conv1_w,
        "conv1_b": params["conv1_b"].reshape(1, -1).astype(f32),
        "conv2_wa": conv2_wa,
        "conv2_wb": conv2_wb,
        "conv2_b": params["conv2_b"].reshape(1, -1).astype(f32),
        "cls_ln_g": params["cls_ln_g"].reshape(1, -1).astype(f32),
        "cls_ln_b": params["cls_ln_b"].reshape(1, -1).astype(f32),
        "cls_w": params["cls_w"].T.astype(bf16),                         # (D, NL)
        "cls_b": params["cls_b"].reshape(1, -1).astype(f32),
        "layers": [],
    }

    def split_heads(w):   # w: (D, D), rows = output features -> (H, D, dh) bf16
        return jnp.stack([w[h * dh:(h + 1) * dh, :].T for h in range(n_heads)]).astype(bf16)

    for lp in params["layers"]:
        wi, bi = lp["in_proj_w"], lp["in_proj_b"]                        # (3D, D), (3D,)
        prepared["layers"].append({
            "wq": split_heads(wi[0:D]),
            "wk": split_heads(wi[D:2 * D]),
            "wv": split_heads(wi[2 * D:3 * D]),
            "bq": bi[0:D].reshape(n_heads, 1, dh).astype(f32),
            "bk": bi[D:2 * D].reshape(n_heads, 1, dh).astype(f32),
            "bv": bi[2 * D:3 * D].reshape(n_heads, 1, dh).astype(f32),
            "wo": lp["out_proj_w"].T.astype(bf16),                       # (D, D)
            "bo": lp["out_proj_b"].reshape(1, -1).astype(f32),
            "ln1_g": lp["ln1_g"].reshape(1, -1).astype(f32),
            "ln1_b": lp["ln1_b"].reshape(1, -1).astype(f32),
            "w1": lp["ff1_w"].T.astype(bf16),                            # (D, F)
            "b1": lp["ff1_b"].reshape(1, -1).astype(f32),
            "w2": lp["ff2_w"].T.astype(bf16),                            # (F, D)
            "b2": lp["ff2_b"].reshape(1, -1).astype(f32),
            "ln2_g": lp["ln2_g"].reshape(1, -1).astype(f32),
            "ln2_b": lp["ln2_b"].reshape(1, -1).astype(f32),
        })
    return prepared


# ---------------------------------- main ------------------------------------

if __name__ == "__main__":
    # Spec-default config (d_model=256 is lane-dense); small batch / sequence demo.
    cfg = dict(num_labels=10, d_model=256, n_heads=4, n_layers=2, dim_feedforward=1024)
    key = jax.random.PRNGKey(0)
    pkey, xkey, lkey = jax.random.split(key, 3)

    params = init_params(pkey, cfg)
    prepared = prepare_params(params, cfg["n_heads"])   # pre-transpose / bf16-cast once

    B, Cin, T = 2, 80, 16                 # input must have 80 channels (Conv1d(80, D, 3))
    x = jax.random.normal(xkey, (B, Cin, T), jnp.float32)
    labels = jax.random.randint(lkey, (B,), 0, cfg["num_labels"])

    fwd = jax.jit(functools.partial(encoder_classifier_forward, n_heads=cfg["n_heads"]))
    out = fwd(prepared, x, labels)
    jax.block_until_ready(out["logits"])
    jax.block_until_ready(out["loss"])

    assert out["logits"].shape == (B, cfg["num_labels"])
    assert out["loss"].shape == ()
    assert bool(jnp.all(jnp.isfinite(out["logits"])))
    print("KERNEL_OK")
</pallas_src>

<mosaic_0001>
module attributes {stable_mosaic.version = 11 : i64} {
  func.func @_conv1_kernel(%arg0: i32, %arg1: memref<1x18x128xbf16, #tpu.memory_space<vmem>>, %arg2: memref<384x256xbf16, #tpu.memory_space<vmem>>, %arg3: memref<1x256xf32, #tpu.memory_space<vmem>>, %arg4: memref<1x18x256xbf16, #tpu.memory_space<vmem>>) attributes {dimension_semantics = [#tpu.dimension_semantics<parallel>], iteration_bounds = array<i64: 2>, scalar_prefetch = 0 : i64, scratch_operands = 0 : i64, tpu.core_type = #tpu.core_type<tc>, window_params = [{transform_indices = @transform_0, window_bounds = array<i64: 1, 18, 128>}, {pipeline_mode = #tpu.pipeline_mode<synchronous>, transform_indices = @transform_1, window_bounds = array<i64: 384, 256>}, {pipeline_mode = #tpu.pipeline_mode<synchronous>, transform_indices = @transform_2, window_bounds = array<i64: 1, 256>}, {transform_indices = @transform_3, window_bounds = array<i64: 1, 18, 256>}]} {
    %c0 = arith.constant 0 : index
    %c0_0 = arith.constant 0 : index
    %c0_1 = arith.constant 0 : index
    %0 = vector.load %arg1[%c0, %c0_0, %c0_1] : memref<1x18x128xbf16, #tpu.memory_space<vmem>>, vector<1x18x128xbf16>
    %1 = vector.shape_cast %0 : vector<1x18x128xbf16> to vector<18x128xbf16>
    %2 = arith.extf %1 : vector<18x128xbf16> to vector<18x128xf32>
    %3 = vector.extract_strided_slice %2 {offsets = [0, 0], sizes = [16, 128], strides = [1, 1]} : vector<18x128xf32> to vector<16x128xf32>
    %4 = vector.extract_strided_slice %2 {offsets = [1, 0], sizes = [16, 128], strides = [1, 1]} : vector<18x128xf32> to vector<16x128xf32>
    %5 = vector.extract_strided_slice %2 {offsets = [2, 0], sizes = [16, 128], strides = [1, 1]} : vector<18x128xf32> to vector<16x128xf32>
    %6 = tpu.concatenate %3, %4, %5 in 1 : vector<16x128xf32>, vector<16x128xf32>, vector<16x128xf32> -> vector<16x384xf32>
    %7 = arith.truncf %6 : vector<16x384xf32> to vector<16x384xbf16>
    %c0_2 = arith.constant 0 : index
    %c0_3 = arith.constant 0 : index
    %8 = vector.load %arg2[%c0_2, %c0_3] : memref<384x256xbf16, #tpu.memory_space<vmem>>, vector<384x256xbf16>
    %cst = arith.constant dense<0.000000e+00> : vector<16x256xf32>
    %9 = tpu.matmul %7, %8, %cst {dimension_numbers = #tpu.dot_dimension_numbers<[1], [0], [0], [1], [0, 0, 1, 1], [], []>} : vector<16x384xbf16>, vector<384x256xbf16>, vector<16x256xf32> -> vector<16x256xf32>
    %c0_4 = arith.constant 0 : index
    %c0_5 = arith.constant 0 : index
    %10 = vector.load %arg3[%c0_4, %c0_5] : memref<1x256xf32, #tpu.memory_space<vmem>>, vector<1x256xf32>
    %11 = vector.broadcast %10 : vector<1x256xf32> to vector<16x256xf32>
    %12 = arith.addf %9, %11 : vector<16x256xf32>
    %cst_6 = arith.constant 0.000000e+00 : f32
    %13 = vector.broadcast %cst_6 : f32 to vector<16x256xf32>
    %14 = arith.maximumf %12, %13 : vector<16x256xf32>
    %cst_7 = arith.constant 0.000000e+00 : f32
    %15 = vector.broadcast %cst_7 : f32 to vector<1x256xf32>
    %16 = tpu.concatenate %15, %14, %15 in 0 : vector<1x256xf32>, vector<16x256xf32>, vector<1x256xf32> -> vector<18x256xf32>
    %17 = arith.truncf %16 : vector<18x256xf32> to vector<18x256xbf16>
    %c0_8 = arith.constant 0 : index
    %c0_9 = arith.constant 0 : index
    %c0_10 = arith.constant 0 : index
    %18 = vector.load %arg4[%c0_8, %c0_9, %c0_10] : memref<1x18x256xbf16, #tpu.memory_space<vmem>>, vector<1x18x256xbf16>
    %19 = vector.shape_cast %18 : vector<1x18x256xbf16> to vector<18x256xbf16>
    %20 = vector.shape_cast %17 : vector<18x256xbf16> to vector<1x18x256xbf16>
    tpu.vector_store %arg4[%c0_8, %c0_9, %c0_10], %20 {strides = array<i32>} : memref<1x18x256xbf16, #tpu.memory_space<vmem>>, vector<1x18x256xbf16>,
    return
  }
  func.func @transform_0(%arg0: i32) -> (i32, i32, i32) {
    %c0_i32 = arith.constant 0 : i32
    %c0_i32_0 = arith.constant 0 : i32
    %c0_i32_1 = arith.constant 0 : i32
    return %arg0, %c0_i32, %c0_i32_0 : i32, i32, i32
  }
  func.func @transform_1(%arg0: i32) -> (i32, i32) {
    %c0_i32 = arith.constant 0 : i32
    %c0_i32_0 = arith.constant 0 : i32
    %c0_i32_1 = arith.constant 0 : i32
    return %c0_i32, %c0_i32_0 : i32, i32
  }
  func.func @transform_2(%arg0: i32) -> (i32, i32) {
    %c0_i32 = arith.constant 0 : i32
    %c0_i32_0 = arith.constant 0 : i32
    %c0_i32_1 = arith.constant 0 : i32
    return %c0_i32, %c0_i32_0 : i32, i32
  }
  func.func @transform_3(%arg0: i32) -> (i32, i32, i32) {
    %c0_i32 = arith.constant 0 : i32
    %c0_i32_0 = arith.constant 0 : i32
    %c0_i32_1 = arith.constant 0 : i32
    return %arg0, %c0_i32, %c0_i32_0 : i32, i32, i32
  }
}

module attributes {stable_mosaic.version = 11 : i64} {
  func.func @_conv2_kernel(%arg0: i32, %arg1: memref<1x9x512xbf16, #tpu.memory_space<vmem>>, %arg2: memref<512x256xbf16, #tpu.memory_space<vmem>>, %arg3: memref<256x256xbf16, #tpu.memory_space<vmem>>, %arg4: memref<1x256xf32, #tpu.memory_space<vmem>>, %arg5: memref<1x8x256xbf16, #tpu.memory_space<vmem>>) attributes {dimension_semantics = [#tpu.dimension_semantics<parallel>], iteration_bounds = array<i64: 2>, scalar_prefetch = 0 : i64, scratch_operands = 0 : i64, tpu.core_type = #tpu.core_type<tc>, window_params = [{transform_indices = @transform_0, window_bounds = array<i64: 1, 9, 512>}, {pipeline_mode = #tpu.pipeline_mode<synchronous>, transform_indices = @transform_1, window_bounds = array<i64: 512, 256>}, {pipeline_mode = #tpu.pipeline_mode<synchronous>, transform_indices = @transform_2, window_bounds = array<i64: 256, 256>}, {pipeline_mode = #tpu.pipeline_mode<synchronous>, transform_indices = @transform_3, window_bounds = array<i64: 1, 256>}, {transform_indices = @transform_4, window_bounds = array<i64: 1, 8, 256>}]} {
    %c0 = arith.constant 0 : index
    %c0_0 = arith.constant 0 : index
    %c0_1 = arith.constant 0 : index
    %0 = vector.load %arg1[%c0, %c0_0, %c0_1] : memref<1x9x512xbf16, #tpu.memory_space<vmem>>, vector<1x9x512xbf16>
    %1 = vector.shape_cast %0 : vector<1x9x512xbf16> to vector<9x512xbf16>
    %2 = arith.extf %1 : vector<9x512xbf16> to vector<9x512xf32>
    %3 = vector.extract_strided_slice %2 {offsets = [0, 0], sizes = [8, 512], strides = [1, 1]} : vector<9x512xf32> to vector<8x512xf32>
    %4 = arith.truncf %3 : vector<8x512xf32> to vector<8x512xbf16>
    %5 = vector.extract_strided_slice %2 {offsets = [1, 0], sizes = [8, 256], strides = [1, 1]} : vector<9x512xf32> to vector<8x256xf32>
    %6 = arith.truncf %5 : vector<8x256xf32> to vector<8x256xbf16>
    %c0_2 = arith.constant 0 : index
    %c0_3 = arith.constant 0 : index
    %7 = vector.load %arg2[%c0_2, %c0_3] : memref<512x256xbf16, #tpu.memory_space<vmem>>, vector<512x256xbf16>
    %cst = arith.constant dense<0.000000e+00> : vector<8x256xf32>
    %8 = tpu.matmul %4, %7, %cst {dimension_numbers = #tpu.dot_dimension_numbers<[1], [0], [0], [1], [0, 0, 1, 1], [], []>} : vector<8x512xbf16>, vector<512x256xbf16>, vector<8x256xf32> -> vector<8x256xf32>
    %c0_4 = arith.constant 0 : index
    %c0_5 = arith.constant 0 : index
    %9 = vector.load %arg3[%c0_4, %c0_5] : memref<256x256xbf16, #tpu.memory_space<vmem>>, vector<256x256xbf16>
    %cst_6 = arith.constant dense<0.000000e+00> : vector<8x256xf32>
    %10 = tpu.matmul %6, %9, %cst_6 {dimension_numbers = #tpu.dot_dimension_numbers<[1], [0], [0], [1], [0, 0, 1, 1], [], []>} : vector<8x256xbf16>, vector<256x256xbf16>, vector<8x256xf32> -> vector<8x256xf32>
    %11 = arith.addf %8, %10 : vector<8x256xf32>
    %c0_7 = arith.constant 0 : index
    %c0_8 = arith.constant 0 : index
    %12 = vector.load %arg4[%c0_7, %c0_8] : memref<1x256xf32, #tpu.memory_space<vmem>>, vector<1x256xf32>
    %13 = vector.broadcast %12 : vector<1x256xf32> to vector<8x256xf32>
    %14 = arith.addf %11, %13 : vector<8x256xf32>
    %cst_9 = arith.constant 0.000000e+00 : f32
    %15 = vector.broadcast %cst_9 : f32 to vector<8x256xf32>
    %16 = arith.maximumf %14, %15 : vector<8x256xf32>
    %17 = arith.truncf %16 : vector<8x256xf32> to vector<8x256xbf16>
    %c0_10 = arith.constant 0 : index
    %c0_11 = arith.constant 0 : index
    %c0_12 = arith.constant 0 : index
    %18 = vector.load %arg5[%c0_10, %c0_11, %c0_12] : memref<1x8x256xbf16, #tpu.memory_space<vmem>>, vector<1x8x256xbf16>
    %19 = vector.shape_cast %18 : vector<1x8x256xbf16> to vector<8x256xbf16>
    %20 = vector.shape_cast %17 : vector<8x256xbf16> to vector<1x8x256xbf16>
    tpu.vector_store %arg5[%c0_10, %c0_11, %c0_12], %20 {strides = array<i32>} : memref<1x8x256xbf16, #tpu.memory_space<vmem>>, vector<1x8x256xbf16>,
    return
  }
  func.func @transform_0(%arg0: i32) -> (i32, i32, i32) {
    %c0_i32 = arith.constant 0 : i32
    %c0_i32_0 = arith.constant 0 : i32
    %c0_i32_1 = arith.constant 0 : i32
    return %arg0, %c0_i32, %c0_i32_0 : i32, i32, i32
  }
  func.func @transform_1(%arg0: i32) -> (i32, i32) {
    %c0_i32 = arith.constant 0 : i32
    %c0_i32_0 = arith.constant 0 : i32
    %c0_i32_1 = arith.constant 0 : i32
    return %c0_i32, %c0_i32_0 : i32, i32
  }
  func.func @transform_2(%arg0: i32) -> (i32, i32) {
    %c0_i32 = arith.constant 0 : i32
    %c0_i32_0 = arith.constant 0 : i32
    %c0_i32_1 = arith.constant 0 : i32
    return %c0_i32, %c0_i32_0 : i32, i32
  }
  func.func @transform_3(%arg0: i32) -> (i32, i32) {
    %c0_i32 = arith.constant 0 : i32
    %c0_i32_0 = arith.constant 0 : i32
    %c0_i32_1 = arith.constant 0 : i32
    return %c0_i32, %c0_i32_0 : i32, i32
  }
  func.func @transform_4(%arg0: i32) -> (i32, i32, i32) {
    %c0_i32 = arith.constant 0 : i32
    %c0_i32_0 = arith.constant 0 : i32
    %c0_i32_1 = arith.constant 0 : i32
    return %arg0, %c0_i32, %c0_i32_0 : i32, i32, i32
  }
}

module attributes {stable_mosaic.version = 11 : i64} {
  func.func @_attn_block_kernel(%arg0: i32, %arg1: i32, %arg2: memref<1x8x256xbf16, #tpu.memory_space<vmem>>, %arg3: memref<1x8x256xbf16, #tpu.memory_space<vmem>>, %arg4: memref<4x256x64xbf16, #tpu.memory_space<vmem>>, %arg5: memref<4x256x64xbf16, #tpu.memory_space<vmem>>, %arg6: memref<4x256x64xbf16, #tpu.memory_space<vmem>>, %arg7: memref<4x1x64xf32, #tpu.memory_space<vmem>>, %arg8: memref<4x1x64xf32, #tpu.memory_space<vmem>>, %arg9: memref<4x1x64xf32, #tpu.memory_space<vmem>>, %arg10: memref<256x256xbf16, #tpu.memory_space<vmem>>, %arg11: memref<1x256xf32, #tpu.memory_space<vmem>>, %arg12: memref<1x256xf32, #tpu.memory_space<vmem>>, %arg13: memref<1x256xf32, #tpu.memory_space<vmem>>, %arg14: memref<1x8x256xbf16, #tpu.memory_space<vmem>>, %arg15: memref<4x8x64xbf16, #tpu.memory_space<vmem>>, %arg16: memref<4x8x64xbf16, #tpu.memory_space<vmem>>) attributes {dimension_semantics = [#tpu.dimension_semantics<parallel>, #tpu.dimension_semantics<arbitrary>], iteration_bounds = array<i64: 2, 1>, scalar_prefetch = 0 : i64, scratch_operands = 2 : i64, tpu.core_type = #tpu.core_type<tc>, window_params = [{transform_indices = @transform_0, window_bounds = array<i64: 1, 8, 256>}, {transform_indices = @transform_1, window_bounds = array<i64: 1, 8, 256>}, {pipeline_mode = #tpu.pipeline_mode<synchronous>, transform_indices = @transform_2, window_bounds = array<i64: 4, 256, 64>}, {pipeline_mode = #tpu.pipeline_mode<synchronous>, transform_indices = @transform_3, window_bounds = array<i64: 4, 256, 64>}, {pipeline_mode = #tpu.pipeline_mode<synchronous>, transform_indices = @transform_4, window_bounds = array<i64: 4, 256, 64>}, {pipeline_mode = #tpu.pipeline_mode<synchronous>, transform_indices = @transform_5, window_bounds = array<i64: 4, 1, 64>}, {pipeline_mode = #tpu.pipeline_mode<synchronous>, transform_indices = @transform_6, window_bounds = array<i64: 4, 1, 64>}, {pipeline_mode = #tpu.pipeline_mode<synchronous>, transform_indices = @transform_7, window_bounds = array<i64: 4, 1, 64>}, {pipeline_mode = #tpu.pipeline_mode<synchronous>, transform_indices = @transform_8, window_bounds = array<i64: 256, 256>}, {pipeline_mode = #tpu.pipeline_mode<synchronous>, transform_indices = @transform_9, window_bounds = array<i64: 1, 256>}, {pipeline_mode = #tpu.pipeline_mode<synchronous>, transform_indices = @transform_10, window_bounds = array<i64: 1, 256>}, {pipeline_mode = #tpu.pipeline_mode<synchronous>, transform_indices = @transform_11, window_bounds = array<i64: 1, 256>}, {transform_indices = @transform_12, window_bounds = array<i64: 1, 8, 256>}]} {
    %c0_i32 = arith.constant 0 : i32
    %0 = arith.cmpi eq, %arg1, %c0_i32 : i32
    %1 = arith.extui %0 : i1 to i32
    %c0_i32_0 = arith.constant 0 : i32
    %2 = arith.cmpi ne, %1, %c0_i32_0 : i32
    scf.if %2 {
      %c0_88 = arith.constant 0 : index
      %c0_89 = arith.constant 0 : index
      %c0_90 = arith.constant 0 : index
      %150 = vector.load %arg2[%c0_88, %c0_89, %c0_90] : memref<1x8x256xbf16, #tpu.memory_space<vmem>>, vector<1x8x256xbf16>
      %151 = vector.shape_cast %150 : vector<1x8x256xbf16> to vector<8x256xbf16>
      %c0_91 = arith.constant 0 : index
      %c0_92 = arith.constant 0 : index
      %c0_93 = arith.constant 0 : index
      %152 = vector.load %arg5[%c0_91, %c0_92, %c0_93] : memref<4x256x64xbf16, #tpu.memory_space<vmem>>, vector<1x256x64xbf16>
      %153 = vector.shape_cast %152 : vector<1x256x64xbf16> to vector<256x64xbf16>
      %cst_94 = arith.constant dense<0.000000e+00> : vector<8x64xf32>
      %154 = tpu.matmul %151, %153, %cst_94 {dimension_numbers = #tpu.dot_dimension_numbers<[1], [0], [0], [1], [0, 0, 1, 1], [], []>} : vector<8x256xbf16>, vector<256x64xbf16>, vector<8x64xf32> -> vector<8x64xf32>
      %c0_95 = arith.constant 0 : index
      %c0_96 = arith.constant 0 : index
      %c0_97 = arith.constant 0 : index
      %155 = vector.load %arg8[%c0_95, %c0_96, %c0_97] : memref<4x1x64xf32, #tpu.memory_space<vmem>>, vector<1x1x64xf32>
      %156 = vector.shape_cast %155 : vector<1x1x64xf32> to vector<1x64xf32>
      %157 = vector.broadcast %156 : vector<1x64xf32> to vector<8x64xf32>
      %158 = arith.addf %154, %157 : vector<8x64xf32>
      %c0_98 = arith.constant 0 : index
      %c0_99 = arith.constant 0 : index
      %c0_100 = arith.constant 0 : index
      %159 = vector.load %arg6[%c0_98, %c0_99, %c0_100] : memref<4x256x64xbf16, #tpu.memory_space<vmem>>, vector<1x256x64xbf16>
      %160 = vector.shape_cast %159 : vector<1x256x64xbf16> to vector<256x64xbf16>
      %cst_101 = arith.constant dense<0.000000e+00> : vector<8x64xf32>
      %161 = tpu.matmul %151, %160, %cst_101 {dimension_numbers = #tpu.dot_dimension_numbers<[1], [0], [0], [1], [0, 0, 1, 1], [], []>} : vector<8x256xbf16>, vector<256x64xbf16>, vector<8x64xf32> -> vector<8x64xf32>
      %c0_102 = arith.constant 0 : index
      %c0_103 = arith.constant 0 : index
      %c0_104 = arith.constant 0 : index
      %162 = vector.load %arg9[%c0_102, %c0_103, %c0_104] : memref<4x1x64xf32, #tpu.memory_space<vmem>>, vector<1x1x64xf32>
      %163 = vector.shape_cast %162 : vector<1x1x64xf32> to vector<1x64xf32>
      %164 = vector.broadcast %163 : vector<1x64xf32> to vector<8x64xf32>
      %165 = arith.addf %161, %164 : vector<8x64xf32>
      %166 = arith.truncf %158 : vector<8x64xf32> to vector<8x64xbf16>
      %c0_105 = arith.constant 0 : index
      %c0_106 = arith.constant 0 : index
      %c0_107 = arith.constant 0 : index
      %167 = vector.load %arg15[%c0_105, %c0_106, %c0_107] : memref<4x8x64xbf16, #tpu.memory_space<vmem>>, vector<1x8x64xbf16>
      %168 = vector.shape_cast %167 : vector<1x8x64xbf16> to vector<8x64xbf16>
      %169 = vector.shape_cast %166 : vector<8x64xbf16> to vector<1x8x64xbf16>
      tpu.vector_store %arg15[%c0_105, %c0_106, %c0_107], %169 {strides = array<i32>} : memref<4x8x64xbf16, #tpu.memory_space<vmem>>, vector<1x8x64xbf16>,
      %170 = arith.truncf %165 : vector<8x64xf32> to vector<8x64xbf16>
      %c0_108 = arith.constant 0 : index
      %c0_109 = arith.constant 0 : index
      %c0_110 = arith.constant 0 : index
      %171 = vector.load %arg16[%c0_108, %c0_109, %c0_110] : memref<4x8x64xbf16, #tpu.memory_space<vmem>>, vector<1x8x64xbf16>
      %172 = vector.shape_cast %171 : vector<1x8x64xbf16> to vector<8x64xbf16>
      %173 = vector.shape_cast %170 : vector<8x64xbf16> to vector<1x8x64xbf16>
      tpu.vector_store %arg16[%c0_108, %c0_109, %c0_110], %173 {strides = array<i32>} : memref<4x8x64xbf16, #tpu.memory_space<vmem>>, vector<1x8x64xbf16>,
      %c1_111 = arith.constant 1 : index
      %c0_112 = arith.constant 0 : index
      %c0_113 = arith.constant 0 : index
      %174 = vector.load %arg5[%c1_111, %c0_112, %c0_113] : memref<4x256x64xbf16, #tpu.memory_space<vmem>>, vector<1x256x64xbf16>
      %175 = vector.shape_cast %174 : vector<1x256x64xbf16> to vector<256x64xbf16>
      %cst_114 = arith.constant dense<0.000000e+00> : vector<8x64xf32>
      %176 = tpu.matmul %151, %175, %cst_114 {dimension_numbers = #tpu.dot_dimension_numbers<[1], [0], [0], [1], [0, 0, 1, 1], [], []>} : vector<8x256xbf16>, vector<256x64xbf16>, vector<8x64xf32> -> vector<8x64xf32>
      %c1_115 = arith.constant 1 : index
      %c0_116 = arith.constant 0 : index
      %c0_117 = arith.constant 0 : index
      %177 = vector.load %arg8[%c1_115, %c0_116, %c0_117] : memref<4x1x64xf32, #tpu.memory_space<vmem>>, vector<1x1x64xf32>
      %178 = vector.shape_cast %177 : vector<1x1x64xf32> to vector<1x64xf32>
      %179 = vector.broadcast %178 : vector<1x64xf32> to vector<8x64xf32>
      %180 = arith.addf %176, %179 : vector<8x64xf32>
      %c1_118 = arith.constant 1 : index
      %c0_119 = arith.constant 0 : index
      %c0_120 = arith.constant 0 : index
      %181 = vector.load %arg6[%c1_118, %c0_119, %c0_120] : memref<4x256x64xbf16, #tpu.memory_space<vmem>>, vector<1x256x64xbf16>
      %182 = vector.shape_cast %181 : vector<1x256x64xbf16> to vector<256x64xbf16>
      %cst_121 = arith.constant dense<0.000000e+00> : vector<8x64xf32>
      %183 = tpu.matmul %151, %182, %cst_121 {dimension_numbers = #tpu.dot_dimension_numbers<[1], [0], [0], [1], [0, 0, 1, 1], [], []>} : vector<8x256xbf16>, vector<256x64xbf16>, vector<8x64xf32> -> vector<8x64xf32>
      %c1_122 = arith.constant 1 : index
      %c0_123 = arith.constant 0 : index
      %c0_124 = arith.constant 0 : index
      %184 = vector.load %arg9[%c1_122, %c0_123, %c0_124] : memref<4x1x64xf32, #tpu.memory_space<vmem>>, vector<1x1x64xf32>
      %185 = vector.shape_cast %184 : vector<1x1x64xf32> to vector<1x64xf32>
      %186 = vector.broadcast %185 : vector<1x64xf32> to vector<8x64xf32>
      %187 = arith.addf %183, %186 : vector<8x64xf32>
      %188 = arith.truncf %180 : vector<8x64xf32> to vector<8x64xbf16>
      %c1_125 = arith.constant 1 : index
      %c0_126 = arith.constant 0 : index
      %c0_127 = arith.constant 0 : index
      %189 = vector.load %arg15[%c1_125, %c0_126, %c0_127] : memref<4x8x64xbf16, #tpu.memory_space<vmem>>, vector<1x8x64xbf16>
      %190 = vector.shape_cast %189 : vector<1x8x64xbf16> to vector<8x64xbf16>
      %191 = vector.shape_cast %188 : vector<8x64xbf16> to vector<1x8x64xbf16>
      tpu.vector_store %arg15[%c1_125, %c0_126, %c0_127], %191 {strides = array<i32>} : memref<4x8x64xbf16, #tpu.memory_space<vmem>>, vector<1x8x64xbf16>,
      %192 = arith.truncf %187 : vector<8x64xf32> to vector<8x64xbf16>
      %c1_128 = arith.constant 1 : index
      %c0_129 = arith.constant 0 : index
      %c0_130 = arith.constant 0 : index
      %193 = vector.load %arg16[%c1_128, %c0_129, %c0_130] : memref<4x8x64xbf16, #tpu.memory_space<vmem>>, vector<1x8x64xbf16>
      %194 = vector.shape_cast %193 : vector<1x8x64xbf16> to vector<8x64xbf16>
      %195 = vector.shape_cast %192 : vector<8x64xbf16> to vector<1x8x64xbf16>
      tpu.vector_store %arg16[%c1_128, %c0_129, %c0_130], %195 {strides = array<i32>} : memref<4x8x64xbf16, #tpu.memory_space<vmem>>, vector<1x8x64xbf16>,
      %c2_131 = arith.constant 2 : index
      %c0_132 = arith.constant 0 : index
      %c0_133 = arith.constant 0 : index
      %196 = vector.load %arg5[%c2_131, %c0_132, %c0_133] : memref<4x256x64xbf16, #tpu.memory_space<vmem>>, vector<1x256x64xbf16>
      %197 = vector.shape_cast %196 : vector<1x256x64xbf16> to vector<256x64xbf16>
      %cst_134 = arith.constant dense<0.000000e+00> : vector<8x64xf32>
      %198 = tpu.matmul %151, %197, %cst_134 {dimension_numbers = #tpu.dot_dimension_numbers<[1], [0], [0], [1], [0, 0, 1, 1], [], []>} : vector<8x256xbf16>, vector<256x64xbf16>, vector<8x64xf32> -> vector<8x64xf32>
      %c2_135 = arith.constant 2 : index
      %c0_136 = arith.constant 0 : index
      %c0_137 = arith.constant 0 : index
      %199 = vector.load %arg8[%c2_135, %c0_136, %c0_137] : memref<4x1x64xf32, #tpu.memory_space<vmem>>, vector<1x1x64xf32>
      %200 = vector.shape_cast %199 : vector<1x1x64xf32> to vector<1x64xf32>
      %201 = vector.broadcast %200 : vector<1x64xf32> to vector<8x64xf32>
      %202 = arith.addf %198, %201 : vector<8x64xf32>
      %c2_138 = arith.constant 2 : index
      %c0_139 = arith.constant 0 : index
      %c0_140 = arith.constant 0 : index
      %203 = vector.load %arg6[%c2_138, %c0_139, %c0_140] : memref<4x256x64xbf16, #tpu.memory_space<vmem>>, vector<1x256x64xbf16>
      %204 = vector.shape_cast %203 : vector<1x256x64xbf16> to vector<256x64xbf16>
      %cst_141 = arith.constant dense<0.000000e+00> : vector<8x64xf32>
      %205 = tpu.matmul %151, %204, %cst_141 {dimension_numbers = #tpu.dot_dimension_numbers<[1], [0], [0], [1], [0, 0, 1, 1], [], []>} : vector<8x256xbf16>, vector<256x64xbf16>, vector<8x64xf32> -> vector<8x64xf32>
      %c2_142 = arith.constant 2 : index
      %c0_143 = arith.constant 0 : index
      %c0_144 = arith.constant 0 : index
      %206 = vector.load %arg9[%c2_142, %c0_143, %c0_144] : memref<4x1x64xf32, #tpu.memory_space<vmem>>, vector<1x1x64xf32>
      %207 = vector.shape_cast %206 : vector<1x1x64xf32> to vector<1x64xf32>
      %208 = vector.broadcast %207 : vector<1x64xf32> to vector<8x64xf32>
      %209 = arith.addf %205, %208 : vector<8x64xf32>
      %210 = arith.truncf %202 : vector<8x64xf32> to vector<8x64xbf16>
      %c2_145 = arith.constant 2 : index
      %c0_146 = arith.constant 0 : index
      %c0_147 = arith.constant 0 : index
      %211 = vector.load %arg15[%c2_145, %c0_146, %c0_147] : memref<4x8x64xbf16, #tpu.memory_space<vmem>>, vector<1x8x64xbf16>
      %212 = vector.shape_cast %211 : vector<1x8x64xbf16> to vector<8x64xbf16>
      %213 = vector.shape_cast %210 : vector<8x64xbf16> to vector<1x8x64xbf16>
      tpu.vector_store %arg15[%c2_145, %c0_146, %c0_147], %213 {strides = array<i32>} : memref<4x8x64xbf16, #tpu.memory_space<vmem>>, vector<1x8x64xbf16>,
      %214 = arith.truncf %209 : vector<8x64xf32> to vector<8x64xbf16>
      %c2_148 = arith.constant 2 : index
      %c0_149 = arith.constant 0 : index
      %c0_150 = arith.constant 0 : index
      %215 = vector.load %arg16[%c2_148, %c0_149, %c0_150] : memref<4x8x64xbf16, #tpu.memory_space<vmem>>, vector<1x8x64xbf16>
      %216 = vector.shape_cast %215 : vector<1x8x64xbf16> to vector<8x64xbf16>
      %217 = vector.shape_cast %214 : vector<8x64xbf16> to vector<1x8x64xbf16>
      tpu.vector_store %arg16[%c2_148, %c0_149, %c0_150], %217 {strides = array<i32>} : memref<4x8x64xbf16, #tpu.memory_space<vmem>>, vector<1x8x64xbf16>,
      %c3_151 = arith.constant 3 : index
      %c0_152 = arith.constant 0 : index
      %c0_153 = arith.constant 0 : index
      %218 = vector.load %arg5[%c3_151, %c0_152, %c0_153] : memref<4x256x64xbf16, #tpu.memory_space<vmem>>, vector<1x256x64xbf16>
      %219 = vector.shape_cast %218 : vector<1x256x64xbf16> to vector<256x64xbf16>
      %cst_154 = arith.constant dense<0.000000e+00> : vector<8x64xf32>
      %220 = tpu.matmul %151, %219, %cst_154 {dimension_numbers = #tpu.dot_dimension_numbers<[1], [0], [0], [1], [0, 0, 1, 1], [], []>} : vector<8x256xbf16>, vector<256x64xbf16>, vector<8x64xf32> -> vector<8x64xf32>
      %c3_155 = arith.constant 3 : index
      %c0_156 = arith.constant 0 : index
      %c0_157 = arith.constant 0 : index
      %221 = vector.load %arg8[%c3_155, %c0_156, %c0_157] : memref<4x1x64xf32, #tpu.memory_space<vmem>>, vector<1x1x64xf32>
      %222 = vector.shape_cast %221 : vector<1x1x64xf32> to vector<1x64xf32>
      %223 = vector.broadcast %222 : vector<1x64xf32> to vector<8x64xf32>
      %224 = arith.addf %220, %223 : vector<8x64xf32>
      %c3_158 = arith.constant 3 : index
      %c0_159 = arith.constant 0 : index
      %c0_160 = arith.constant 0 : index
      %225 = vector.load %arg6[%c3_158, %c0_159, %c0_160] : memref<4x256x64xbf16, #tpu.memory_space<vmem>>, vector<1x256x64xbf16>
      %226 = vector.shape_cast %225 : vector<1x256x64xbf16> to vector<256x64xbf16>
      %cst_161 = arith.constant dense<0.000000e+00> : vector<8x64xf32>
      %227 = tpu.matmul %151, %226, %cst_161 {dimension_numbers = #tpu.dot_dimension_numbers<[1], [0], [0], [1], [0, 0, 1, 1], [], []>} : vector<8x256xbf16>, vector<256x64xbf16>, vector<8x64xf32> -> vector<8x64xf32>
      %c3_162 = arith.constant 3 : index
      %c0_163 = arith.constant 0 : index
      %c0_164 = arith.constant 0 : index
      %228 = vector.load %arg9[%c3_162, %c0_163, %c0_164] : memref<4x1x64xf32, #tpu.memory_space<vmem>>, vector<1x1x64xf32>
      %229 = vector.shape_cast %228 : vector<1x1x64xf32> to vector<1x64xf32>
      %230 = vector.broadcast %229 : vector<1x64xf32> to vector<8x64xf32>
      %231 = arith.addf %227, %230 : vector<8x64xf32>
      %232 = arith.truncf %224 : vector<8x64xf32> to vector<8x64xbf16>
      %c3_165 = arith.constant 3 : index
      %c0_166 = arith.constant 0 : index
      %c0_167 = arith.constant 0 : index
      %233 = vector.load %arg15[%c3_165, %c0_166, %c0_167] : memref<4x8x64xbf16, #tpu.memory_space<vmem>>, vector<1x8x64xbf16>
      %234 = vector.shape_cast %233 : vector<1x8x64xbf16> to vector<8x64xbf16>
      %235 = vector.shape_cast %232 : vector<8x64xbf16> to vector<1x8x64xbf16>
      tpu.vector_store %arg15[%c3_165, %c0_166, %c0_167], %235 {strides = array<i32>} : memref<4x8x64xbf16, #tpu.memory_space<vmem>>, vector<1x8x64xbf16>,
      %236 = arith.truncf %231 : vector<8x64xf32> to vector<8x64xbf16>
      %c3_168 = arith.constant 3 : index
      %c0_169 = arith.constant 0 : index
      %c0_170 = arith.constant 0 : index
      %237 = vector.load %arg16[%c3_168, %c0_169, %c0_170] : memref<4x8x64xbf16, #tpu.memory_space<vmem>>, vector<1x8x64xbf16>
      %238 = vector.shape_cast %237 : vector<1x8x64xbf16> to vector<8x64xbf16>
      %239 = vector.shape_cast %236 : vector<8x64xbf16> to vector<1x8x64xbf16>
      tpu.vector_store %arg16[%c3_168, %c0_169, %c0_170], %239 {strides = array<i32>} : memref<4x8x64xbf16, #tpu.memory_space<vmem>>, vector<1x8x64xbf16>,
    } else {
    }
    %c0 = arith.constant 0 : index
    %c0_1 = arith.constant 0 : index
    %c0_2 = arith.constant 0 : index
    %3 = vector.load %arg3[%c0, %c0_1, %c0_2] : memref<1x8x256xbf16, #tpu.memory_space<vmem>>, vector<1x8x256xbf16>
    %4 = vector.shape_cast %3 : vector<1x8x256xbf16> to vector<8x256xbf16>
    %c0_3 = arith.constant 0 : index
    %c0_4 = arith.constant 0 : index
    %c0_5 = arith.constant 0 : index
    %5 = vector.load %arg4[%c0_3, %c0_4, %c0_5] : memref<4x256x64xbf16, #tpu.memory_space<vmem>>, vector<1x256x64xbf16>
    %6 = vector.shape_cast %5 : vector<1x256x64xbf16> to vector<256x64xbf16>
    %cst = arith.constant dense<0.000000e+00> : vector<8x64xf32>
    %7 = tpu.matmul %4, %6, %cst {dimension_numbers = #tpu.dot_dimension_numbers<[1], [0], [0], [1], [0, 0, 1, 1], [], []>} : vector<8x256xbf16>, vector<256x64xbf16>, vector<8x64xf32> -> vector<8x64xf32>
    %c0_6 = arith.constant 0 : index
    %c0_7 = arith.constant 0 : index
    %c0_8 = arith.constant 0 : index
    %8 = vector.load %arg7[%c0_6, %c0_7, %c0_8] : memref<4x1x64xf32, #tpu.memory_space<vmem>>, vector<1x1x64xf32>
    %9 = vector.shape_cast %8 : vector<1x1x64xf32> to vector<1x64xf32>
    %10 = vector.broadcast %9 : vector<1x64xf32> to vector<8x64xf32>
    %11 = arith.addf %7, %10 : vector<8x64xf32>
    %cst_9 = arith.constant 1.250000e-01 : f32
    %12 = vector.broadcast %cst_9 : f32 to vector<8x64xf32>
    %13 = arith.mulf %11, %12 : vector<8x64xf32>
    %14 = arith.truncf %13 : vector<8x64xf32> to vector<8x64xbf16>
    %c0_10 = arith.constant 0 : index
    %c0_11 = arith.constant 0 : index
    %c0_12 = arith.constant 0 : index
    %15 = vector.load %arg15[%c0_10, %c0_11, %c0_12] : memref<4x8x64xbf16, #tpu.memory_space<vmem>>, vector<1x8x64xbf16>
    %16 = vector.shape_cast %15 : vector<1x8x64xbf16> to vector<8x64xbf16>
    %cst_13 = arith.constant dense<0.000000e+00> : vector<8x8xf32>
    %17 = tpu.matmul %14, %16, %cst_13 {dimension_numbers = #tpu.dot_dimension_numbers<[1], [1], [0], [0], [0, 0, 1, 0], [], []>} : vector<8x64xbf16>, vector<8x64xbf16>, vector<8x8xf32> -> vector<8x8xf32>
    %cst_14 = arith.constant dense<0xFF800000> : vector<8xf32>
    %18 = vector.multi_reduction <maximumf>, %17, %cst_14 [1] : vector<8x8xf32> to vector<8xf32>
    %19 = vector.shape_cast %18 : vector<8xf32> to vector<8x1xf32>
    %20 = vector.broadcast %19 : vector<8x1xf32> to vector<8x8xf32>
    %21 = arith.subf %17, %20 : vector<8x8xf32>
    %22 = math.exp %21 : vector<8x8xf32>
    %cst_15 = arith.constant dense<0.000000e+00> : vector<8xf32>
    %23 = vector.multi_reduction <add>, %22, %cst_15 [1] : vector<8x8xf32> to vector<8xf32>
    %24 = vector.shape_cast %23 : vector<8xf32> to vector<8x1xf32>
    %25 = tpu.reciprocal %24 {approx = true} : vector<8x1xf32> -> vector<8x1xf32>
    %26 = vector.broadcast %25 : vector<8x1xf32> to vector<8x8xf32>
    %27 = arith.mulf %22, %26 : vector<8x8xf32>
    %28 = arith.truncf %27 : vector<8x8xf32> to vector<8x8xbf16>
    %c0_16 = arith.constant 0 : index
    %c0_17 = arith.constant 0 : index
    %c0_18 = arith.constant 0 : index
    %29 = vector.load %arg16[%c0_16, %c0_17, %c0_18] : memref<4x8x64xbf16, #tpu.memory_space<vmem>>, vector<1x8x64xbf16>
    %30 = vector.shape_cast %29 : vector<1x8x64xbf16> to vector<8x64xbf16>
    %cst_19 = arith.constant dense<0.000000e+00> : vector<8x64xf32>
    %31 = tpu.matmul %28, %30, %cst_19 {dimension_numbers = #tpu.dot_dimension_numbers<[1], [0], [0], [1], [0, 0, 1, 1], [], []>} : vector<8x8xbf16>, vector<8x64xbf16>, vector<8x64xf32> -> vector<8x64xf32>
    %c1 = arith.constant 1 : index
    %c0_20 = arith.constant 0 : index
    %c0_21 = arith.constant 0 : index
    %32 = vector.load %arg4[%c1, %c0_20, %c0_21] : memref<4x256x64xbf16, #tpu.memory_space<vmem>>, vector<1x256x64xbf16>
    %33 = vector.shape_cast %32 : vector<1x256x64xbf16> to vector<256x64xbf16>
    %cst_22 = arith.constant dense<0.000000e+00> : vector<8x64xf32>
    %34 = tpu.matmul %4, %33, %cst_22 {dimension_numbers = #tpu.dot_dimension_numbers<[1], [0], [0], [1], [0, 0, 1, 1], [], []>} : vector<8x256xbf16>, vector<256x64xbf16>, vector<8x64xf32> -> vector<8x64xf32>
    %c1_23 = arith.constant 1 : index
    %c0_24 = arith.constant 0 : index
    %c0_25 = arith.constant 0 : index
    %35 = vector.load %arg7[%c1_23, %c0_24, %c0_25] : memref<4x1x64xf32, #tpu.memory_space<vmem>>, vector<1x1x64xf32>
    %36 = vector.shape_cast %35 : vector<1x1x64xf32> to vector<1x64xf32>
    %37 = vector.broadcast %36 : vector<1x64xf32> to vector<8x64xf32>
    %38 = arith.addf %34, %37 : vector<8x64xf32>
    %cst_26 = arith.constant 1.250000e-01 : f32
    %39 = vector.broadcast %cst_26 : f32 to vector<8x64xf32>
    %40 = arith.mulf %38, %39 : vector<8x64xf32>
    %41 = arith.truncf %40 : vector<8x64xf32> to vector<8x64xbf16>
    %c1_27 = arith.constant 1 : index
    %c0_28 = arith.constant 0 : index
    %c0_29 = arith.constant 0 : index
    %42 = vector.load %arg15[%c1_27, %c0_28, %c0_29] : memref<4x8x64xbf16, #tpu.memory_space<vmem>>, vector<1x8x64xbf16>
    %43 = vector.shape_cast %42 : vector<1x8x64xbf16> to vector<8x64xbf16>
    %cst_30 = arith.constant dense<0.000000e+00> : vector<8x8xf32>
    %44 = tpu.matmul %41, %43, %cst_30 {dimension_numbers = #tpu.dot_dimension_numbers<[1], [1], [0], [0], [0, 0, 1, 0], [], []>} : vector<8x64xbf16>, vector<8x64xbf16>, vector<8x8xf32> -> vector<8x8xf32>
    %cst_31 = arith.constant dense<0xFF800000> : vector<8xf32>
    %45 = vector.multi_reduction <maximumf>, %44, %cst_31 [1] : vector<8x8xf32> to vector<8xf32>
    %46 = vector.shape_cast %45 : vector<8xf32> to vector<8x1xf32>
    %47 = vector.broadcast %46 : vector<8x1xf32> to vector<8x8xf32>
    %48 = arith.subf %44, %47 : vector<8x8xf32>
    %49 = math.exp %48 : vector<8x8xf32>
    %cst_32 = arith.constant dense<0.000000e+00> : vector<8xf32>
    %50 = vector.multi_reduction <add>, %49, %cst_32 [1] : vector<8x8xf32> to vector<8xf32>
    %51 = vector.shape_cast %50 : vector<8xf32> to vector<8x1xf32>
    %52 = tpu.reciprocal %51 {approx = true} : vector<8x1xf32> -> vector<8x1xf32>
    %53 = vector.broadcast %52 : vector<8x1xf32> to vector<8x8xf32>
    %54 = arith.mulf %49, %53 : vector<8x8xf32>
    %55 = arith.truncf %54 : vector<8x8xf32> to vector<8x8xbf16>
    %c1_33 = arith.constant 1 : index
    %c0_34 = arith.constant 0 : index
    %c0_35 = arith.constant 0 : index
    %56 = vector.load %arg16[%c1_33, %c0_34, %c0_35] : memref<4x8x64xbf16, #tpu.memory_space<vmem>>, vector<1x8x64xbf16>
    %57 = vector.shape_cast %56 : vector<1x8x64xbf16> to vector<8x64xbf16>
    %cst_36 = arith.constant dense<0.000000e+00> : vector<8x64xf32>
    %58 = tpu.matmul %55, %57, %cst_36 {dimension_numbers = #tpu.dot_dimension_numbers<[1], [0], [0], [1], [0, 0, 1, 1], [], []>} : vector<8x8xbf16>, vector<8x64xbf16>, vector<8x64xf32> -> vector<8x64xf32>
    %c2 = arith.constant 2 : index
    %c0_37 = arith.constant 0 : index
    %c0_38 = arith.constant 0 : index
    %59 = vector.load %arg4[%c2, %c0_37, %c0_38] : memref<4x256x64xbf16, #tpu.memory_space<vmem>>, vector<1x256x64xbf16>
    %60 = vector.shape_cast %59 : vector<1x256x64xbf16> to vector<256x64xbf16>
    %cst_39 = arith.constant dense<0.000000e+00> : vector<8x64xf32>
    %61 = tpu.matmul %4, %60, %cst_39 {dimension_numbers = #tpu.dot_dimension_numbers<[1], [0], [0], [1], [0, 0, 1, 1], [], []>} : vector<8x256xbf16>, vector<256x64xbf16>, vector<8x64xf32> -> vector<8x64xf32>
    %c2_40 = arith.constant 2 : index
    %c0_41 = arith.constant 0 : index
    %c0_42 = arith.constant 0 : index
    %62 = vector.load %arg7[%c2_40, %c0_41, %c0_42] : memref<4x1x64xf32, #tpu.memory_space<vmem>>, vector<1x1x64xf32>
    %63 = vector.shape_cast %62 : vector<1x1x64xf32> to vector<1x64xf32>
    %64 = vector.broadcast %63 : vector<1x64xf32> to vector<8x64xf32>
    %65 = arith.addf %61, %64 : vector<8x64xf32>
    %cst_43 = arith.constant 1.250000e-01 : f32
    %66 = vector.broadcast %cst_43 : f32 to vector<8x64xf32>
    %67 = arith.mulf %65, %66 : vector<8x64xf32>
    %68 = arith.truncf %67 : vector<8x64xf32> to vector<8x64xbf16>
    %c2_44 = arith.constant 2 : index
    %c0_45 = arith.constant 0 : index
    %c0_46 = arith.constant 0 : index
    %69 = vector.load %arg15[%c2_44, %c0_45, %c0_46] : memref<4x8x64xbf16, #tpu.memory_space<vmem>>, vector<1x8x64xbf16>
    %70 = vector.shape_cast %69 : vector<1x8x64xbf16> to vector<8x64xbf16>
    %cst_47 = arith.constant dense<0.000000e+00> : vector<8x8xf32>
    %71 = tpu.matmul %68, %70, %cst_47 {dimension_numbers = #tpu.dot_dimension_numbers<[1], [1], [0], [0], [0, 0, 1, 0], [], []>} : vector<8x64xbf16>, vector<8x64xbf16>, vector<8x8xf32> -> vector<8x8xf32>
    %cst_48 = arith.constant dense<0xFF800000> : vector<8xf32>
    %72 = vector.multi_reduction <maximumf>, %71, %cst_48 [1] : vector<8x8xf32> to vector<8xf32>
    %73 = vector.shape_cast %72 : vector<8xf32> to vector<8x1xf32>
    %74 = vector.broadcast %73 : vector<8x1xf32> to vector<8x8xf32>
    %75 = arith.subf %71, %74 : vector<8x8xf32>
    %76 = math.exp %75 : vector<8x8xf32>
    %cst_49 = arith.constant dense<0.000000e+00> : vector<8xf32>
    %77 = vector.multi_reduction <add>, %76, %cst_49 [1] : vector<8x8xf32> to vector<8xf32>
    %78 = vector.shape_cast %77 : vector<8xf32> to vector<8x1xf32>
    %79 = tpu.reciprocal %78 {approx = true} : vector<8x1xf32> -> vector<8x1xf32>
    %80 = vector.broadcast %79 : vector<8x1xf32> to vector<8x8xf32>
    %81 = arith.mulf %76, %80 : vector<8x8xf32>
    %82 = arith.truncf %81 : vector<8x8xf32> to vector<8x8xbf16>
    %c2_50 = arith.constant 2 : index
    %c0_51 = arith.constant 0 : index
    %c0_52 = arith.constant 0 : index
    %83 = vector.load %arg16[%c2_50, %c0_51, %c0_52] : memref<4x8x64xbf16, #tpu.memory_space<vmem>>, vector<1x8x64xbf16>
    %84 = vector.shape_cast %83 : vector<1x8x64xbf16> to vector<8x64xbf16>
    %cst_53 = arith.constant dense<0.000000e+00> : vector<8x64xf32>
    %85 = tpu.matmul %82, %84, %cst_53 {dimension_numbers = #tpu.dot_dimension_numbers<[1], [0], [0], [1], [0, 0, 1, 1], [], []>} : vector<8x8xbf16>, vector<8x64xbf16>, vector<8x64xf32> -> vector<8x64xf32>
    %c3 = arith.constant 3 : index
    %c0_54 = arith.constant 0 : index
    %c0_55 = arith.constant 0 : index
    %86 = vector.load %arg4[%c3, %c0_54, %c0_55] : memref<4x256x64xbf16, #tpu.memory_space<vmem>>, vector<1x256x64xbf16>
    %87 = vector.shape_cast %86 : vector<1x256x64xbf16> to vector<256x64xbf16>
    %cst_56 = arith.constant dense<0.000000e+00> : vector<8x64xf32>
    %88 = tpu.matmul %4, %87, %cst_56 {dimension_numbers = #tpu.dot_dimension_numbers<[1], [0], [0], [1], [0, 0, 1, 1], [], []>} : vector<8x256xbf16>, vector<256x64xbf16>, vector<8x64xf32> -> vector<8x64xf32>
    %c3_57 = arith.constant 3 : index
    %c0_58 = arith.constant 0 : index
    %c0_59 = arith.constant 0 : index
    %89 = vector.load %arg7[%c3_57, %c0_58, %c0_59] : memref<4x1x64xf32, #tpu.memory_space<vmem>>, vector<1x1x64xf32>
    %90 = vector.shape_cast %89 : vector<1x1x64xf32> to vector<1x64xf32>
    %91 = vector.broadcast %90 : vector<1x64xf32> to vector<8x64xf32>
    %92 = arith.addf %88, %91 : vector<8x64xf32>
    %cst_60 = arith.constant 1.250000e-01 : f32
    %93 = vector.broadcast %cst_60 : f32 to vector<8x64xf32>
    %94 = arith.mulf %92, %93 : vector<8x64xf32>
    %95 = arith.truncf %94 : vector<8x64xf32> to vector<8x64xbf16>
    %c3_61 = arith.constant 3 : index
    %c0_62 = arith.constant 0 : index
    %c0_63 = arith.constant 0 : index
    %96 = vector.load %arg15[%c3_61, %c0_62, %c0_63] : memref<4x8x64xbf16, #tpu.memory_space<vmem>>, vector<1x8x64xbf16>
    %97 = vector.shape_cast %96 : vector<1x8x64xbf16> to vector<8x64xbf16>
    %cst_64 = arith.constant dense<0.000000e+00> : vector<8x8xf32>
    %98 = tpu.matmul %95, %97, %cst_64 {dimension_numbers = #tpu.dot_dimension_numbers<[1], [1], [0], [0], [0, 0, 1, 0], [], []>} : vector<8x64xbf16>, vector<8x64xbf16>, vector<8x8xf32> -> vector<8x8xf32>
    %cst_65 = arith.constant dense<0xFF800000> : vector<8xf32>
    %99 = vector.multi_reduction <maximumf>, %98, %cst_65 [1] : vector<8x8xf32> to vector<8xf32>
    %100 = vector.shape_cast %99 : vector<8xf32> to vector<8x1xf32>
    %101 = vector.broadcast %100 : vector<8x1xf32> to vector<8x8xf32>
    %102 = arith.subf %98, %101 : vector<8x8xf32>
    %103 = math.exp %102 : vector<8x8xf32>
    %cst_66 = arith.constant dense<0.000000e+00> : vector<8xf32>
    %104 = vector.multi_reduction <add>, %103, %cst_66 [1] : vector<8x8xf32> to vector<8xf32>
    %105 = vector.shape_cast %104 : vector<8xf32> to vector<8x1xf32>
    %106 = tpu.reciprocal %105 {approx = true} : vector<8x1xf32> -> vector<8x1xf32>
    %107 = vector.broadcast %106 : vector<8x1xf32> to vector<8x8xf32>
    %108 = arith.mulf %103, %107 : vector<8x8xf32>
    %109 = arith.truncf %108 : vector<8x8xf32> to vector<8x8xbf16>
    %c3_67 = arith.constant 3 : index
    %c0_68 = arith.constant 0 : index
    %c0_69 = arith.constant 0 : index
    %110 = vector.load %arg16[%c3_67, %c0_68, %c0_69] : memref<4x8x64xbf16, #tpu.memory_space<vmem>>, vector<1x8x64xbf16>
    %111 = vector.shape_cast %110 : vector<1x8x64xbf16> to vector<8x64xbf16>
    %cst_70 = arith.constant dense<0.000000e+00> : vector<8x64xf32>
    %112 = tpu.matmul %109, %111, %cst_70 {dimension_numbers = #tpu.dot_dimension_numbers<[1], [0], [0], [1], [0, 0, 1, 1], [], []>} : vector<8x8xbf16>, vector<8x64xbf16>, vector<8x64xf32> -> vector<8x64xf32>
    %113 = tpu.concatenate %31, %58, %85, %112 in 1 : vector<8x64xf32>, vector<8x64xf32>, vector<8x64xf32>, vector<8x64xf32> -> vector<8x256xf32>
    %114 = arith.truncf %113 : vector<8x256xf32> to vector<8x256xbf16>
    %c0_71 = arith.constant 0 : index
    %c0_72 = arith.constant 0 : index
    %115 = vector.load %arg10[%c0_71, %c0_72] : memref<256x256xbf16, #tpu.memory_space<vmem>>, vector<256x256xbf16>
    %cst_73 = arith.constant dense<0.000000e+00> : vector<8x256xf32>
    %116 = tpu.matmul %114, %115, %cst_73 {dimension_numbers = #tpu.dot_dimension_numbers<[1], [0], [0], [1], [0, 0, 1, 1], [], []>} : vector<8x256xbf16>, vector<256x256xbf16>, vector<8x256xf32> -> vector<8x256xf32>
    %c0_74 = arith.constant 0 : index
    %c0_75 = arith.constant 0 : index
    %117 = vector.load %arg11[%c0_74, %c0_75] : memref<1x256xf32, #tpu.memory_space<vmem>>, vector<1x256xf32>
    %118 = vector.broadcast %117 : vector<1x256xf32> to vector<8x256xf32>
    %119 = arith.addf %116, %118 : vector<8x256xf32>
    %120 = arith.extf %4 : vector<8x256xbf16> to vector<8x256xf32>
    %121 = arith.addf %120, %119 : vector<8x256xf32>
    %cst_76 = arith.constant dense<0.000000e+00> : vector<8xf32>
    %122 = vector.multi_reduction <add>, %121, %cst_76 [1] : vector<8x256xf32> to vector<8xf32>
    %123 = vector.shape_cast %122 : vector<8xf32> to vector<8x1xf32>
    %cst_77 = arith.constant 2.560000e+02 : f32
    %124 = vector.broadcast %cst_77 : f32 to vector<8x1xf32>
    %125 = arith.divf %123, %124 : vector<8x1xf32>
    %126 = vector.broadcast %125 : vector<8x1xf32> to vector<8x256xf32>
    %127 = arith.subf %121, %126 : vector<8x256xf32>
    %128 = arith.mulf %127, %127 : vector<8x256xf32>
    %cst_78 = arith.constant dense<0.000000e+00> : vector<8xf32>
    %129 = vector.multi_reduction <add>, %128, %cst_78 [1] : vector<8x256xf32> to vector<8xf32>
    %130 = vector.shape_cast %129 : vector<8xf32> to vector<8x1xf32>
    %cst_79 = arith.constant 2.560000e+02 : f32
    %131 = vector.broadcast %cst_79 : f32 to vector<8x1xf32>
    %132 = arith.divf %130, %131 : vector<8x1xf32>
    %133 = vector.broadcast %125 : vector<8x1xf32> to vector<8x256xf32>
    %134 = arith.subf %121, %133 : vector<8x256xf32>
    %cst_80 = arith.constant 9.99999974E-6 : f32
    %135 = vector.broadcast %cst_80 : f32 to vector<8x1xf32>
    %136 = arith.addf %132, %135 : vector<8x1xf32>
    %137 = math.rsqrt %136 : vector<8x1xf32>
    %138 = vector.broadcast %137 : vector<8x1xf32> to vector<8x256xf32>
    %139 = arith.mulf %134, %138 : vector<8x256xf32>
    %c0_81 = arith.constant 0 : index
    %c0_82 = arith.constant 0 : index
    %140 = vector.load %arg12[%c0_81, %c0_82] : memref<1x256xf32, #tpu.memory_space<vmem>>, vector<1x256xf32>
    %141 = vector.broadcast %140 : vector<1x256xf32> to vector<8x256xf32>
    %142 = arith.mulf %139, %141 : vector<8x256xf32>
    %c0_83 = arith.constant 0 : index
    %c0_84 = arith.constant 0 : index
    %143 = vector.load %arg13[%c0_83, %c0_84] : memref<1x256xf32, #tpu.memory_space<vmem>>, vector<1x256xf32>
    %144 = vector.broadcast %143 : vector<1x256xf32> to vector<8x256xf32>
    %145 = arith.addf %142, %144 : vector<8x256xf32>
    %146 = arith.truncf %145 : vector<8x256xf32> to vector<8x256xbf16>
    %c0_85 = arith.constant 0 : index
    %c0_86 = arith.constant 0 : index
    %c0_87 = arith.constant 0 : index
    %147 = vector.load %arg14[%c0_85, %c0_86, %c0_87] : memref<1x8x256xbf16, #tpu.memory_space<vmem>>, vector<1x8x256xbf16>
    %148 = vector.shape_cast %147 : vector<1x8x256xbf16> to vector<8x256xbf16>
    %149 = vector.shape_cast %146 : vector<8x256xbf16> to vector<1x8x256xbf16>
    tpu.vector_store %arg14[%c0_85, %c0_86, %c0_87], %149 {strides = array<i32>} : memref<1x8x256xbf16, #tpu.memory_space<vmem>>, vector<1x8x256xbf16>,
    return
  }
  func.func @transform_0(%arg0: i32, %arg1: i32) -> (i32, i32, i32) {
    %c0_i32 = arith.constant 0 : i32
    %c0_i32_0 = arith.constant 0 : i32
    %c0_i32_1 = arith.constant 0 : i32
    return %arg0, %c0_i32, %c0_i32_0 : i32, i32, i32
  }
  func.func @transform_1(%arg0: i32, %arg1: i32) -> (i32, i32, i32) {
    %c0_i32 = arith.constant 0 : i32
    %c0_i32_0 = arith.constant 0 : i32
    return %arg0, %arg1, %c0_i32 : i32, i32, i32
  }
  func.func @transform_2(%arg0: i32, %arg1: i32) -> (i32, i32, i32) {
    %c0_i32 = arith.constant 0 : i32
    %c0_i32_0 = arith.constant 0 : i32
    %c0_i32_1 = arith.constant 0 : i32
    %c0_i32_2 = arith.constant 0 : i32
    return %c0_i32, %c0_i32_0, %c0_i32_1 : i32, i32, i32
  }
  func.func @transform_3(%arg0: i32, %arg1: i32) -> (i32, i32, i32) {
    %c0_i32 = arith.constant 0 : i32
    %c0_i32_0 = arith.constant 0 : i32
    %c0_i32_1 = arith.constant 0 : i32
    %c0_i32_2 = arith.constant 0 : i32
    return %c0_i32, %c0_i32_0, %c0_i32_1 : i32, i32, i32
  }
  func.func @transform_4(%arg0: i32, %arg1: i32) -> (i32, i32, i32) {
    %c0_i32 = arith.constant 0 : i32
    %c0_i32_0 = arith.constant 0 : i32
    %c0_i32_1 = arith.constant 0 : i32
    %c0_i32_2 = arith.constant 0 : i32
    return %c0_i32, %c0_i32_0, %c0_i32_1 : i32, i32, i32
  }
  func.func @transform_5(%arg0: i32, %arg1: i32) -> (i32, i32, i32) {
    %c0_i32 = arith.constant 0 : i32
    %c0_i32_0 = arith.constant 0 : i32
    %c0_i32_1 = arith.constant 0 : i32
    %c0_i32_2 = arith.constant 0 : i32
    return %c0_i32, %c0_i32_0, %c0_i32_1 : i32, i32, i32
  }
  func.func @transform_6(%arg0: i32, %arg1: i32) -> (i32, i32, i32) {
    %c0_i32 = arith.constant 0 : i32
    %c0_i32_0 = arith.constant 0 : i32
    %c0_i32_1 = arith.constant 0 : i32
    %c0_i32_2 = arith.constant 0 : i32
    return %c0_i32, %c0_i32_0, %c0_i32_1 : i32, i32, i32
  }
  func.func @transform_7(%arg0: i32, %arg1: i32) -> (i32, i32, i32) {
    %c0_i32 = arith.constant 0 : i32
    %c0_i32_0 = arith.constant 0 : i32
    %c0_i32_1 = arith.constant 0 : i32
    %c0_i32_2 = arith.constant 0 : i32
    return %c0_i32, %c0_i32_0, %c0_i32_1 : i32, i32, i32
  }
  func.func @transform_8(%arg0: i32, %arg1: i32) -> (i32, i32) {
    %c0_i32 = arith.constant 0 : i32
    %c0_i32_0 = arith.constant 0 : i32
    %c0_i32_1 = arith.constant 0 : i32
    return %c0_i32, %c0_i32_0 : i32, i32
  }
  func.func @transform_9(%arg0: i32, %arg1: i32) -> (i32, i32) {
    %c0_i32 = arith.constant 0 : i32
    %c0_i32_0 = arith.constant 0 : i32
    %c0_i32_1 = arith.constant 0 : i32
    return %c0_i32, %c0_i32_0 : i32, i32
  }
  func.func @transform_10(%arg0: i32, %arg1: i32) -> (i32, i32) {
    %c0_i32 = arith.constant 0 : i32
    %c0_i32_0 = arith.constant 0 : i32
    %c0_i32_1 = arith.constant 0 : i32
    return %c0_i32, %c0_i32_0 : i32, i32
  }
  func.func @transform_11(%arg0: i32, %arg1: i32) -> (i32, i32) {
    %c0_i32 = arith.constant 0 : i32
    %c0_i32_0 = arith.constant 0 : i32
    %c0_i32_1 = arith.constant 0 : i32
    return %c0_i32, %c0_i32_0 : i32, i32
  }
  func.func @transform_12(%arg0: i32, %arg1: i32) -> (i32, i32, i32) {
    %c0_i32 = arith.constant 0 : i32
    %c0_i32_0 = arith.constant 0 : i32
    return %arg0, %arg1, %c0_i32 : i32, i32, i32
  }
}

module attributes {stable_mosaic.version = 11 : i64} {
  func.func @_ffn_block_kernel(%arg0: i32, %arg1: memref<16x256xbf16, #tpu.memory_space<vmem>>, %arg2: memref<256x1024xbf16, #tpu.memory_space<vmem>>, %arg3: memref<1x1024xf32, #tpu.memory_space<vmem>>, %arg4: memref<1024x256xbf16, #tpu.memory_space<vmem>>, %arg5: memref<1x256xf32, #tpu.memory_space<vmem>>, %arg6: memref<1x256xf32, #tpu.memory_space<vmem>>, %arg7: memref<1x256xf32, #tpu.memory_space<vmem>>, %arg8: memref<16x256xbf16, #tpu.memory_space<vmem>>) attributes {dimension_semantics = [#tpu.dimension_semantics<parallel>], iteration_bounds = array<i64: 1>, scalar_prefetch = 0 : i64, scratch_operands = 0 : i64, tpu.core_type = #tpu.core_type<tc>, window_params = [{transform_indices = @transform_0, window_bounds = array<i64: 16, 256>}, {pipeline_mode = #tpu.pipeline_mode<synchronous>, transform_indices = @transform_1, window_bounds = array<i64: 256, 1024>}, {pipeline_mode = #tpu.pipeline_mode<synchronous>, transform_indices = @transform_2, window_bounds = array<i64: 1, 1024>}, {pipeline_mode = #tpu.pipeline_mode<synchronous>, transform_indices = @transform_3, window_bounds = array<i64: 1024, 256>}, {pipeline_mode = #tpu.pipeline_mode<synchronous>, transform_indices = @transform_4, window_bounds = array<i64: 1, 256>}, {pipeline_mode = #tpu.pipeline_mode<synchronous>, transform_indices = @transform_5, window_bounds = array<i64: 1, 256>}, {pipeline_mode = #tpu.pipeline_mode<synchronous>, transform_indices = @transform_6, window_bounds = array<i64: 1, 256>}, {transform_indices = @transform_7, window_bounds = array<i64: 16, 256>}]} {
    %c0 = arith.constant 0 : index
    %c0_0 = arith.constant 0 : index
    %0 = vector.load %arg1[%c0, %c0_0] : memref<16x256xbf16, #tpu.memory_space<vmem>>, vector<16x256xbf16>
    %c0_1 = arith.constant 0 : index
    %c0_2 = arith.constant 0 : index
    %1 = vector.load %arg2[%c0_1, %c0_2] : memref<256x1024xbf16, #tpu.memory_space<vmem>>, vector<256x1024xbf16>
    %cst = arith.constant dense<0.000000e+00> : vector<16x1024xf32>
    %2 = tpu.matmul %0, %1, %cst {dimension_numbers = #tpu.dot_dimension_numbers<[1], [0], [0], [1], [0, 0, 1, 1], [], []>} : vector<16x256xbf16>, vector<256x1024xbf16>, vector<16x1024xf32> -> vector<16x1024xf32>
    %c0_3 = arith.constant 0 : index
    %c0_4 = arith.constant 0 : index
    %3 = vector.load %arg3[%c0_3, %c0_4] : memref<1x1024xf32, #tpu.memory_space<vmem>>, vector<1x1024xf32>
    %4 = vector.broadcast %3 : vector<1x1024xf32> to vector<16x1024xf32>
    %5 = arith.addf %2, %4 : vector<16x1024xf32>
    %cst_5 = arith.constant 0.000000e+00 : f32
    %6 = vector.broadcast %cst_5 : f32 to vector<16x1024xf32>
    %7 = arith.maximumf %5, %6 : vector<16x1024xf32>
    %8 = arith.truncf %7 : vector<16x1024xf32> to vector<16x1024xbf16>
    %c0_6 = arith.constant 0 : index
    %c0_7 = arith.constant 0 : index
    %9 = vector.load %arg4[%c0_6, %c0_7] : memref<1024x256xbf16, #tpu.memory_space<vmem>>, vector<1024x256xbf16>
    %cst_8 = arith.constant dense<0.000000e+00> : vector<16x256xf32>
    %10 = tpu.matmul %8, %9, %cst_8 {dimension_numbers = #tpu.dot_dimension_numbers<[1], [0], [0], [1], [0, 0, 1, 1], [], []>} : vector<16x1024xbf16>, vector<1024x256xbf16>, vector<16x256xf32> -> vector<16x256xf32>
    %c0_9 = arith.constant 0 : index
    %c0_10 = arith.constant 0 : index
    %11 = vector.load %arg5[%c0_9, %c0_10] : memref<1x256xf32, #tpu.memory_space<vmem>>, vector<1x256xf32>
    %12 = vector.broadcast %11 : vector<1x256xf32> to vector<16x256xf32>
    %13 = arith.addf %10, %12 : vector<16x256xf32>
    %14 = arith.extf %0 : vector<16x256xbf16> to vector<16x256xf32>
    %15 = arith.addf %14, %13 : vector<16x256xf32>
    %cst_11 = arith.constant dense<0.000000e+00> : vector<16xf32>
    %16 = vector.multi_reduction <add>, %15, %cst_11 [1] : vector<16x256xf32> to vector<16xf32>
    %17 = vector.shape_cast %16 : vector<16xf32> to vector<16x1xf32>
    %cst_12 = arith.constant 2.560000e+02 : f32
    %18 = vector.broadcast %cst_12 : f32 to vector<16x1xf32>
    %19 = arith.divf %17, %18 : vector<16x1xf32>
    %20 = vector.broadcast %19 : vector<16x1xf32> to vector<16x256xf32>
    %21 = arith.subf %15, %20 : vector<16x256xf32>
    %22 = arith.mulf %21, %21 : vector<16x256xf32>
    %cst_13 = arith.constant dense<0.000000e+00> : vector<16xf32>
    %23 = vector.multi_reduction <add>, %22, %cst_13 [1] : vector<16x256xf32> to vector<16xf32>
    %24 = vector.shape_cast %23 : vector<16xf32> to vector<16x1xf32>
    %cst_14 = arith.constant 2.560000e+02 : f32
    %25 = vector.broadcast %cst_14 : f32 to vector<16x1xf32>
    %26 = arith.divf %24, %25 : vector<16x1xf32>
    %27 = vector.broadcast %19 : vector<16x1xf32> to vector<16x256xf32>
    %28 = arith.subf %15, %27 : vector<16x256xf32>
    %cst_15 = arith.constant 9.99999974E-6 : f32
    %29 = vector.broadcast %cst_15 : f32 to vector<16x1xf32>
    %30 = arith.addf %26, %29 : vector<16x1xf32>
    %31 = math.rsqrt %30 : vector<16x1xf32>
    %32 = vector.broadcast %31 : vector<16x1xf32> to vector<16x256xf32>
    %33 = arith.mulf %28, %32 : vector<16x256xf32>
    %c0_16 = arith.constant 0 : index
    %c0_17 = arith.constant 0 : index
    %34 = vector.load %arg6[%c0_16, %c0_17] : memref<1x256xf32, #tpu.memory_space<vmem>>, vector<1x256xf32>
    %35 = vector.broadcast %34 : vector<1x256xf32> to vector<16x256xf32>
    %36 = arith.mulf %33, %35 : vector<16x256xf32>
    %c0_18 = arith.constant 0 : index
    %c0_19 = arith.constant 0 : index
    %37 = vector.load %arg7[%c0_18, %c0_19] : memref<1x256xf32, #tpu.memory_space<vmem>>, vector<1x256xf32>
    %38 = vector.broadcast %37 : vector<1x256xf32> to vector<16x256xf32>
    %39 = arith.addf %36, %38 : vector<16x256xf32>
    %40 = arith.truncf %39 : vector<16x256xf32> to vector<16x256xbf16>
    %c0_20 = arith.constant 0 : index
    %c0_21 = arith.constant 0 : index
    %41 = vector.load %arg8[%c0_20, %c0_21] : memref<16x256xbf16, #tpu.memory_space<vmem>>, vector<16x256xbf16>
    tpu.vector_store %arg8[%c0_20, %c0_21], %40 {strides = array<i32>} : memref<16x256xbf16, #tpu.memory_space<vmem>>, vector<16x256xbf16>,
    return
  }
  func.func @transform_0(%arg0: i32) -> (i32, i32) {
    %c0_i32 = arith.constant 0 : i32
    %c0_i32_0 = arith.constant 0 : i32
    return %arg0, %c0_i32 : i32, i32
  }
  func.func @transform_1(%arg0: i32) -> (i32, i32) {
    %c0_i32 = arith.constant 0 : i32
    %c0_i32_0 = arith.constant 0 : i32
    %c0_i32_1 = arith.constant 0 : i32
    return %c0_i32, %c0_i32_0 : i32, i32
  }
  func.func @transform_2(%arg0: i32) -> (i32, i32) {
    %c0_i32 = arith.constant 0 : i32
    %c0_i32_0 = arith.constant 0 : i32
    %c0_i32_1 = arith.constant 0 : i32
    return %c0_i32, %c0_i32_0 : i32, i32
  }
  func.func @transform_3(%arg0: i32) -> (i32, i32) {
    %c0_i32 = arith.constant 0 : i32
    %c0_i32_0 = arith.constant 0 : i32
    %c0_i32_1 = arith.constant 0 : i32
    return %c0_i32, %c0_i32_0 : i32, i32
  }
  func.func @transform_4(%arg0: i32) -> (i32, i32) {
    %c0_i32 = arith.constant 0 : i32
    %c0_i32_0 = arith.constant 0 : i32
    %c0_i32_1 = arith.constant 0 : i32
    return %c0_i32, %c0_i32_0 : i32, i32
  }
  func.func @transform_5(%arg0: i32) -> (i32, i32) {
    %c0_i32 = arith.constant 0 : i32
    %c0_i32_0 = arith.constant 0 : i32
    %c0_i32_1 = arith.constant 0 : i32
    return %c0_i32, %c0_i32_0 : i32, i32
  }
  func.func @transform_6(%arg0: i32) -> (i32, i32) {
    %c0_i32 = arith.constant 0 : i32
    %c0_i32_0 = arith.constant 0 : i32
    %c0_i32_1 = arith.constant 0 : i32
    return %c0_i32, %c0_i32_0 : i32, i32
  }
  func.func @transform_7(%arg0: i32) -> (i32, i32) {
    %c0_i32 = arith.constant 0 : i32
    %c0_i32_0 = arith.constant 0 : i32
    return %arg0, %c0_i32 : i32, i32
  }
}

module attributes {stable_mosaic.version = 11 : i64} {
  func.func @_pool_cls_kernel(%arg0: i32, %arg1: memref<1x8x256xbf16, #tpu.memory_space<vmem>>, %arg2: memref<1x256xf32, #tpu.memory_space<vmem>>, %arg3: memref<1x256xf32, #tpu.memory_space<vmem>>, %arg4: memref<256x10xbf16, #tpu.memory_space<vmem>>, %arg5: memref<1x10xf32, #tpu.memory_space<vmem>>, %arg6: memref<1x1x10xf32, #tpu.memory_space<vmem>>) attributes {dimension_semantics = [#tpu.dimension_semantics<parallel>], iteration_bounds = array<i64: 2>, scalar_prefetch = 0 : i64, scratch_operands = 0 : i64, tpu.core_type = #tpu.core_type<tc>, window_params = [{transform_indices = @transform_0, window_bounds = array<i64: 1, 8, 256>}, {pipeline_mode = #tpu.pipeline_mode<synchronous>, transform_indices = @transform_1, window_bounds = array<i64: 1, 256>}, {pipeline_mode = #tpu.pipeline_mode<synchronous>, transform_indices = @transform_2, window_bounds = array<i64: 1, 256>}, {pipeline_mode = #tpu.pipeline_mode<synchronous>, transform_indices = @transform_3, window_bounds = array<i64: 256, 10>}, {pipeline_mode = #tpu.pipeline_mode<synchronous>, transform_indices = @transform_4, window_bounds = array<i64: 1, 10>}, {transform_indices = @transform_5, window_bounds = array<i64: 1, 1, 10>}]} {
    %c0 = arith.constant 0 : index
    %c0_0 = arith.constant 0 : index
    %c0_1 = arith.constant 0 : index
    %0 = vector.load %arg1[%c0, %c0_0, %c0_1] : memref<1x8x256xbf16, #tpu.memory_space<vmem>>, vector<1x8x256xbf16>
    %1 = vector.shape_cast %0 : vector<1x8x256xbf16> to vector<8x256xbf16>
    %2 = arith.extf %1 : vector<8x256xbf16> to vector<8x256xf32>
    %cst = arith.constant dense<0.000000e+00> : vector<256xf32>
    %3 = vector.multi_reduction <add>, %2, %cst [0] : vector<8x256xf32> to vector<256xf32>
    %4 = vector.shape_cast %3 : vector<256xf32> to vector<1x256xf32>
    %cst_2 = arith.constant 8.000000e+00 : f32
    %5 = vector.broadcast %cst_2 : f32 to vector<1x256xf32>
    %6 = arith.divf %4, %5 : vector<1x256xf32>
    %cst_3 = arith.constant dense<0.000000e+00> : vector<1xf32>
    %7 = vector.multi_reduction <add>, %6, %cst_3 [1] : vector<1x256xf32> to vector<1xf32>
    %8 = vector.shape_cast %7 : vector<1xf32> to vector<1x1xf32>
    %cst_4 = arith.constant 2.560000e+02 : f32
    %9 = vector.broadcast %cst_4 : f32 to vector<1x1xf32>
    %10 = arith.divf %8, %9 : vector<1x1xf32>
    %11 = vector.broadcast %10 : vector<1x1xf32> to vector<1x256xf32>
    %12 = arith.subf %6, %11 : vector<1x256xf32>
    %13 = arith.mulf %12, %12 : vector<1x256xf32>
    %cst_5 = arith.constant dense<0.000000e+00> : vector<1xf32>
    %14 = vector.multi_reduction <add>, %13, %cst_5 [1] : vector<1x256xf32> to vector<1xf32>
    %15 = vector.shape_cast %14 : vector<1xf32> to vector<1x1xf32>
    %cst_6 = arith.constant 2.560000e+02 : f32
    %16 = vector.broadcast %cst_6 : f32 to vector<1x1xf32>
    %17 = arith.divf %15, %16 : vector<1x1xf32>
    %18 = vector.broadcast %10 : vector<1x1xf32> to vector<1x256xf32>
    %19 = arith.subf %6, %18 : vector<1x256xf32>
    %cst_7 = arith.constant 9.99999974E-6 : f32
    %20 = vector.broadcast %cst_7 : f32 to vector<1x1xf32>
    %21 = arith.addf %17, %20 : vector<1x1xf32>
    %22 = math.rsqrt %21 : vector<1x1xf32>
    %23 = vector.broadcast %22 : vector<1x1xf32> to vector<1x256xf32>
    %24 = arith.mulf %19, %23 : vector<1x256xf32>
    %c0_8 = arith.constant 0 : index
    %c0_9 = arith.constant 0 : index
    %25 = vector.load %arg2[%c0_8, %c0_9] : memref<1x256xf32, #tpu.memory_space<vmem>>, vector<1x256xf32>
    %26 = arith.mulf %24, %25 : vector<1x256xf32>
    %c0_10 = arith.constant 0 : index
    %c0_11 = arith.constant 0 : index
    %27 = vector.load %arg3[%c0_10, %c0_11] : memref<1x256xf32, #tpu.memory_space<vmem>>, vector<1x256xf32>
    %28 = arith.addf %26, %27 : vector<1x256xf32>
    %29 = arith.truncf %28 : vector<1x256xf32> to vector<1x256xbf16>
    %c0_12 = arith.constant 0 : index
    %c0_13 = arith.constant 0 : index
    %30 = vector.load %arg4[%c0_12, %c0_13] : memref<256x10xbf16, #tpu.memory_space<vmem>>, vector<256x10xbf16>
    %cst_14 = arith.constant dense<0.000000e+00> : vector<1x10xf32>
    %31 = tpu.matmul %29, %30, %cst_14 {dimension_numbers = #tpu.dot_dimension_numbers<[1], [0], [0], [1], [0, 0, 1, 1], [], []>} : vector<1x256xbf16>, vector<256x10xbf16>, vector<1x10xf32> -> vector<1x10xf32>
    %c0_15 = arith.constant 0 : index
    %c0_16 = arith.constant 0 : index
    %32 = vector.load %arg5[%c0_15, %c0_16] : memref<1x10xf32, #tpu.memory_space<vmem>>, vector<1x10xf32>
    %33 = arith.addf %31, %32 : vector<1x10xf32>
    %c0_17 = arith.constant 0 : index
    %c0_18 = arith.constant 0 : index
    %c0_19 = arith.constant 0 : index
    %34 = vector.load %arg6[%c0_17, %c0_18, %c0_19] : memref<1x1x10xf32, #tpu.memory_space<vmem>>, vector<1x1x10xf32>
    %35 = vector.shape_cast %34 : vector<1x1x10xf32> to vector<1x10xf32>
    %36 = vector.shape_cast %33 : vector<1x10xf32> to vector<1x1x10xf32>
    tpu.vector_store %arg6[%c0_17, %c0_18, %c0_19], %36 {strides = array<i32>} : memref<1x1x10xf32, #tpu.memory_space<vmem>>, vector<1x1x10xf32>,
    return
  }
  func.func @transform_0(%arg0: i32) -> (i32, i32, i32) {
    %c0_i32 = arith.constant 0 : i32
    %c0_i32_0 = arith.constant 0 : i32
    %c0_i32_1 = arith.constant 0 : i32
    return %arg0, %c0_i32, %c0_i32_0 : i32, i32, i32
  }
  func.func @transform_1(%arg0: i32) -> (i32, i32) {
    %c0_i32 = arith.constant 0 : i32
    %c0_i32_0 = arith.constant 0 : i32
    %c0_i32_1 = arith.constant 0 : i32
    return %c0_i32, %c0_i32_0 : i32, i32
  }
  func.func @transform_2(%arg0: i32) -> (i32, i32) {
    %c0_i32 = arith.constant 0 : i32
    %c0_i32_0 = arith.constant 0 : i32
    %c0_i32_1 = arith.constant 0 : i32
    return %c0_i32, %c0_i32_0 : i32, i32
  }
  func.func @transform_3(%arg0: i32) -> (i32, i32) {
    %c0_i32 = arith.constant 0 : i32
    %c0_i32_0 = arith.constant 0 : i32
    %c0_i32_1 = arith.constant 0 : i32
    return %c0_i32, %c0_i32_0 : i32, i32
  }
  func.func @transform_4(%arg0: i32) -> (i32, i32) {
    %c0_i32 = arith.constant 0 : i32
    %c0_i32_0 = arith.constant 0 : i32
    %c0_i32_1 = arith.constant 0 : i32
    return %c0_i32, %c0_i32_0 : i32, i32
  }
  func.func @transform_5(%arg0: i32) -> (i32, i32, i32) {
    %c0_i32 = arith.constant 0 : i32
    %c0_i32_0 = arith.constant 0 : i32
    %c0_i32_1 = arith.constant 0 : i32
    return %arg0, %c0_i32, %c0_i32_0 : i32, i32, i32
  }
}

</mosaic_0001>

<bundles_post_ra>
// kernel: encoder_classifier_forward.7
= control target key start
LH: loop header
LB: loop body
LE: loop exit
PB: predicated region body
PF: predicated region fallthrough
CT: control target
= control target key end

     0   :  { %8 = vsyncpa [#allocation3], 0  ;;  %s952_s12 = smov 0   ;;  %s1023_s0 = inlined_call_operand.vmem [shape: bf16[2,18,128], index: 0, kind: input, shape index: {}]   ;;  %s1024_s1 = inlined_call_operand.hbm [shape: bf16[384,256], index: 1, kind: input, shape index: {}]   ;;  %s1025_s2 = inlined_call_operand.vmem [shape: f32[1,256], index: 2, kind: input, shape index: {}]   ;;  %s1026_s3 = inlined_call_operand.vmem [shape: bf16[2,18,256], index: 3, kind: output, shape index: {}]  }
   0x1 LB: > { %s958_s13 = sadd.s32 4294967295, %s926_s12   ;;  %p718_p0 = scmp.ge.s32.totalorder %s926_s12, 1  ;;  %s926_s12 = sphi %s952_s12, %s14_s12  }
   0x2   : > { %p113_p1 = scmp.lt.s32.totalorder %s926_s12, 3  ;;  %s928_s14 = smov [#allocation2]  }
   0x3   : > { %s125_s15 = sshll.u32 %s928_s14, 4  ;;  %p1027_p3 = scmp.eq.s32.totalorder %s958_s13, 0  ;;  %s126_s15 = int_to_ptr.vmem [resolvable:$true] %s125_s15 }
   0x4   : > { %p962_p2 = pnand %p718_p0, %p113_p1  ;;  %s888_s20 = scalar_lea.hbm %s1024_s1, 6144 }
   0x5   : > { %p889_p6 = scmp.ne.s32.totalorder %s1024_s1, %s888_s20  ;;  %p895_p10 = scmp.lt.u32.totalorder %s888_s20, %s1024_s1 }
   0x6   : > { %s1029_s16 = scalar_select %p962_p2, 1, 0 }
   0x7   : > { %p796_p4 = pneg %p962_p2 }
   0x9   : > { %p971_p5 = pnand %p1027_p3, %p796_p4 }
   0xb   : > { %p890_p7 = pneg %p971_p5 }
   0xd   : > { %p891_p8 = pnand %p890_p7, %p889_p6 }
   0xf   : > { %p892_p9 = pneg %p891_p8 }
  0x11   : > { %p897_p11 = pnand %p895_p10, %p892_p9 }
  0x13   : > { %900 = shalt.err (!%p897_p11)
}
  0x14   : > { %s901_s25 = scalar_lea.vmem %s126_s15, 6144  ;;  %p909_p1 = scmp.lt.s32.totalorder %s126_s15, %s126_s15 }
  0x15   : > { %p902_p12 = scmp.ne.s32.totalorder %s126_s15, %s901_s25  ;;  %p910_p4 = scmp.lt.s32.totalorder %s901_s25, %s901_s25 }
  0x17   : > { %p904_p13 = pnand %p902_p12, %p890_p7  ;;  %p911_p3 = por %p910_p4, %p909_p1 }
  0x19   : > { %p905_p0 = pneg %p904_p13 }
  0x1b   : > { %p912_p2 = pnand %p911_p3, %p905_p0 }
  0x1d   : > { %915 = shalt.err (!%p912_p2)
}
  0x1e   : > { %s929_s26 = smov 128   ;;  %s930_s27 = smov 8  }
  0x1f   : > { %799 = dma.hbm_to_vmem [thread:$0]  (!%p971_p5), %s1024_s1, 6144, %s126_s15, [#allocation3], %s929_s26, %s929_s26, %s930_s27  }
  0x20   : > { %p1031_p6 = scmp.ne.s32.totalorder %s1029_s16, 0 }
  0x21   : > { %p1032_p8 = scmp.eq.s32.totalorder (!%p1031_p6), %s958_s13, 0 }
  0x22   : > { %152 = sbr.rel (%p1031_p6) target bundleno = 334 (0x14e), region = 32 }
  0x29   : > { %921 = dma.done.wait (%p1032_p8), [#allocation3], 6144   ;;  %p1033_p7 = pmov %p1032_p8 }
  0x2a   : > { %v931_v0 = vmov 0   ;;  %v814_v1 = vld [vmem:[#allocation2 + $0x4] ss:$8 sps:$4 sm:$0xff]   ;;  %v816_v2 = vld [vmem:[#allocation2] ss:$8 sps:$4 sm:$0xff]   ;;  %p176_p2 = scmp.lt.s32.totalorder %s958_s13, 1 }
  0x2b   : > { %923 = vsyncadd (%p1033_p7), [#allocation3], 4294961152  ;;  %590 = vmatprep.mubr.bf16.mxu0 %v931_v0  ;;  %515 = vmatprep.subr.bf16.mxu1 %v814_v1  ;;  %v817_v3 = vld [vmem:[#allocation2 + $0x14] ss:$8 sps:$4 sm:$0xff]   ;;  %v819_v4 = vld [vmem:[#allocation2 + $0x10] ss:$8 sps:$4 sm:$0xff]  }
  0x2c   : > { %516 = vmatpush1.bf16.msra.mxu1 %v816_v2  ;;  %v820_v5 = vld [vmem:[#allocation2 + $0x24] ss:$8 sps:$4 sm:$0xff]   ;;  %v822_v6 = vld [vmem:[#allocation2 + $0x20] ss:$8 sps:$4 sm:$0xff]   ;;  %v823_v7 = vld [vmem:[#allocation2 + $0x34] ss:$8 sps:$4 sm:$0xff]  }
  0x2d   : > { %517 = vmatprep.subr.bf16.mxu1 %v817_v3  ;;  %v825_v8 = vld [vmem:[#allocation2 + $0x30] ss:$8 sps:$4 sm:$0xff]   ;;  %v838_v9 = vld [vmem:[#allocation2 + $0x104] ss:$8 sps:$4 sm:$0xff]   ;;  %v842_v11 = vld [vmem:[#allocation2 + $0x100] ss:$8 sps:$4 sm:$0xff]  }
  0x2e   : > { %v826_v10 = vld [vmem:[#allocation2 + $0x44] ss:$8 sps:$4 sm:$0xff]   ;;  %558 = vmatprep.subr.bf16.mxu0 %v838_v9  ;;  %v844_v12 = vld [vmem:[#allocation2 + $0x114] ss:$8 sps:$4 sm:$0xff]   ;;  %v828_v13 = vld [vmem:[#allocation2 + $0x40] ss:$8 sps:$4 sm:$0xff]  }
  0x2f   : > { %559 = vmatpush1.bf16.msra.mxu0 %v842_v11  ;;  %v829_v14 = vld [vmem:[#allocation2 + $0x54] ss:$8 sps:$4 sm:$0xff]   ;;  %v848_v15 = vld [vmem:[#allocation2 + $0x110] ss:$8 sps:$4 sm:$0xff]   ;;  %v850_v16 = vld [vmem:[#allocation2 + $0x124] ss:$8 sps:$4 sm:$0xff]  }
  0x30   : > { %518 = vmatpush1.bf16.msra.mxu1 %v819_v4  ;;  %560 = vmatprep.subr.bf16.mxu0 %v844_v12  ;;  %v831_v17 = vld [vmem:[#allocation2 + $0x50] ss:$8 sps:$4 sm:$0xff]   ;;  %v854_v18 = vld [vmem:[#allocation2 + $0x120] ss:$8 sps:$4 sm:$0xff]   ;;  %v856_v19 = vld [vmem:[#allocation2 + $0x134] ss:$8 sps:$4 sm:$0xff]  }
  0x31   : > { %519 = vmatprep.subr.bf16.mxu1 %v820_v5  ;;  %v832_v20 = vld [vmem:[#allocation2 + $0x64] ss:$8 sps:$4 sm:$0xff]   ;;  %s1035_s13 = smov (!%p176_p2, %s958_s13), 1  ;;  %v860_v21 = vld [vmem:[#allocation2 + $0x130] ss:$8 sps:$4 sm:$0xff]   ;;  %vm196_vm0 = vcmask 1046528  }
  0x32   : > { %v834_v22 = vld [vmem:[#allocation2 + $0x60] ss:$8 sps:$4 sm:$0xff]   ;;  %v862_v23 = vld [vmem:[#allocation2 + $0x144] ss:$8 sps:$4 sm:$0xff]   ;;  %v835_v24 = vld [vmem:[#allocation2 + $0x74] ss:$8 sps:$4 sm:$0xff]  }
  0x33   : > { %561 = vmatpush1.bf16.msra.mxu0 %v848_v15  ;;  %s790_s30 = smul.u32 12, %s1035_s13  ;;  %v837_v25 = vld [vmem:[#allocation2 + $0x70] ss:$8 sps:$4 sm:$0xff]   ;;  %v866_v26 = vld [vmem:[#allocation2 + $0x140] ss:$8 sps:$4 sm:$0xff]   ;;  %vm204_vm1 = vcmask 1045504  }
  0x34   : > { %520 = vmatpush1.bf16.msra.mxu1 %v822_v6  ;;  %562 = vmatprep.subr.bf16.mxu0 %v850_v16  ;;  %v868_v27 = vld [vmem:[#allocation2 + $0x154] ss:$8 sps:$4 sm:$0xff]   ;;  %v840_v28 = vld [vmem:[#allocation2 + $0x84] ss:$8 sps:$4 sm:$0xff]   ;;  %v872_v29 = vld [vmem:[#allocation2 + $0x150] ss:$8 sps:$4 sm:$0xff]   ;;  %v265_v6 = vlaneseq }
  0x35   : > { %521 = vmatprep.subr.bf16.mxu1 %v823_v7  ;;  %s180_s6 = scalar_lea.vmem %s1023_s0, %s790_s30  ;;  %v843_v30 = vld [vmem:[#allocation2 + $0x80] ss:$8 sps:$4 sm:$0xff]   ;;  %v874_v31 = vld [vmem:[#allocation2 + $0x164] ss:$8 sps:$4 sm:$0xff]   ;;  %v846_v32 = vld [vmem:[#allocation2 + $0x94] ss:$8 sps:$4 sm:$0xff]  }
  0x36   : > { %v187_v33 = vld [vmem:[%s180_s6] sm:$0xff]   ;;  %v189_v34 = vld [vmem:[%s180_s6 + $0x8] sm:$0x1]  ;;  %v849_v38 = vld [vmem:[#allocation2 + $0x90] ss:$8 sps:$4 sm:$0xff]   ;;  %v266_v7 = vshrl.u32 %v265_v6, 7 }
  0x37   : > { %563 = vmatpush1.bf16.msra.mxu0 %v854_v18  ;;  %v190_v35 = vunpack.c.l.bf16 %v187_v33  ;;  %v191_v36 = vunpack.c.h.bf16 %v187_v33  ;;  %v192_v37 = vunpack.c.l.bf16 %v189_v34  ;;  %v878_v39 = vld [vmem:[#allocation2 + $0x160] ss:$8 sps:$4 sm:$0xff]   ;;  %v880_v40 = vld [vmem:[#allocation2 + $0x174] ss:$8 sps:$4 sm:$0xff]   ;;  %v852_v45 = vld [vmem:[#allocation2 + $0xa4] ss:$8 sps:$4 sm:$0xff]  }
  0x38   : > { %522 = vmatpush1.bf16.msra.mxu1 %v825_v8  ;;  %564 = vmatprep.subr.bf16.mxu0 %v856_v19  ;;  %v884_v50 = vld [vmem:[#allocation2 + $0x170] ss:$8 sps:$4 sm:$0xff]   ;;  %v855_v54 = vld [vmem:[#allocation2 + $0xa0] ss:$8 sps:$4 sm:$0xff]   ;;  %v858_v55 = vld [vmem:[#allocation2 + $0xb4] ss:$8 sps:$4 sm:$0xff]  }
  0x39   : > { %523 = vmatprep.subr.bf16.mxu1 %v826_v10  ;;  %v197_v41 = vrot.slane %v190_v35, 1  ;;  %v198_v42 = vrot.slane %v191_v36, 1  ;;  %v200_v43 = vrot.slane %v192_v37, 1  ;;  %v205_v44 = vrot.slane %v190_v35, 2  ;;  %v861_v57 = vld [vmem:[#allocation2 + $0xb0] ss:$8 sps:$4 sm:$0xff]  }
  0x3a   : > { %v206_v46 = vrot.slane %v191_v36, 2  ;;  %v208_v47 = vrot.slane %v192_v37, 2  ;;  %v864_v58 = vld [vmem:[#allocation2 + $0xc4] ss:$8 sps:$4 sm:$0xff]   ;;  %v867_v59 = vld [vmem:[#allocation2 + $0xc0] ss:$8 sps:$4 sm:$0xff]  }
  0x3b   : > { %565 = vmatpush1.bf16.msra.mxu0 %v860_v21  ;;  %v199_v48 = vsel %vm196_vm0, %v197_v41, %v198_v42  ;;  %v201_v49 = vsel %vm196_vm0, %v198_v42, %v200_v43  ;;  %v870_v60 = vld [vmem:[#allocation2 + $0xd4] ss:$8 sps:$4 sm:$0xff]   ;;  %v873_v61 = vld [vmem:[#allocation2 + $0xd0] ss:$8 sps:$4 sm:$0xff]   ;;  %v876_v62 = vld [vmem:[#allocation2 + $0xe4] ss:$8 sps:$4 sm:$0xff]  }
  0x3c   : > { %524 = vmatpush1.bf16.msra.mxu1 %v828_v13  ;;  %566 = vmatprep.subr.bf16.mxu0 %v862_v23  ;;  %v213_v51 = vpack.c.bf16 %v201_v49, %v199_v48  ;;  %v207_v52 = vsel %vm204_vm1, %v205_v44, %v206_v46  ;;  %v209_v53 = vsel %vm204_vm1, %v206_v46, %v208_v47  ;;  %v879_v63 = vld [vmem:[#allocation2 + $0xe0] ss:$8 sps:$4 sm:$0xff]   ;;  %v882_v0 = vld [vmem:[#allocation2 + $0xf4] ss:$8 sps:$4 sm:$0xff]   ;;  %v885_v1 = vld [vmem:[#allocation2 + $0xf0] ss:$8 sps:$4 sm:$0xff]  }
  0x3d   : > { %525 = vmatprep.subr.bf16.mxu1 %v829_v14  ;;  %v214_v56 = vpack.c.bf16 %v209_v53, %v207_v52  ;;  %v267_v8 = vsub.s32 0, %v266_v7  ;;  %v263_v9 = vld [vmem:[%s1025_s2] sm:$0x3]  ;;  %v271_v10 = vsub.s32 1, %v266_v7  ;;  %vm609_vm2 = vcmask 1040384   ;;  %s791_s9 = smul.u32 24, %s1035_s13 }
  0x3e   : > { %547 = vmatprep.mubr.bf16.mxu1 %v213_v51 }
  0x3f   : > { %567 = vmatpush1.bf16.msra.mxu0 %v866_v26  ;;  %v268_v11 = vrot.slane %v263_v9, %v267_v8  ;;  %v272_v12 = vrot.slane %v263_v9, %v271_v10  ;;  %s185_s14 = scalar_lea.vmem %s1026_s3, %s791_s9 }
  0x40   : > { %526 = vmatpush1.bf16.msra.mxu1 %v831_v17  ;;  %568 = vmatprep.subr.bf16.mxu0 %v868_v27 }
  0x41   : > { %527 = vmatprep.subr.bf16.mxu1 %v832_v20 }
  0x43   : > { %569 = vmatpush1.bf16.msra.mxu0 %v872_v29 }
  0x44   : > { %528 = vmatpush1.bf16.msra.mxu1 %v834_v22  ;;  %570 = vmatprep.subr.bf16.mxu0 %v874_v31 }
  0x45   : > { %529 = vmatprep.subr.bf16.mxu1 %v835_v24 }
  0x47   : > { %571 = vmatpush1.bf16.msra.mxu0 %v878_v39 }
  0x48   : > { %530 = vmatpush1.bf16.msra.mxu1 %v837_v25  ;;  %572 = vmatprep.subr.bf16.mxu0 %v880_v40 }
  0x49   : > { %531 = vmatprep.subr.bf16.mxu1 %v840_v28 }
  0x4b   : > { %573 = vmatpush1.bf16.msra.mxu0 %v884_v50 }
  0x4c   : > { %532 = vmatpush1.bf16.msra.mxu1 %v843_v30 }
  0x4d   : > { %533 = vmatprep.subr.bf16.mxu1 %v846_v32 }
  0x4e   : > { %591 = vmatmul.mubr.bf16.vlgmr.msra.gmra.mrb[0].mxu0 %v214_v56 }
  0x50   : > { %534 = vmatpush1.bf16.msra.mxu1 %v849_v38 }
  0x51   : > { %535 = vmatprep.subr.bf16.mxu1 %v852_v45 }
  0x54   : > { %536 = vmatpush1.bf16.msra.mxu1 %v855_v54 }
  0x55   : > { %537 = vmatprep.subr.bf16.mxu1 %v858_v55 }
  0x58   : > { %538 = vmatpush1.bf16.msra.mxu1 %v861_v57 }
  0x59   : > { %539 = vmatprep.subr.bf16.mxu1 %v864_v58 }
  0x5c   : > { %540 = vmatpush1.bf16.msra.mxu1 %v867_v59 }
  0x5d   : > { %541 = vmatprep.subr.bf16.mxu1 %v870_v60 }
  0x60   : > { %542 = vmatpush1.bf16.msra.mxu1 %v873_v61 }
  0x61   : > { %543 = vmatprep.subr.bf16.mxu1 %v876_v62 }
  0x64   : > { %544 = vmatpush1.bf16.msra.mxu1 %v879_v63 }
  0x65   : > { %545 = vmatprep.subr.bf16.mxu1 %v882_v0 }
  0x68   : > { %546 = vmatpush1.bf16.msra.mxu1 %v885_v1 }
  0x6b   : > { %548 = vmatmul.mubr.bf16.vlgmr.msra.gmra.mrb[0].mxu1 %v187_v33 }
 0x121   : > { %v592_v2 = vpop.f32.mrb[0].mxu0 }
 0x122   : > { %v594_v3 = vpop.f32.mrb[1].mxu0 }
 0x123   : > { %v596_v4 = vpop.f32.mrb[2].mxu0 }
 0x124   : > { %v598_v5 = vpop.f32.mrb[3].mxu0 }
 0x13e   : > { %v549_v13 = vpop.f32.mrb[0].mxu1 }
 0x13f   : > { %v550_v14 = vadd.f32 %v549_v13, %v268_v11  ;;  %v551_v15 = vpop.f32.mrb[1].mxu1 }
 0x140   : > { %v552_v16 = vadd.f32 %v551_v15, %v272_v12  ;;  %v553_v17 = vpop.f32.mrb[2].mxu1 }
 0x141   : > { %v593_v18 = vadd.f32 %v592_v2, %v550_v14  ;;  %v554_v19 = vadd.f32 %v553_v17, %v268_v11  ;;  %v555_v20 = vpop.f32.mrb[3].mxu1 }
 0x142   : > { %v595_v21 = vadd.f32 %v594_v3, %v552_v16  ;;  %v556_v22 = vadd.f32 %v555_v20, %v272_v12 }
 0x143   : > { %v601_v23 = vmax.f32 %v593_v18, 0.0  ;;  %v597_v24 = vadd.f32 %v596_v4, %v554_v19 }
 0x144   : > { %v602_v25 = vmax.f32 %v595_v21, 0.0  ;;  %v599_v26 = vadd.f32 %v598_v5, %v556_v22 }
 0x145   : > { %v610_v27 = vrot.slane %v601_v23, 7  ;;  %v603_v28 = vmax.f32 %v597_v24, 0.0 }
 0x146   : > { %v611_v29 = vrot.slane %v602_v25, 7  ;;  %v604_v30 = vmax.f32 %v599_v26, 0.0 }
 0x147   : > { %v622_v31 = vsel %vm609_vm2, 0.0, %v610_v27  ;;  %v612_v32 = vrot.slane %v603_v28, 7 }
 0x148   : > { %v623_v33 = vsel %vm609_vm2, 0.0, %v611_v29  ;;  %v614_v34 = vrot.slane %v604_v30, 7 }
 0x149   : > { %v779_v35 = vpack.c.bf16 %v623_v33, %v622_v31  ;;  %v613_v36 = vsel %vm609_vm2, %v610_v27, %v612_v32  ;;  %v624_v37 = vsel %vm609_vm2, %v612_v32, 0.0 }
 0x14a   : > { %v615_v38 = vsel %vm609_vm2, %v611_v29, %v614_v34  ;;  %v625_v39 = vsel %vm609_vm2, %v614_v34, 0.0 }
 0x14b   : > { %646 = vst [vmem:[%s185_s14] sm:$0xff] %v779_v35  ;;  %v780_v40 = vpack.c.bf16 %v615_v38, %v613_v36  ;;  %v781_v41 = vpack.c.bf16 %v625_v39, %v624_v37 }
 0x14d   : > { %647 = vst [vmem:[%s185_s14 + $0x8] sm:$0xff] %v780_v40  ;;  %648 = vst [vmem:[%s185_s14 + $0x10] sm:$0x11] %v781_v41 }
 0x14e PF: > { %s14_s12 = sadd.s32 1, %s926_s12  }
 0x14f   : > { %p11_p3 = scmp.ge.s32.totalorder %s14_s12, 4  }
 0x151   :  { %13 = sbr.rel (!%p11_p3) target bundleno = 1 (0x1), region = 67 }
 0x158   :  { %670 = vsyncpa [#allocation3], 1 }
 0x159   :  { %672 = vsyncpa [#allocation3 + $0x1], 1 }

// kernel: encoder_classifier_forward.8
= control target key start
LH: loop header
LB: loop body
LE: loop exit
PB: predicated region body
PF: predicated region fallthrough
CT: control target
= control target key end

     0   :  { %s1316_s15 = smov 0   ;;  %s1651_s0 = inlined_call_operand.vmem [shape: bf16[2,9,512], index: 0, kind: input, shape index: {}]   ;;  %s1652_s1 = inlined_call_operand.vmem [shape: bf16[512,256], index: 1, kind: input, shape index: {}]   ;;  %s1653_s2 = inlined_call_operand.vmem [shape: bf16[256,256], index: 2, kind: input, shape index: {}]   ;;  %s1654_s3 = inlined_call_operand.vmem [shape: f32[1,256], index: 3, kind: input, shape index: {}]   ;;  %s1655_s4 = inlined_call_operand.vmem [shape: bf16[2,8,256], index: 4, kind: output, shape index: {}]  }
   0x1 LB: > { %s1008_s16 = sadd.s32 4294967295, %s1289_s15   ;;  %p1012_p0 = scmp.ge.s32.totalorder %s1289_s15, 1  ;;  %s1289_s15 = sphi %s1316_s15, %s14_s15  }
   0x2   : > { %p162_p1 = scmp.lt.s32.totalorder %s1289_s15, 3 }
   0x4   : > { %p163_p2 = pnand %p1012_p0, %p162_p1 }
   0x5   : > { %v1133_v0 = vld [vmem:[%s1653_s2 + $0x4] ss:$8 sps:$4 sm:$0xff] (!%p163_p2)   ;;  %v1137_v2 = vld [vmem:[%s1653_s2] ss:$8 sps:$4 sm:$0xff] (!%p163_p2)   ;;  %v1139_v4 = vld [vmem:[%s1653_s2 + $0x14] ss:$8 sps:$4 sm:$0xff] (!%p163_p2)  }
   0x6   : > { %166 = sbr.rel (%p163_p2) target bundleno = 356 (0x164), region = 36  ;;  %v1135_v1 = vld [vmem:[%s1652_s1 + $0x4] ss:$8 sps:$4 sm:$0xff] (!%p163_p2)   ;;  %485 = vmatprep.subr.bf16.mxu0 (!%p163_p2), %v1133_v0  ;;  %v1138_v3 = vld [vmem:[%s1652_s1] ss:$8 sps:$4 sm:$0xff] (!%p163_p2)   ;;  %p188_p3 = scmp.lt.s32.totalorder (!%p163_p2), %s1008_s16, 1 }
   0x7   : > { %846 = vmatprep.subr.bf16.mxu1 (!%p163_p2), %v1135_v1  ;;  %486 = vmatpush1.bf16.msra.mxu0 (!%p163_p2), %v1137_v2  ;;  %v1141_v5 = vld [vmem:[%s1652_s1 + $0x14] ss:$8 sps:$4 sm:$0xff] (!%p163_p2)   ;;  %v1143_v6 = vld [vmem:[%s1653_s2 + $0x10] ss:$8 sps:$4 sm:$0xff] (!%p163_p2)   ;;  %v1145_v8 = vld [vmem:[%s1653_s2 + $0x24] ss:$8 sps:$4 sm:$0xff] (!%p163_p2)  }
   0x8   : > { %847 = vmatpush1.bf16.msra.mxu1 (!%p163_p2), %v1138_v3  ;;  %487 = vmatprep.subr.bf16.mxu0 (!%p163_p2), %v1139_v4  ;;  %v1144_v7 = vld [vmem:[%s1652_s1 + $0x10] ss:$8 sps:$4 sm:$0xff] (!%p163_p2)   ;;  %v1147_v9 = vld [vmem:[%s1652_s1 + $0x24] ss:$8 sps:$4 sm:$0xff] (!%p163_p2)   ;;  %v1149_v10 = vld [vmem:[%s1653_s2 + $0x20] ss:$8 sps:$4 sm:$0xff] (!%p163_p2)  }
   0x9   : > { %848 = vmatprep.subr.bf16.mxu1 (!%p163_p2), %v1141_v5  ;;  %v1150_v11 = vld [vmem:[%s1652_s1 + $0x20] ss:$8 sps:$4 sm:$0xff] (!%p163_p2)   ;;  %v1151_v12 = vld [vmem:[%s1653_s2 + $0x34] ss:$8 sps:$4 sm:$0xff] (!%p163_p2)   ;;  %v1155_v14 = vld [vmem:[%s1653_s2 + $0x30] ss:$8 sps:$4 sm:$0xff] (!%p163_p2)  }
   0xa   : > { %v1153_v13 = vld [vmem:[%s1652_s1 + $0x34] ss:$8 sps:$4 sm:$0xff] (!%p163_p2)   ;;  %v1156_v15 = vld [vmem:[%s1652_s1 + $0x30] ss:$8 sps:$4 sm:$0xff] (!%p163_p2)   ;;  %v1157_v16 = vld [vmem:[%s1653_s2 + $0x44] ss:$8 sps:$4 sm:$0xff] (!%p163_p2)  }
   0xb   : > { %488 = vmatpush1.bf16.msra.mxu0 (!%p163_p2), %v1143_v6  ;;  %v1159_v17 = vld [vmem:[%s1652_s1 + $0x44] ss:$8 sps:$4 sm:$0xff] (!%p163_p2)   ;;  %v1161_v18 = vld [vmem:[%s1653_s2 + $0x40] ss:$8 sps:$4 sm:$0xff] (!%p163_p2)   ;;  %v1163_v20 = vld [vmem:[%s1653_s2 + $0x54] ss:$8 sps:$4 sm:$0xff] (!%p163_p2)  }
   0xc   : > { %849 = vmatpush1.bf16.msra.mxu1 (!%p163_p2), %v1144_v7  ;;  %489 = vmatprep.subr.bf16.mxu0 (!%p163_p2), %v1145_v8  ;;  %v1162_v19 = vld [vmem:[%s1652_s1 + $0x40] ss:$8 sps:$4 sm:$0xff] (!%p163_p2)   ;;  %v1165_v21 = vld [vmem:[%s1652_s1 + $0x54] ss:$8 sps:$4 sm:$0xff] (!%p163_p2)   ;;  %v1167_v22 = vld [vmem:[%s1653_s2 + $0x50] ss:$8 sps:$4 sm:$0xff] (!%p163_p2)  }
   0xd   : > { %850 = vmatprep.subr.bf16.mxu1 %v1147_v9  ;;  %v1168_v23 = vld [vmem:[%s1652_s1 + $0x50] ss:$8 sps:$4 sm:$0xff]   ;;  %v1169_v24 = vld [vmem:[%s1653_s2 + $0x64] ss:$8 sps:$4 sm:$0xff]   ;;  %v1173_v26 = vld [vmem:[%s1653_s2 + $0x60] ss:$8 sps:$4 sm:$0xff]  }
   0xe   : > { %v1171_v25 = vld [vmem:[%s1652_s1 + $0x64] ss:$8 sps:$4 sm:$0xff]   ;;  %v1174_v27 = vld [vmem:[%s1652_s1 + $0x60] ss:$8 sps:$4 sm:$0xff]   ;;  %v1175_v28 = vld [vmem:[%s1653_s2 + $0x74] ss:$8 sps:$4 sm:$0xff]  }
   0xf   : > { %490 = vmatpush1.bf16.msra.mxu0 %v1149_v10  ;;  %v1177_v29 = vld [vmem:[%s1652_s1 + $0x74] ss:$8 sps:$4 sm:$0xff]   ;;  %v1179_v30 = vld [vmem:[%s1653_s2 + $0x70] ss:$8 sps:$4 sm:$0xff]   ;;  %v1181_v32 = vld [vmem:[%s1653_s2 + $0x84] ss:$8 sps:$4 sm:$0xff]  }
  0x10   : > { %851 = vmatpush1.bf16.msra.mxu1 %v1150_v11  ;;  %491 = vmatprep.subr.bf16.mxu0 %v1151_v12  ;;  %v1180_v31 = vld [vmem:[%s1652_s1 + $0x70] ss:$8 sps:$4 sm:$0xff]   ;;  %v1183_v33 = vld [vmem:[%s1652_s1 + $0x84] ss:$8 sps:$4 sm:$0xff]   ;;  %v1185_v34 = vld [vmem:[%s1653_s2 + $0x80] ss:$8 sps:$4 sm:$0xff]  }
  0x11   : > { %852 = vmatprep.subr.bf16.mxu1 %v1153_v13  ;;  %v1186_v35 = vld [vmem:[%s1652_s1 + $0x80] ss:$8 sps:$4 sm:$0xff]   ;;  %v1187_v36 = vld [vmem:[%s1653_s2 + $0x94] ss:$8 sps:$4 sm:$0xff]   ;;  %s1657_s16 = smov (!%p188_p3, %s1008_s16), 1 }
  0x12   : > { %v1189_v37 = vld [vmem:[%s1652_s1 + $0x94] ss:$8 sps:$4 sm:$0xff]   ;;  %v1191_v38 = vld [vmem:[%s1653_s2 + $0x90] ss:$8 sps:$4 sm:$0xff]   ;;  %v1193_v40 = vld [vmem:[%s1653_s2 + $0xa4] ss:$8 sps:$4 sm:$0xff]  }
  0x13   : > { %492 = vmatpush1.bf16.msra.mxu0 %v1155_v14  ;;  %v1192_v39 = vld [vmem:[%s1652_s1 + $0x90] ss:$8 sps:$4 sm:$0xff]   ;;  %s1122_s27 = sshll.u32 %s1657_s16, 5  ;;  %v1195_v41 = vld [vmem:[%s1652_s1 + $0xa4] ss:$8 sps:$4 sm:$0xff]   ;;  %s1123_s24 = sshll.u32 %s1657_s16, 3 }
  0x14   : > { %853 = vmatpush1.bf16.msra.mxu1 %v1156_v15  ;;  %493 = vmatprep.subr.bf16.mxu0 %v1157_v16  ;;  %v1197_v42 = vld [vmem:[%s1653_s2 + $0xa0] ss:$8 sps:$4 sm:$0xff]   ;;  %s1466_s10 = scalar_lea.vmem %s1651_s0, %s1122_s27  ;;  %v1199_v44 = vld [vmem:[%s1653_s2 + $0xb4] ss:$8 sps:$4 sm:$0xff]   ;;  %v1203_v49 = vld [vmem:[%s1653_s2 + $0xb0] ss:$8 sps:$4 sm:$0xff]   ;;  %s197_s27 = scalar_lea.vmem %s1655_s4, %s1123_s24 }
  0x15   : > { %854 = vmatprep.subr.bf16.mxu1 %v1159_v17  ;;  %v1198_v43 = vld [vmem:[%s1652_s1 + $0xa0] ss:$8 sps:$4 sm:$0xff]   ;;  %v1201_v45 = vld [vmem:[%s1652_s1 + $0xb4] ss:$8 sps:$4 sm:$0xff]   ;;  %v1204_v50 = vld [vmem:[%s1652_s1 + $0xb0] ss:$8 sps:$4 sm:$0xff]  }
  0x16   : > { %v1475_v46 = vld [vmem:[%s1466_s10] sm:$0xff]  ;;  %v200_v47 = vld [vmem:[%s1466_s10 + $0x10] sm:$0x11]  ;;  %v1548_v17 = vld [vmem:[%s1466_s10 + $0x8] sm:$0xff] }
  0x17   : > { %494 = vmatpush1.bf16.msra.mxu0 %v1161_v18  ;;  %v1018_v48 = vcombine.high %v1475_v46, %v1475_v46  ;;  %v1022_v51 = vcombine.high %v1475_v46, %v200_v47  ;;  %v1205_v52 = vld [vmem:[%s1653_s2 + $0xc4] ss:$8 sps:$4 sm:$0xff]   ;;  %v1209_v56 = vld [vmem:[%s1653_s2 + $0xc0] ss:$8 sps:$4 sm:$0xff]   ;;  %v1211_v59 = vld [vmem:[%s1653_s2 + $0xd4] ss:$8 sps:$4 sm:$0xff]   ;;  %v1021_v63 = vcombine.low %v1475_v46, %v200_v47  ;;  %v1017_v14 = vcombine.low %v1475_v46, %v1475_v46 }
  0x18   : > { %855 = vmatpush1.bf16.msra.mxu1 %v1162_v19  ;;  %495 = vmatprep.subr.bf16.mxu0 %v1163_v20  ;;  %v1207_v53 = vld [vmem:[%s1652_s1 + $0xc4] ss:$8 sps:$4 sm:$0xff]   ;;  %v1210_v57 = vld [vmem:[%s1652_s1 + $0xc0] ss:$8 sps:$4 sm:$0xff]   ;;  %v1213_v60 = vld [vmem:[%s1652_s1 + $0xd4] ss:$8 sps:$4 sm:$0xff]   ;;  %v1020_v18 = vcombine.high %v1548_v17, %v1548_v17 }
  0x19   : > { %856 = vmatprep.subr.bf16.mxu1 %v1165_v21  ;;  %v317_v54 = vshrl.u32 %v1022_v51, 16  ;;  %v319_v55 = vshll.u32 %v1022_v51, 16  ;;  %878 = vmatprep.mubr.bf16.mxu1 %v1018_v48  ;;  %v1215_v62 = vld [vmem:[%s1653_s2 + $0xd0] ss:$8 sps:$4 sm:$0xff]   ;;  %v1217_v1 = vld [vmem:[%s1653_s2 + $0xe4] ss:$8 sps:$4 sm:$0xff]   ;;  %v1019_v48 = vcombine.low %v1548_v17, %v1548_v17 }
  0x1a   : > { %v1216_v0 = vld [vmem:[%s1652_s1 + $0xd0] ss:$8 sps:$4 sm:$0xff]   ;;  %v1219_v2 = vld [vmem:[%s1652_s1 + $0xe4] ss:$8 sps:$4 sm:$0xff]   ;;  %v1221_v3 = vld [vmem:[%s1653_s2 + $0xe0] ss:$8 sps:$4 sm:$0xff]  }
  0x1b   : > { %496 = vmatpush1.bf16.msra.mxu0 %v1167_v22  ;;  %v321_v58 = vrot.slane %v319_v55, 1  ;;  %v312_v4 = vshll.u32 %v1021_v63, 16  ;;  %v1222_v5 = vld [vmem:[%s1652_s1 + $0xe0] ss:$8 sps:$4 sm:$0xff]   ;;  %v1223_v6 = vld [vmem:[%s1653_s2 + $0xf4] ss:$8 sps:$4 sm:$0xff]  }
  0x1c   : > { %857 = vmatpush1.bf16.msra.mxu1 %v1168_v23  ;;  %497 = vmatprep.subr.bf16.mxu0 %v1169_v24  ;;  %v1225_v7 = vld [vmem:[%s1652_s1 + $0xf4] ss:$8 sps:$4 sm:$0xff]   ;;  %v310_v8 = vshrl.u32 %v1021_v63, 16  ;;  %v1227_v10 = vld [vmem:[%s1653_s2 + $0xf0] ss:$8 sps:$4 sm:$0xff]  }
  0x1d   : > { %858 = vmatprep.subr.bf16.mxu1 %v1171_v25  ;;  %v322_v61 = vor.u32 %v321_v58, %v317_v54  ;;  %v314_v9 = vrot.slane %v312_v4, 1  ;;  %v1228_v11 = vld [vmem:[%s1652_s1 + $0xf0] ss:$8 sps:$4 sm:$0xff]   ;;  %v1235_v12 = vld [vmem:[%s1652_s1 + $0x104] ss:$8 sps:$4 sm:$0xff]  }
  0x1e   : > { %v1233_v15 = vld [vmem:[%s1652_s1 + $0x100] ss:$8 sps:$4 sm:$0xff]   ;;  %v1238_v16 = vld [vmem:[%s1652_s1 + $0x114] ss:$8 sps:$4 sm:$0xff]   ;;  %v1236_v19 = vld [vmem:[%s1652_s1 + $0x110] ss:$8 sps:$4 sm:$0xff]  }
  0x1f   : > { %498 = vmatpush1.bf16.msra.mxu0 %v1173_v26  ;;  %517 = vmatprep.mubr.bf16.mxu0 %v322_v61  ;;  %v315_v13 = vor.u32 %v314_v9, %v310_v8  ;;  %v1241_v20 = vld [vmem:[%s1652_s1 + $0x124] ss:$8 sps:$4 sm:$0xff]   ;;  %v1239_v21 = vld [vmem:[%s1652_s1 + $0x120] ss:$8 sps:$4 sm:$0xff]   ;;  %v1244_v22 = vld [vmem:[%s1652_s1 + $0x134] ss:$8 sps:$4 sm:$0xff]  }
  0x20   : > { %859 = vmatpush1.bf16.msra.mxu1 %v1174_v27  ;;  %499 = vmatprep.subr.bf16.mxu0 %v1175_v28  ;;  %v1242_v23 = vld [vmem:[%s1652_s1 + $0x130] ss:$8 sps:$4 sm:$0xff]   ;;  %v1247_v24 = vld [vmem:[%s1652_s1 + $0x144] ss:$8 sps:$4 sm:$0xff]   ;;  %v1245_v25 = vld [vmem:[%s1652_s1 + $0x140] ss:$8 sps:$4 sm:$0xff]  }
  0x21   : > { %860 = vmatprep.subr.bf16.mxu1 %v1177_v29  ;;  %v1250_v26 = vld [vmem:[%s1652_s1 + $0x154] ss:$8 sps:$4 sm:$0xff]   ;;  %v1248_v27 = vld [vmem:[%s1652_s1 + $0x150] ss:$8 sps:$4 sm:$0xff]   ;;  %v1253_v28 = vld [vmem:[%s1652_s1 + $0x164] ss:$8 sps:$4 sm:$0xff]  }
  0x22   : > { %v1251_v29 = vld [vmem:[%s1652_s1 + $0x160] ss:$8 sps:$4 sm:$0xff]   ;;  %v1280_v46 = vld [vmem:[%s1652_s1 + $0x1f4] ss:$8 sps:$4 sm:$0xff]   ;;  %v1278_v47 = vld [vmem:[%s1652_s1 + $0x1f0] ss:$8 sps:$4 sm:$0xff]  }
  0x23   : > { %500 = vmatpush1.bf16.msra.mxu0 %v1179_v30  ;;  %v1256_v30 = vld [vmem:[%s1652_s1 + $0x174] ss:$8 sps:$4 sm:$0xff]  }
  0x24   : > { %861 = vmatpush1.bf16.msra.mxu1 %v1180_v31  ;;  %501 = vmatprep.subr.bf16.mxu0 %v1181_v32  ;;  %v1254_v31 = vld [vmem:[%s1652_s1 + $0x170] ss:$8 sps:$4 sm:$0xff]   ;;  %v1259_v32 = vld [vmem:[%s1652_s1 + $0x184] ss:$8 sps:$4 sm:$0xff]  }
  0x25   : > { %862 = vmatprep.subr.bf16.mxu1 %v1183_v33  ;;  %v1257_v33 = vld [vmem:[%s1652_s1 + $0x180] ss:$8 sps:$4 sm:$0xff]  }
  0x27   : > { %502 = vmatpush1.bf16.msra.mxu0 %v1185_v34  ;;  %v1262_v34 = vld [vmem:[%s1652_s1 + $0x194] ss:$8 sps:$4 sm:$0xff]  }
  0x28   : > { %863 = vmatpush1.bf16.msra.mxu1 %v1186_v35  ;;  %503 = vmatprep.subr.bf16.mxu0 %v1187_v36  ;;  %v1260_v35 = vld [vmem:[%s1652_s1 + $0x190] ss:$8 sps:$4 sm:$0xff]   ;;  %v1265_v36 = vld [vmem:[%s1652_s1 + $0x1a4] ss:$8 sps:$4 sm:$0xff]  }
  0x29   : > { %864 = vmatprep.subr.bf16.mxu1 %v1189_v37  ;;  %v1263_v37 = vld [vmem:[%s1652_s1 + $0x1a0] ss:$8 sps:$4 sm:$0xff]  }
  0x2b   : > { %504 = vmatpush1.bf16.msra.mxu0 %v1191_v38  ;;  %v1268_v38 = vld [vmem:[%s1652_s1 + $0x1b4] ss:$8 sps:$4 sm:$0xff]  }
  0x2c   : > { %865 = vmatpush1.bf16.msra.mxu1 %v1192_v39  ;;  %505 = vmatprep.subr.bf16.mxu0 %v1193_v40  ;;  %v1266_v39 = vld [vmem:[%s1652_s1 + $0x1b0] ss:$8 sps:$4 sm:$0xff]   ;;  %v1271_v40 = vld [vmem:[%s1652_s1 + $0x1c4] ss:$8 sps:$4 sm:$0xff]  }
  0x2d   : > { %866 = vmatprep.subr.bf16.mxu1 %v1195_v41  ;;  %v1269_v41 = vld [vmem:[%s1652_s1 + $0x1c0] ss:$8 sps:$4 sm:$0xff]  }
  0x2f   : > { %506 = vmatpush1.bf16.msra.mxu0 %v1197_v42  ;;  %v1274_v42 = vld [vmem:[%s1652_s1 + $0x1d4] ss:$8 sps:$4 sm:$0xff]  }
  0x30   : > { %867 = vmatpush1.bf16.msra.mxu1 %v1198_v43  ;;  %507 = vmatprep.subr.bf16.mxu0 %v1199_v44  ;;  %v1272_v43 = vld [vmem:[%s1652_s1 + $0x1d0] ss:$8 sps:$4 sm:$0xff]   ;;  %v1277_v44 = vld [vmem:[%s1652_s1 + $0x1e4] ss:$8 sps:$4 sm:$0xff]  }
  0x31   : > { %868 = vmatprep.subr.bf16.mxu1 %v1201_v45  ;;  %v1275_v45 = vld [vmem:[%s1652_s1 + $0x1e0] ss:$8 sps:$4 sm:$0xff]  }
  0x33   : > { %508 = vmatpush1.bf16.msra.mxu0 %v1203_v49 }
  0x34   : > { %869 = vmatpush1.bf16.msra.mxu1 %v1204_v50  ;;  %509 = vmatprep.subr.bf16.mxu0 %v1205_v52 }
  0x35   : > { %870 = vmatprep.subr.bf16.mxu1 %v1207_v53 }
  0x37   : > { %510 = vmatpush1.bf16.msra.mxu0 %v1209_v56 }
  0x38   : > { %871 = vmatpush1.bf16.msra.mxu1 %v1210_v57  ;;  %511 = vmatprep.subr.bf16.mxu0 %v1211_v59  ;;  %v930_v59 = vlaneseq }
  0x39   : > { %872 = vmatprep.subr.bf16.mxu1 %v1213_v60 }
  0x3a   : > { %v931_v60 = vshrl.u32 %v930_v59, 7 }
  0x3b   : > { %512 = vmatpush1.bf16.msra.mxu0 %v1215_v62  ;;  %v928_v62 = vld [vmem:[%s1654_s3] sm:$0x3] }
  0x3c   : > { %873 = vmatpush1.bf16.msra.mxu1 %v1216_v0  ;;  %513 = vmatprep.subr.bf16.mxu0 %v1217_v1  ;;  %v932_v61 = vsub.s32 0, %v931_v60  ;;  %v936_v63 = vsub.s32 1, %v931_v60 }
  0x3d   : > { %874 = vmatprep.subr.bf16.mxu1 %v1219_v2 }
  0x3e   : > { %v933_v0 = vrot.slane %v928_v62, %v932_v61  ;;  %v937_v2 = vrot.slane %v928_v62, %v936_v63 }
  0x3f   : > { %514 = vmatpush1.bf16.msra.mxu0 %v1221_v3 }
  0x40   : > { %875 = vmatpush1.bf16.msra.mxu1 %v1222_v5  ;;  %515 = vmatprep.subr.bf16.mxu0 %v1223_v6 }
  0x41   : > { %876 = vmatprep.subr.bf16.mxu1 %v1225_v7 }
  0x43   : > { %516 = vmatpush1.bf16.msra.mxu0 %v1227_v10 }
  0x44   : > { %877 = vmatpush1.bf16.msra.mxu1 %v1228_v11  ;;  %887 = vmatprep.subr.bf16.mxu0 %v1235_v12 }
  0x46   : > { %518 = vmatmul.mubr.bf16.vlgmr.msra.gmra.mrb[0].mxu0 %v315_v13 }
  0x47   : > { %879 = vmatmul.mubr.bf16.vlgmr.msra.gmra.mrb[0].mxu1 %v1017_v14  ;;  %888 = vmatpush1.bf16.msra.mxu0 %v1233_v15 }
  0x48   : > { %919 = vmatprep.mubr.bf16.mxu0 %v1020_v18  ;;  %889 = vmatprep.subr.bf16.mxu0 %v1238_v16 }
  0x4b   : > { %890 = vmatpush1.bf16.msra.mxu0 %v1236_v19 }
  0x4c   : > { %891 = vmatprep.subr.bf16.mxu0 %v1241_v20 }
  0x4f   : > { %892 = vmatpush1.bf16.msra.mxu0 %v1239_v21 }
  0x50   : > { %893 = vmatprep.subr.bf16.mxu0 %v1244_v22 }
  0x53   : > { %894 = vmatpush1.bf16.msra.mxu0 %v1242_v23 }
  0x54   : > { %895 = vmatprep.subr.bf16.mxu0 %v1247_v24 }
  0x57   : > { %896 = vmatpush1.bf16.msra.mxu0 %v1245_v25 }
  0x58   : > { %897 = vmatprep.subr.bf16.mxu0 %v1250_v26 }
  0x5b   : > { %898 = vmatpush1.bf16.msra.mxu0 %v1248_v27 }
  0x5c   : > { %899 = vmatprep.subr.bf16.mxu0 %v1253_v28 }
  0x5f   : > { %900 = vmatpush1.bf16.msra.mxu0 %v1251_v29 }
  0x60   : > { %901 = vmatprep.subr.bf16.mxu0 %v1256_v30 }
  0x63   : > { %902 = vmatpush1.bf16.msra.mxu0 %v1254_v31 }
  0x64   : > { %903 = vmatprep.subr.bf16.mxu0 %v1259_v32 }
  0x67   : > { %904 = vmatpush1.bf16.msra.mxu0 %v1257_v33 }
  0x68   : > { %905 = vmatprep.subr.bf16.mxu0 %v1262_v34 }
  0x6b   : > { %906 = vmatpush1.bf16.msra.mxu0 %v1260_v35 }
  0x6c   : > { %907 = vmatprep.subr.bf16.mxu0 %v1265_v36 }
  0x6f   : > { %908 = vmatpush1.bf16.msra.mxu0 %v1263_v37 }
  0x70   : > { %909 = vmatprep.subr.bf16.mxu0 %v1268_v38 }
  0x73   : > { %910 = vmatpush1.bf16.msra.mxu0 %v1266_v39 }
  0x74   : > { %911 = vmatprep.subr.bf16.mxu0 %v1271_v40 }
  0x77   : > { %912 = vmatpush1.bf16.msra.mxu0 %v1269_v41 }
  0x78   : > { %913 = vmatprep.subr.bf16.mxu0 %v1274_v42 }
  0x7b   : > { %914 = vmatpush1.bf16.msra.mxu0 %v1272_v43 }
  0x7c   : > { %915 = vmatprep.subr.bf16.mxu0 %v1277_v44 }
  0x7f   : > { %916 = vmatpush1.bf16.msra.mxu0 %v1275_v45 }
  0x80   : > { %917 = vmatprep.subr.bf16.mxu0 %v1280_v46 }
  0x83   : > { %918 = vmatpush1.bf16.msra.mxu0 %v1278_v47 }
  0x86   : > { %920 = vmatmul.mubr.bf16.vlgmr.msra.gmra.mrb[4].mxu0 %v1019_v48 }
 0x119   : > { %v519_v49 = vpop.f32.mrb[0].mxu0 }
 0x11a   : > { %v880_v50 = vpop.f32.mrb[0].mxu1  ;;  %v521_v52 = vpop.f32.mrb[1].mxu0 }
 0x11b   : > { %v881_v51 = vadd.f32 %v880_v50, %v519_v49  ;;  %v882_v53 = vpop.f32.mrb[1].mxu1  ;;  %v523_v55 = vpop.f32.mrb[2].mxu0 }
 0x11c   : > { %v883_v54 = vadd.f32 %v882_v53, %v521_v52  ;;  %v884_v56 = vpop.f32.mrb[2].mxu1  ;;  %v524_v57 = vpop.f32.mrb[3].mxu0 }
 0x11d   : > { %v885_v58 = vpop.f32.mrb[3].mxu1 }
 0x159   : > { %v921_v1 = vpop.f32.mrb[4].mxu0 }
 0x15a   : > { %v922_v3 = vadd.f32 %v921_v1, %v881_v51  ;;  %v923_v4 = vpop.f32.mrb[5].mxu0 }
 0x15b   : > { %v924_v5 = vadd.f32 %v923_v4, %v883_v54  ;;  %v925_v6 = vpop.f32.mrb[6].mxu0 }
 0x15c   : > { %v940_v7 = vadd.f32 %v933_v0, %v922_v3  ;;  %v926_v8 = vpop.f32.mrb[7].mxu0 }
 0x15d   : > { %v941_v9 = vadd.f32 %v937_v2, %v924_v5 }
 0x15e   : > { %v942_v10 = vmax.f32 %v940_v7, 0.0 }
 0x15f   : > { %v943_v11 = vmax.f32 %v941_v9, 0.0 }
 0x161   : > { %v1124_v12 = vpack.c.bf16 %v943_v11, %v942_v10 }
 0x163   : > { %952 = vst [vmem:[%s197_s27] sm:$0xff] %v1124_v12 }
 0x164 PF: > { %s14_s15 = sadd.s32 1, %s1289_s15  }
 0x165   : > { %p11_p4 = scmp.ge.s32.totalorder %s14_s15, 4  }
 0x167   :  { %13 = sbr.rel (!%p11_p4) target bundleno = 1 (0x1), region = 66 }

// kernel: encoder_classifier_forward.13
= control target key start
LH: loop header
LB: loop body
LE: loop exit
PB: predicated region body
PF: predicated region fallthrough
CT: control target
= control target key end

     0   :  { %s617_s18 = smov 0   ;;  %s695_s0 = inlined_call_operand.vmem [shape: bf16[2,8,256], index: 0, kind: input, shape index: {}]   ;;  %s696_s1 = inlined_call_operand.vmem [shape: f32[1,256], index: 1, kind: input, shape index: {}]   ;;  %s697_s2 = inlined_call_operand.vmem [shape: f32[1,256], index: 2, kind: input, shape index: {}]   ;;  %s698_s3 = inlined_call_operand.vmem [shape: bf16[256,10], index: 3, kind: input, shape index: {}]   ;;  %s699_s4 = inlined_call_operand.vmem [shape: f32[1,10], index: 4, kind: input, shape index: {}]   ;;  %s700_s5 = inlined_call_operand.vmem [shape: f32[2,1,10], index: 5, kind: output, shape index: {}]  }
   0x1 LB: > { %s505_s19 = sadd.s32 4294967295, %s585_s18   ;;  %p509_p0 = scmp.ge.s32.totalorder %s585_s18, 1  ;;  %s585_s18 = sphi %s617_s18, %s15_s18  }
   0x2   : > { %p187_p1 = scmp.lt.s32.totalorder %s585_s18, 3 }
   0x4   : > { %p188_p2 = pnand %p509_p0, %p187_p1 }
   0x5   : > { %p213_p3 = scmp.lt.s32.totalorder (!%p188_p2), %s505_s19, 1  ;;  %v561_v18 = vld [vmem:[%s698_s3 + $0x40] sm:$0xff] (!%p188_p2)   ;;  %v563_v20 = vld [vmem:[%s698_s3 + $0x48] sm:$0xff] (!%p188_p2)   ;;  %v565_v29 = vld [vmem:[%s698_s3 + $0x50] sm:$0xff] (!%p188_p2)   ;;  %v259_v43 = vlaneseq (!%p188_p2)  ;;  %vm456_vm0 = vcmask (!%p188_p2), 73728  }
   0x6   : > { %191 = sbr.rel (%p188_p2) target bundleno = 569 (0x239), region = 40  ;;  %v562_v19 = vld [vmem:[%s698_s3] sm:$0xff] (!%p188_p2)   ;;  %531 = vmatprep.subr.bf16.mxu0 (!%p188_p2), %v561_v18  ;;  %v564_v21 = vld [vmem:[%s698_s3 + $0x8] sm:$0xff] (!%p188_p2)   ;;  %v566_v30 = vld [vmem:[%s698_s3 + $0x10] sm:$0xff] (!%p188_p2)  }
   0x7   : > { %532 = vmatpush3.bf16.msra.mxu0 (!%p188_p2), %v562_v19  ;;  %v567_v31 = vld [vmem:[%s698_s3 + $0x58] sm:$0xff] (!%p188_p2)   ;;  %v569_v33 = vld [vmem:[%s698_s3 + $0x60] sm:$0xff] (!%p188_p2)   ;;  %v571_v35 = vld [vmem:[%s698_s3 + $0x68] sm:$0xff] (!%p188_p2)   ;;  %v260_v45 = vshrl.u32 (!%p188_p2), %v259_v43, 7 }
   0x8   : > { %533 = vmatprep.subr.bf16.mxu0 (!%p188_p2), %v563_v20  ;;  %v568_v32 = vld [vmem:[%s698_s3 + $0x18] sm:$0xff] (!%p188_p2)   ;;  %v570_v34 = vld [vmem:[%s698_s3 + $0x20] sm:$0xff] (!%p188_p2)   ;;  %v572_v36 = vld [vmem:[%s698_s3 + $0x28] sm:$0xff] (!%p188_p2)  }
   0x9   : > { %v573_v37 = vld [vmem:[%s698_s3 + $0x70] sm:$0xff] (!%p188_p2)   ;;  %v575_v39 = vld [vmem:[%s698_s3 + $0x78] sm:$0xff] (!%p188_p2)   ;;  %v261_v46 = vsub.s32 (!%p188_p2), 0, %v260_v45  ;;  %v265_v47 = vsub.s32 (!%p188_p2), 1, %v260_v45  ;;  %v257_v48 = vld [vmem:[%s696_s1] sm:$0x3] (!%p188_p2) }
   0xa   : > { %v574_v38 = vld [vmem:[%s698_s3 + $0x30] sm:$0xff] (!%p188_p2)   ;;  %v576_v40 = vld [vmem:[%s698_s3 + $0x38] sm:$0xff] (!%p188_p2)   ;;  %v271_v49 = vld [vmem:[%s697_s2] sm:$0x3] (!%p188_p2) }
   0xb   : > { %534 = vmatpush3.bf16.msra.mxu0 (!%p188_p2), %v564_v21  ;;  %v262_v50 = vrot.slane (!%p188_p2), %v257_v48, %v261_v46  ;;  %v266_v51 = vrot.slane (!%p188_p2), %v257_v48, %v265_v47  ;;  %v276_v54 = vrot.slane (!%p188_p2), %v271_v49, %v261_v46  ;;  %v280_v55 = vrot.slane (!%p188_p2), %v271_v49, %v265_v47 }
   0xc   : > { %535 = vmatprep.subr.bf16.mxu0 (!%p188_p2), %v565_v29 }
   0xd   : > { %s702_s19 = smov (!%p213_p3, %s505_s19), 1 }
   0xe   : > { %s530_s20 = sshll.u32 %s702_s19, 3  ;;  %s220_s16 = scalar_lea.vmem %s700_s5, %s702_s19 }
   0xf   : > { %s217_s23 = scalar_lea.vmem %s695_s0, %s530_s20  ;;  %536 = vmatpush3.bf16.msra.mxu0 %v566_v30 }
  0x10   : > { %v222_v0 = vld [vmem:[%s217_s23] sm:$0xff]  ;;  %537 = vmatprep.subr.bf16.mxu0 %v567_v31 }
  0x11   : > { %v223_v1 = vunpack.c.l.bf16 %v222_v0  ;;  %v224_v2 = vunpack.c.h.bf16 %v222_v0  ;;  %v319_v0 = vld [vmem:[%s699_s4] sm:$0x1] }
  0x13   : > { %v225_v3 = vrot.slane %v223_v1, 4  ;;  %v231_v4 = vrot.slane %v224_v2, 4  ;;  %538 = vmatpush3.bf16.msra.mxu0 %v568_v32 }
  0x14   : > { %539 = vmatprep.subr.bf16.mxu0 %v569_v33 }
  0x15   : > { %v226_v5 = vadd.f32 %v225_v3, %v223_v1  ;;  %v232_v6 = vadd.f32 %v231_v4, %v224_v2 }
  0x17   : > { %v227_v7 = vrot.slane %v226_v5, 2  ;;  %v233_v8 = vrot.slane %v232_v6, 2  ;;  %540 = vmatpush3.bf16.msra.mxu0 %v570_v34 }
  0x18   : > { %541 = vmatprep.subr.bf16.mxu0 %v571_v35 }
  0x19   : > { %v228_v9 = vadd.f32 %v227_v7, %v226_v5  ;;  %v234_v10 = vadd.f32 %v233_v8, %v232_v6 }
  0x1b   : > { %v229_v11 = vrot.slane %v228_v9, 1  ;;  %v235_v12 = vrot.slane %v234_v10, 1  ;;  %542 = vmatpush3.bf16.msra.mxu0 %v572_v36 }
  0x1c   : > { %543 = vmatprep.subr.bf16.mxu0 %v573_v37 }
  0x1d   : > { %v230_v13 = vadd.f32 %v229_v11, %v228_v9  ;;  %v236_v14 = vadd.f32 %v235_v12, %v234_v10 }
  0x1f   : > { %v238_v15 = vmul.f32 0.125, %v230_v13  ;;  %v239_v16 = vmul.f32 0.125, %v236_v14  ;;  %544 = vmatpush3.bf16.msra.mxu0 %v574_v38 }
  0x20   : > { %545 = vmatprep.subr.bf16.mxu0 %v575_v39 }
  0x21   : > { %v240_v17 = vadd.f32 %v239_v16, %v238_v15 }
  0x23   : > { %241 = vadd.xlane.f32.xlu0 %v240_v17  ;;  %546 = vmatpush3.bf16.msra.mxu0 %v576_v40 }
  0xb0   : > { %v242_v22 = vpop.xlane.xlu0 %241 }
  0xb1   : > { %v244_v23 = vmul.f32 0.00390625, %v242_v22 }
  0xb3   : > { %v245_v24 = vsub.f32 %v238_v15, %v244_v23  ;;  %v246_v25 = vsub.f32 %v239_v16, %v244_v23 }
  0xb5   : > { %v247_v26 = vmul.f32 %v245_v24, %v245_v24  ;;  %v248_v27 = vmul.f32 %v246_v25, %v246_v25 }
  0xb7   : > { %v249_v28 = vadd.f32 %v248_v27, %v247_v26 }
  0xb9   : > { %250 = vadd.xlane.f32.xlu0 %v249_v28 }
 0x146   : > { %v251_v41 = vpop.xlane.xlu0 %250 }
 0x147   : > { %v252_v42 = vmul.f32 0.00390625, %v251_v41 }
 0x149   : > { %v253_v44 = vadd.f32 1e-05, %v252_v42 }
 0x14b   : > { %577 = vrsqrt.f32 %v253_v44 }
 0x155   : > { %v578_v52 = vpop.eup %577 }
 0x156   : > { %v256_v53 = vmul.f32 %v578_v52, %v246_v25  ;;  %v255_v56 = vmul.f32 %v578_v52, %v245_v24 }
 0x158   : > { %v270_v57 = vmul.f32 %v266_v51, %v256_v53  ;;  %v269_v58 = vmul.f32 %v262_v50, %v255_v56 }
 0x15a   : > { %v284_v59 = vadd.f32 %v280_v55, %v270_v57  ;;  %v283_v60 = vadd.f32 %v276_v54, %v269_v58 }
 0x15c   : > { %v286_v61 = vpack.c.bf16 %v284_v59, %v284_v59  ;;  %v285_v62 = vpack.c.bf16 %v283_v60, %v283_v60 }
 0x15e   : > { %448 = vmatprep.mubr.bf16.mxu0 %v286_v61 }
 0x15f   : > { %449 = vmatmul.mubr.bf16.vlgmr.msra.gmra.mrb[0].mxu0 %v285_v62 }
 0x232   : > { %v547_v63 = vpop.f32.mrb[0].mxu0 }
 0x233   : > { %v548_v1 = vpop.f32.mrb[1].mxu0 }
 0x234   : > { %v549_v2 = vadd.f32 %v548_v1, %v547_v63  ;;  %v550_v3 = vpop.f32.mrb[2].mxu0 }
 0x235   : > { %v551_v4 = vpop.f32.mrb[3].mxu0 }
 0x236   : > { %v451_v5 = vadd.f32 %v549_v2, %v319_v0 }
 0x238   : > { %457 = vst.msk [vmem:[%s220_s16] sm:$0x1] %vm456_vm0, %v451_v5 }
 0x239 PF: > { %s15_s18 = sadd.s32 1, %s585_s18  }
 0x23a   : > { %p12_p4 = scmp.ge.s32.totalorder %s15_s18, 4  }
 0x23c   :  { %14 = sbr.rel (!%p12_p4) target bundleno = 1 (0x1), region = 70 }

// kernel: encoder_classifier_forward.10
= control target key start
LH: loop header
LB: loop body
LE: loop exit
PB: predicated region body
PF: predicated region fallthrough
CT: control target
= control target key end

     0   :  { %s3455_s1 = inlined_call_operand.vmem [shape: bf16[256,1024], index: 1, kind: input, shape index: {}]   ;;  %s3456_s0 = inlined_call_operand.vmem [shape: bf16[16,256], index: 0, kind: input, shape index: {}]   ;;  %s3457_s3 = inlined_call_operand.vmem [shape: bf16[1024,256], index: 3, kind: input, shape index: {}]   ;;  %s3458_s2 = inlined_call_operand.vmem [shape: f32[1,1024], index: 2, kind: input, shape index: {}]   ;;  %s3459_s4 = inlined_call_operand.vmem [shape: f32[1,256], index: 4, kind: input, shape index: {}]   ;;  %s3460_s5 = inlined_call_operand.vmem [shape: f32[1,256], index: 5, kind: input, shape index: {}]   ;;  %s3461_s6 = inlined_call_operand.vmem [shape: f32[1,256], index: 6, kind: input, shape index: {}]   ;;  %s3462_s7 = inlined_call_operand.vmem [shape: bf16[16,256], index: 7, kind: output, shape index: {}]  }
   0x1   :  { %v28_v0 = vld [vmem:[%s3455_s1] sm:$0xff]  ;;  %v2643_v18 = vld [vmem:[%s3456_s0 + $0x8] sm:$0xff] }
   0x2   :  { %v32_v1 = vld [vmem:[%s3455_s1 + $0x20] sm:$0xff] }
   0x3   :  { %v36_v2 = vld [vmem:[%s3455_s1 + $0x40] sm:$0xff]  ;;  %v2090_v3 = vcombine.high %v28_v0, %v32_v1  ;;  %v2089_v4 = vcombine.low %v28_v0, %v32_v1 }
   0x4   :  { %v40_v5 = vld [vmem:[%s3455_s1 + $0x60] sm:$0xff] }
   0x5   :  { %v2098_v6 = vcombine.high %v36_v2, %v40_v5  ;;  %v44_v7 = vld [vmem:[%s3455_s1 + $0x80] sm:$0xff]  ;;  %848 = vmatprep.subr.bf16.mxu1 %v2090_v3  ;;  %v2097_v9 = vcombine.low %v36_v2, %v40_v5  ;;  %v29_v2 = vld [vmem:[%s3455_s1 + $0x8] sm:$0xff] }
   0x6   :  { %v48_v8 = vld [vmem:[%s3455_s1 + $0xa0] sm:$0xff]  ;;  %849 = vmatpush1.bf16.msra.mxu1 %v2089_v4  ;;  %v33_v3 = vld [vmem:[%s3455_s1 + $0x28] sm:$0xff] }
   0x7   :  { %850 = vmatprep.subr.bf16.mxu1 %v2098_v6  ;;  %v2106_v10 = vcombine.high %v44_v7, %v48_v8  ;;  %v52_v11 = vld [vmem:[%s3455_s1 + $0xc0] sm:$0xff]  ;;  %v2105_v13 = vcombine.low %v44_v7, %v48_v8  ;;  %v2092_v5 = vcombine.high %v29_v2, %v33_v3  ;;  %v37_v6 = vld [vmem:[%s3455_s1 + $0x48] sm:$0xff] }
   0x8   :  { %v56_v12 = vld [vmem:[%s3455_s1 + $0xe0] sm:$0xff]  ;;  %v41_v7 = vld [vmem:[%s3455_s1 + $0x68] sm:$0xff] }
   0x9   :  { %v2114_v14 = vcombine.high %v52_v11, %v56_v12  ;;  %v60_v15 = vld [vmem:[%s3455_s1 + $0x100] sm:$0xff]  ;;  %v2113_v19 = vcombine.low %v52_v11, %v56_v12  ;;  %v45_v11 = vld [vmem:[%s3455_s1 + $0x88] sm:$0xff] }
   0xa   :  { %851 = vmatpush1.bf16.msra.mxu1 %v2097_v9  ;;  %v64_v16 = vld [vmem:[%s3455_s1 + $0x120] sm:$0xff]  ;;  %v2091_v9 = vcombine.low %v29_v2, %v33_v3  ;;  %v49_v12 = vld [vmem:[%s3455_s1 + $0xa8] sm:$0xff] }
   0xb   :  { %852 = vmatprep.subr.bf16.mxu1 %v2106_v10  ;;  %v2638_v17 = vld [vmem:[%s3456_s0] sm:$0xff]  ;;  %v2122_v21 = vcombine.high %v60_v15, %v64_v16  ;;  %v2121_v24 = vcombine.low %v60_v15, %v64_v16  ;;  %v2100_v10 = vcombine.high %v37_v6, %v41_v7  ;;  %v53_v15 = vld [vmem:[%s3455_s1 + $0xc8] sm:$0xff] }
   0xc   :  { %v2647_v20 = vcombine.high %v2638_v17, %v2643_v18  ;;  %v68_v22 = vld [vmem:[%s3455_s1 + $0x140] sm:$0xff]  ;;  %v2730_v8 = vcombine.low %v2638_v17, %v2643_v18  ;;  %v57_v16 = vld [vmem:[%s3455_s1 + $0xe8] sm:$0xff]  ;;  %v2107_v17 = vcombine.low %v45_v11, %v49_v12 }
   0xd   :  { %v72_v23 = vld [vmem:[%s3455_s1 + $0x160] sm:$0xff]  ;;  %v2116_v18 = vcombine.high %v53_v15, %v57_v16 }
   0xe   :  { %853 = vmatpush1.bf16.msra.mxu1 %v2105_v13  ;;  %880 = vmatprep.mubr.bf16.mxu1 %v2647_v20  ;;  %v2130_v25 = vcombine.high %v68_v22, %v72_v23  ;;  %v76_v26 = vld [vmem:[%s3455_s1 + $0x180] sm:$0xff]  ;;  %v2129_v28 = vcombine.low %v68_v22, %v72_v23  ;;  %v2099_v13 = vcombine.low %v37_v6, %v41_v7 }
   0xf   :  { %854 = vmatprep.subr.bf16.mxu1 %v2114_v14  ;;  %v80_v27 = vld [vmem:[%s3455_s1 + $0x1a0] sm:$0xff]  ;;  %v2108_v14 = vcombine.high %v45_v11, %v49_v12  ;;  %v2115_v22 = vcombine.low %v53_v15, %v57_v16  ;;  %v149_v11 = vld [vmem:[%s3455_s1 + $0x3c8] sm:$0xff] }
  0x10   :  { %v2138_v29 = vcombine.high %v76_v26, %v80_v27  ;;  %v84_v30 = vld [vmem:[%s3455_s1 + $0x1c0] sm:$0xff]  ;;  %v2137_v32 = vcombine.low %v76_v26, %v80_v27  ;;  %v153_v12 = vld [vmem:[%s3455_s1 + $0x3e8] sm:$0xff] }
  0x11   :  { %v88_v31 = vld [vmem:[%s3455_s1 + $0x1e0] sm:$0xff] }
  0x12   :  { %855 = vmatpush1.bf16.msra.mxu1 %v2113_v19  ;;  %v2146_v33 = vcombine.high %v84_v30, %v88_v31  ;;  %v92_v34 = vld [vmem:[%s3455_s1 + $0x200] sm:$0xff]  ;;  %v2145_v36 = vcombine.low %v84_v30, %v88_v31  ;;  %v61_v19 = vld [vmem:[%s3455_s1 + $0x108] sm:$0xff] }
  0x13   :  { %856 = vmatprep.subr.bf16.mxu1 %v2122_v21  ;;  %v96_v35 = vld [vmem:[%s3455_s1 + $0x220] sm:$0xff]  ;;  %v65_v21 = vld [vmem:[%s3455_s1 + $0x128] sm:$0xff] }
  0x14   :  { %v2154_v37 = vcombine.high %v92_v34, %v96_v35  ;;  %v100_v38 = vld [vmem:[%s3455_s1 + $0x240] sm:$0xff]  ;;  %v2153_v40 = vcombine.low %v92_v34, %v96_v35  ;;  %v2124_v23 = vcombine.high %v61_v19, %v65_v21  ;;  %v2123_v26 = vcombine.low %v61_v19, %v65_v21 }
  0x15   :  { %v104_v39 = vld [vmem:[%s3455_s1 + $0x260] sm:$0xff]  ;;  %v2212_v21 = vcombine.high %v149_v11, %v153_v12 }
  0x16   :  { %857 = vmatpush1.bf16.msra.mxu1 %v2121_v24  ;;  %v2162_v41 = vcombine.high %v100_v38, %v104_v39  ;;  %v108_v42 = vld [vmem:[%s3455_s1 + $0x280] sm:$0xff]  ;;  %v2161_v44 = vcombine.low %v100_v38, %v104_v39  ;;  %v69_v24 = vld [vmem:[%s3455_s1 + $0x148] sm:$0xff] }
  0x17   :  { %858 = vmatprep.subr.bf16.mxu1 %v2130_v25  ;;  %v112_v43 = vld [vmem:[%s3455_s1 + $0x2a0] sm:$0xff]  ;;  %v73_v25 = vld [vmem:[%s3455_s1 + $0x168] sm:$0xff] }
  0x18   :  { %v2170_v45 = vcombine.high %v108_v42, %v112_v43  ;;  %v116_v46 = vld [vmem:[%s3455_s1 + $0x2c0] sm:$0xff]  ;;  %v2169_v48 = vcombine.low %v108_v42, %v112_v43  ;;  %v2132_v27 = vcombine.high %v69_v24, %v73_v25  ;;  %v2131_v30 = vcombine.low %v69_v24, %v73_v25  ;;  %v38_v24 = vld [vmem:[%s3455_s1 + $0x50] sm:$0xff] }
  0x19   :  { %v120_v47 = vld [vmem:[%s3455_s1 + $0x2e0] sm:$0xff]  ;;  %v42_v25 = vld [vmem:[%s3455_s1 + $0x70] sm:$0xff] }
  0x1a   :  { %859 = vmatpush1.bf16.msra.mxu1 %v2129_v28  ;;  %v2178_v49 = vcombine.high %v116_v46, %v120_v47  ;;  %v124_v50 = vld [vmem:[%s3455_s1 + $0x300] sm:$0xff]  ;;  %v2177_v52 = vcombine.low %v116_v46, %v120_v47  ;;  %v77_v28 = vld [vmem:[%s3455_s1 + $0x188] sm:$0xff] }
  0x1b   :  { %860 = vmatprep.subr.bf16.mxu1 %v2138_v29  ;;  %v128_v51 = vld [vmem:[%s3455_s1 + $0x320] sm:$0xff]  ;;  %v81_v29 = vld [vmem:[%s3455_s1 + $0x1a8] sm:$0xff] }
  0x1c   :  { %v2186_v53 = vcombine.high %v124_v50, %v128_v51  ;;  %v132_v54 = vld [vmem:[%s3455_s1 + $0x340] sm:$0xff]  ;;  %v2185_v56 = vcombine.low %v124_v50, %v128_v51  ;;  %v2140_v31 = vcombine.high %v77_v28, %v81_v29  ;;  %v2139_v34 = vcombine.low %v77_v28, %v81_v29  ;;  %v117_v50 = vld [vmem:[%s3455_s1 + $0x2c8] sm:$0xff] }
  0x1d   :  { %v136_v55 = vld [vmem:[%s3455_s1 + $0x360] sm:$0xff]  ;;  %v121_v51 = vld [vmem:[%s3455_s1 + $0x2e8] sm:$0xff] }
  0x1e   :  { %861 = vmatpush1.bf16.msra.mxu1 %v2137_v32  ;;  %v2194_v57 = vcombine.high %v132_v54, %v136_v55  ;;  %v140_v58 = vld [vmem:[%s3455_s1 + $0x380] sm:$0xff]  ;;  %v2193_v60 = vcombine.low %v132_v54, %v136_v55  ;;  %v85_v32 = vld [vmem:[%s3455_s1 + $0x1c8] sm:$0xff] }
  0x1f   :  { %862 = vmatprep.subr.bf16.mxu1 %v2146_v33  ;;  %v144_v59 = vld [vmem:[%s3455_s1 + $0x3a0] sm:$0xff]  ;;  %v89_v33 = vld [vmem:[%s3455_s1 + $0x1e8] sm:$0xff] }
  0x20   :  { %v2202_v61 = vcombine.high %v140_v58, %v144_v59  ;;  %v148_v62 = vld [vmem:[%s3455_s1 + $0x3c0] sm:$0xff]  ;;  %v2201_v0 = vcombine.low %v140_v58, %v144_v59  ;;  %v2148_v35 = vcombine.high %v85_v32, %v89_v33  ;;  %v2147_v38 = vcombine.low %v85_v32, %v89_v33 }
  0x21   :  { %v152_v63 = vld [vmem:[%s3455_s1 + $0x3e0] sm:$0xff]  ;;  %v2180_v59 = vcombine.high %v117_v50, %v121_v51  ;;  %v2102_v33 = vcombine.high %v38_v24, %v42_v25 }
  0x22   :  { %863 = vmatpush1.bf16.msra.mxu1 %v2145_v36  ;;  %v2210_v1 = vcombine.high %v148_v62, %v152_v63  ;;  %v2209_v4 = vcombine.low %v148_v62, %v152_v63  ;;  %v93_v36 = vld [vmem:[%s3455_s1 + $0x208] sm:$0xff] }
  0x23   :  { %864 = vmatprep.subr.bf16.mxu1 %v2154_v37  ;;  %v97_v37 = vld [vmem:[%s3455_s1 + $0x228] sm:$0xff] }
  0x24   :  { %v2156_v39 = vcombine.high %v93_v36, %v97_v37  ;;  %v2367_v42 = vld [vmem:[%s3457_s3 + $0x4] ss:$8 sps:$4 sm:$0xff]   ;;  %v2155_v43 = vcombine.low %v93_v36, %v97_v37  ;;  %v2369_v46 = vld [vmem:[%s3457_s3] ss:$8 sps:$4 sm:$0xff]   ;;  %v2101_v37 = vcombine.low %v38_v24, %v42_v25  ;;  %v126_v25 = vld [vmem:[%s3455_s1 + $0x310] sm:$0xff] }
  0x25   :  { %1824 = vmatprep.subr.bf16.mxu0 %v2367_v42  ;;  %v2373_v54 = vld [vmem:[%s3457_s3 + $0x24] ss:$8 sps:$4 sm:$0xff]   ;;  %v2375_v58 = vld [vmem:[%s3457_s3 + $0x20] ss:$8 sps:$4 sm:$0xff]   ;;  %v2400_v42 = vld [vmem:[%s3457_s3 + $0xb4] ss:$8 sps:$4 sm:$0xff]  }
  0x26   :  { %865 = vmatpush1.bf16.msra.mxu1 %v2153_v40  ;;  %v101_v40 = vld [vmem:[%s3455_s1 + $0x248] sm:$0xff]  ;;  %1825 = vmatpush1.bf16.msra.mxu0 %v2369_v46  ;;  %v2402_v46 = vld [vmem:[%s3457_s3 + $0xb0] ss:$8 sps:$4 sm:$0xff]  }
  0x27   :  { %866 = vmatprep.subr.bf16.mxu1 %v2162_v41  ;;  %v105_v41 = vld [vmem:[%s3455_s1 + $0x268] sm:$0xff] }
  0x28   :  { %v2164_v47 = vcombine.high %v101_v40, %v105_v41  ;;  %v133_v62 = vld [vmem:[%s3455_s1 + $0x348] sm:$0xff] }
  0x29   :  { %v137_v63 = vld [vmem:[%s3455_s1 + $0x368] sm:$0xff] }
  0x2a   :  { %867 = vmatpush1.bf16.msra.mxu1 %v2161_v44  ;;  %v109_v44 = vld [vmem:[%s3455_s1 + $0x288] sm:$0xff]  ;;  %v2196_v7 = vcombine.high %v133_v62, %v137_v63 }
  0x2b   :  { %868 = vmatprep.subr.bf16.mxu1 %v2170_v45  ;;  %v113_v45 = vld [vmem:[%s3455_s1 + $0x2a8] sm:$0xff] }
  0x2c   :  { %v2171_v55 = vcombine.low %v109_v44, %v113_v45  ;;  %v2379_v2 = vld [vmem:[%s3457_s3 + $0x44] ss:$8 sps:$4 sm:$0xff]   ;;  %v2381_v6 = vld [vmem:[%s3457_s3 + $0x40] ss:$8 sps:$4 sm:$0xff]  }
  0x2d   :  { %v2385_v15 = vld [vmem:[%s3457_s3 + $0x64] ss:$8 sps:$4 sm:$0xff]   ;;  %v2387_v19 = vld [vmem:[%s3457_s3 + $0x60] ss:$8 sps:$4 sm:$0xff]  }
  0x2e   :  { %869 = vmatpush1.bf16.msra.mxu1 %v2169_v48  ;;  %v2370_v48 = vld [vmem:[%s3457_s3 + $0x14] ss:$8 sps:$4 sm:$0xff]   ;;  %v2391_v28 = vld [vmem:[%s3457_s3 + $0x84] ss:$8 sps:$4 sm:$0xff]   ;;  %v2393_v32 = vld [vmem:[%s3457_s3 + $0x80] ss:$8 sps:$4 sm:$0xff]  }
  0x2f   :  { %870 = vmatprep.subr.bf16.mxu1 %v2178_v49  ;;  %v2163_v49 = vcombine.low %v101_v40, %v105_v41  ;;  %1826 = vmatprep.subr.bf16.mxu0 %v2370_v48  ;;  %v2397_v36 = vld [vmem:[%s3457_s3 + $0xa4] ss:$8 sps:$4 sm:$0xff]   ;;  %v58_v40 = vld [vmem:[%s3455_s1 + $0xf0] sm:$0xff]  ;;  %v2399_v41 = vld [vmem:[%s3457_s3 + $0xa0] ss:$8 sps:$4 sm:$0xff]  }
  0x30   :  { %v2403_v48 = vld [vmem:[%s3457_s3 + $0xc4] ss:$8 sps:$4 sm:$0xff]  }
  0x32   :  { %871 = vmatpush1.bf16.msra.mxu1 %v2177_v52  ;;  %v2372_v52 = vld [vmem:[%s3457_s3 + $0x10] ss:$8 sps:$4 sm:$0xff]  }
  0x33   :  { %872 = vmatprep.subr.bf16.mxu1 %v2186_v53  ;;  %v2172_v53 = vcombine.high %v109_v44, %v113_v45  ;;  %1827 = vmatpush1.bf16.msra.mxu0 %v2372_v52  ;;  %v62_v44 = vld [vmem:[%s3455_s1 + $0x110] sm:$0xff]  ;;  %v2405_v52 = vld [vmem:[%s3457_s3 + $0xc0] ss:$8 sps:$4 sm:$0xff]  }
  0x34   :  { %1828 = vmatprep.subr.bf16.mxu0 %v2373_v54  ;;  %v66_v45 = vld [vmem:[%s3455_s1 + $0x130] sm:$0xff] }
  0x35   :  { %v2406_v54 = vld [vmem:[%s3457_s3 + $0xd4] ss:$8 sps:$4 sm:$0xff]  }
  0x36   :  { %873 = vmatpush1.bf16.msra.mxu1 %v2185_v56  ;;  %v125_v56 = vld [vmem:[%s3455_s1 + $0x308] sm:$0xff] }
  0x37   :  { %874 = vmatprep.subr.bf16.mxu1 %v2194_v57  ;;  %v129_v57 = vld [vmem:[%s3455_s1 + $0x328] sm:$0xff]  ;;  %1829 = vmatpush1.bf16.msra.mxu0 %v2375_v58 }
  0x38   :  { %v2187_v3 = vcombine.low %v125_v56, %v129_v57 }
  0x3a   :  { %875 = vmatpush1.bf16.msra.mxu1 %v2193_v60  ;;  %v2376_v60 = vld [vmem:[%s3457_s3 + $0x34] ss:$8 sps:$4 sm:$0xff]  }
  0x3b   :  { %876 = vmatprep.subr.bf16.mxu1 %v2202_v61  ;;  %v2179_v61 = vcombine.low %v117_v50, %v121_v51  ;;  %1830 = vmatprep.subr.bf16.mxu0 %v2376_v60  ;;  %v70_v50 = vld [vmem:[%s3455_s1 + $0x150] sm:$0xff] }
  0x3c   :  { %v74_v51 = vld [vmem:[%s3455_s1 + $0x170] sm:$0xff] }
  0x3d   :  { %v2134_v58 = vcombine.high %v70_v50, %v74_v51  ;;  %v86_v60 = vld [vmem:[%s3455_s1 + $0x1d0] sm:$0xff] }
  0x3e   :  { %877 = vmatpush1.bf16.msra.mxu1 %v2201_v0  ;;  %v2378_v0 = vld [vmem:[%s3457_s3 + $0x30] ss:$8 sps:$4 sm:$0xff]  }
  0x3f   :  { %878 = vmatprep.subr.bf16.mxu1 %v2210_v1  ;;  %v2188_v1 = vcombine.high %v125_v56, %v129_v57  ;;  %1831 = vmatpush1.bf16.msra.mxu0 %v2378_v0  ;;  %v78_v56 = vld [vmem:[%s3455_s1 + $0x190] sm:$0xff]  ;;  %v2409_v0 = vld [vmem:[%s3457_s3 + $0xe4] ss:$8 sps:$4 sm:$0xff]  }
  0x40   :  { %1832 = vmatprep.subr.bf16.mxu0 %v2379_v2  ;;  %v82_v57 = vld [vmem:[%s3455_s1 + $0x1b0] sm:$0xff]  ;;  %v2411_v2 = vld [vmem:[%s3457_s3 + $0xe0] ss:$8 sps:$4 sm:$0xff]  }
  0x42   :  { %879 = vmatpush1.bf16.msra.mxu1 %v2209_v4  ;;  %v141_v4 = vld [vmem:[%s3455_s1 + $0x388] sm:$0xff] }
  0x43   :  { %891 = vmatprep.subr.bf16.mxu1 %v2092_v5  ;;  %v145_v5 = vld [vmem:[%s3455_s1 + $0x3a8] sm:$0xff]  ;;  %1833 = vmatpush1.bf16.msra.mxu0 %v2381_v6  ;;  %v2412_v6 = vld [vmem:[%s3457_s3 + $0xf4] ss:$8 sps:$4 sm:$0xff]  }
  0x44   :  { %v2203_v16 = vcombine.low %v141_v4, %v145_v5 }
  0x45   :  { %881 = vmatmul.mubr.bf16.vlgmr.msra.gmra.mrb[0].mxu1 %v2730_v8 }
  0x46   :  { %892 = vmatpush1.bf16.msra.mxu1 %v2091_v9  ;;  %923 = vmatprep.mubr.bf16.mxu1 %v2647_v20  ;;  %v2382_v9 = vld [vmem:[%s3457_s3 + $0x54] ss:$8 sps:$4 sm:$0xff]  }
  0x47   :  { %893 = vmatprep.subr.bf16.mxu1 %v2100_v10  ;;  %v2195_v10 = vcombine.low %v133_v62, %v137_v63  ;;  %1834 = vmatprep.subr.bf16.mxu0 %v2382_v9  ;;  %v2408_v62 = vld [vmem:[%s3457_s3 + $0xd0] ss:$8 sps:$4 sm:$0xff]   ;;  %v2142_v63 = vcombine.high %v78_v56, %v82_v57 }
  0x48   :  { %v2414_v9 = vld [vmem:[%s3457_s3 + $0xf0] ss:$8 sps:$4 sm:$0xff]  }
  0x4a   :  { %894 = vmatpush1.bf16.msra.mxu1 %v2099_v13  ;;  %v2384_v13 = vld [vmem:[%s3457_s3 + $0x50] ss:$8 sps:$4 sm:$0xff]  }
  0x4b   :  { %895 = vmatprep.subr.bf16.mxu1 %v2108_v14  ;;  %v2204_v14 = vcombine.high %v141_v4, %v145_v5  ;;  %1835 = vmatpush1.bf16.msra.mxu0 %v2384_v13  ;;  %v94_v4 = vld [vmem:[%s3455_s1 + $0x210] sm:$0xff]  ;;  %v2417_v13 = vld [vmem:[%s3457_s3 + $0x104] ss:$8 sps:$4 sm:$0xff]  }
  0x4c   :  { %1836 = vmatprep.subr.bf16.mxu0 %v2385_v15  ;;  %v98_v5 = vld [vmem:[%s3455_s1 + $0x230] sm:$0xff] }
  0x4e   :  { %896 = vmatpush1.bf16.msra.mxu1 %v2107_v17  ;;  %v30_v17 = vld [vmem:[%s3455_s1 + $0x10] sm:$0xff] }
  0x4f   :  { %897 = vmatprep.subr.bf16.mxu1 %v2116_v18  ;;  %v34_v18 = vld [vmem:[%s3455_s1 + $0x30] sm:$0xff]  ;;  %1837 = vmatpush1.bf16.msra.mxu0 %v2387_v19 }
  0x50   :  { %v2093_v29 = vcombine.low %v30_v17, %v34_v18 }
  0x52   :  { %898 = vmatpush1.bf16.msra.mxu1 %v2115_v22  ;;  %v2388_v22 = vld [vmem:[%s3457_s3 + $0x74] ss:$8 sps:$4 sm:$0xff]  }
  0x53   :  { %899 = vmatprep.subr.bf16.mxu1 %v2124_v23  ;;  %v2211_v23 = vcombine.low %v149_v11, %v153_v12  ;;  %1838 = vmatprep.subr.bf16.mxu0 %v2388_v22  ;;  %v102_v11 = vld [vmem:[%s3455_s1 + $0x250] sm:$0xff] }
  0x54   :  { %v106_v12 = vld [vmem:[%s3455_s1 + $0x270] sm:$0xff] }
  0x55   :  { %v2166_v15 = vcombine.high %v102_v11, %v106_v12  ;;  %v122_v22 = vld [vmem:[%s3455_s1 + $0x2f0] sm:$0xff] }
  0x56   :  { %900 = vmatpush1.bf16.msra.mxu1 %v2123_v26  ;;  %v2390_v26 = vld [vmem:[%s3457_s3 + $0x70] ss:$8 sps:$4 sm:$0xff]  }
  0x57   :  { %901 = vmatprep.subr.bf16.mxu1 %v2132_v27  ;;  %v2094_v27 = vcombine.high %v30_v17, %v34_v18  ;;  %1839 = vmatpush1.bf16.msra.mxu0 %v2390_v26  ;;  %v114_v17 = vld [vmem:[%s3455_s1 + $0x2b0] sm:$0xff]  ;;  %v2165_v18 = vcombine.low %v102_v11, %v106_v12 }
  0x58   :  { %1840 = vmatprep.subr.bf16.mxu0 %v2391_v28  ;;  %v130_v26 = vld [vmem:[%s3455_s1 + $0x330] sm:$0xff] }
  0x59   :  { %v2190_v28 = vcombine.high %v126_v25, %v130_v26 }
  0x5a   :  { %902 = vmatpush1.bf16.msra.mxu1 %v2131_v30  ;;  %v46_v30 = vld [vmem:[%s3455_s1 + $0x90] sm:$0xff] }
  0x5b   :  { %903 = vmatprep.subr.bf16.mxu1 %v2140_v31  ;;  %v50_v31 = vld [vmem:[%s3455_s1 + $0xb0] sm:$0xff]  ;;  %1841 = vmatpush1.bf16.msra.mxu0 %v2393_v32 }
  0x5e   :  { %904 = vmatpush1.bf16.msra.mxu1 %v2139_v34  ;;  %v2394_v34 = vld [vmem:[%s3457_s3 + $0x94] ss:$8 sps:$4 sm:$0xff]  }
  0x5f   :  { %905 = vmatprep.subr.bf16.mxu1 %v2148_v35  ;;  %v2396_v35 = vld [vmem:[%s3457_s3 + $0x90] ss:$8 sps:$4 sm:$0xff]   ;;  %1842 = vmatprep.subr.bf16.mxu0 %v2394_v34 }
  0x60   :  { %1843 = vmatpush1.bf16.msra.mxu0 %v2396_v35  ;;  %v146_v34 = vld [vmem:[%s3455_s1 + $0x3b0] sm:$0xff] }
  0x61   :  { %1844 = vmatprep.subr.bf16.mxu0 %v2397_v36 }
  0x62   :  { %906 = vmatpush1.bf16.msra.mxu1 %v2147_v38  ;;  %v2110_v38 = vcombine.high %v46_v30, %v50_v31 }
  0x63   :  { %907 = vmatprep.subr.bf16.mxu1 %v2156_v39  ;;  %v54_v39 = vld [vmem:[%s3455_s1 + $0xd0] sm:$0xff] }
  0x64   :  { %1845 = vmatpush1.bf16.msra.mxu0 %v2399_v41  ;;  %v31_v41 = vld [vmem:[%s3455_s1 + $0x18] sm:$0xff] }
  0x65   :  { %1846 = vmatprep.subr.bf16.mxu0 %v2400_v42  ;;  %v35_v42 = vld [vmem:[%s3455_s1 + $0x38] sm:$0xff] }
  0x66   :  { %908 = vmatpush1.bf16.msra.mxu1 %v2155_v43  ;;  %v2109_v43 = vcombine.low %v46_v30, %v50_v31  ;;  %v138_v30 = vld [vmem:[%s3455_s1 + $0x370] sm:$0xff]  ;;  %v2189_v31 = vcombine.low %v126_v25, %v130_v26  ;;  %v127_v26 = vld [vmem:[%s3455_s1 + $0x318] sm:$0xff] }
  0x67   :  { %909 = vmatprep.subr.bf16.mxu1 %v2164_v47  ;;  %v2118_v47 = vcombine.high %v54_v39, %v58_v40 }
  0x68   :  { %1847 = vmatpush1.bf16.msra.mxu0 %v2402_v46  ;;  %v43_v46 = vld [vmem:[%s3455_s1 + $0x78] sm:$0xff] }
  0x69   :  { %1848 = vmatprep.subr.bf16.mxu0 %v2403_v48 }
  0x6a   :  { %910 = vmatpush1.bf16.msra.mxu1 %v2163_v49  ;;  %v2117_v49 = vcombine.low %v54_v39, %v58_v40 }
  0x6b   :  { %911 = vmatprep.subr.bf16.mxu1 %v2172_v53  ;;  %v2126_v53 = vcombine.high %v62_v44, %v66_v45 }
  0x6c   :  { %1849 = vmatpush1.bf16.msra.mxu0 %v2405_v52 }
  0x6d   :  { %1850 = vmatprep.subr.bf16.mxu0 %v2406_v54  ;;  %v59_v54 = vld [vmem:[%s3455_s1 + $0xf8] sm:$0xff] }
  0x6e   :  { %912 = vmatpush1.bf16.msra.mxu1 %v2171_v55  ;;  %v2125_v55 = vcombine.low %v62_v44, %v66_v45  ;;  %v2096_v44 = vcombine.high %v31_v41, %v35_v42  ;;  %v39_v45 = vld [vmem:[%s3455_s1 + $0x58] sm:$0xff] }
  0x6f   :  { %913 = vmatprep.subr.bf16.mxu1 %v2180_v59  ;;  %v2133_v59 = vcombine.low %v70_v50, %v74_v51  ;;  %v2104_v48 = vcombine.high %v39_v45, %v43_v46  ;;  %v51_v50 = vld [vmem:[%s3455_s1 + $0xb8] sm:$0xff]  ;;  %v2103_v51 = vcombine.low %v39_v45, %v43_v46  ;;  %v3122_v46 = vld [vmem:[%s3458_s2] sm:$0xff] }
  0x70   :  { %1851 = vmatpush1.bf16.msra.mxu0 %v2408_v62 }
  0x71   :  { %1852 = vmatprep.subr.bf16.mxu0 %v2409_v0  ;;  %v79_v0 = vld [vmem:[%s3455_s1 + $0x198] sm:$0xff] }
  0x72   :  { %914 = vmatpush1.bf16.msra.mxu1 %v2179_v61  ;;  %v90_v61 = vld [vmem:[%s3455_s1 + $0x1f0] sm:$0xff] }
  0x73   :  { %915 = vmatprep.subr.bf16.mxu1 %v2188_v1  ;;  %v2141_v1 = vcombine.low %v78_v56, %v82_v57  ;;  %v63_v57 = vld [vmem:[%s3455_s1 + $0x118] sm:$0xff] }
  0x74   :  { %1853 = vmatpush1.bf16.msra.mxu0 %v2411_v2 }
  0x75   :  { %1854 = vmatprep.subr.bf16.mxu0 %v2412_v6 }
  0x76   :  { %916 = vmatpush1.bf16.msra.mxu1 %v2187_v3  ;;  %v2150_v3 = vcombine.high %v86_v60, %v90_v61 }
  0x77   :  { %917 = vmatprep.subr.bf16.mxu1 %v2196_v7  ;;  %v2149_v7 = vcombine.low %v86_v60, %v90_v61  ;;  %v71_v60 = vld [vmem:[%s3455_s1 + $0x158] sm:$0xff] }
  0x78   :  { %1855 = vmatpush1.bf16.msra.mxu0 %v2414_v9  ;;  %v75_v61 = vld [vmem:[%s3455_s1 + $0x178] sm:$0xff] }
  0x79   :  { %1867 = vmatprep.subr.bf16.mxu0 %v2417_v13  ;;  %v2135_v2 = vcombine.low %v71_v60, %v75_v61  ;;  %v95_v9 = vld [vmem:[%s3455_s1 + $0x218] sm:$0xff] }
  0x7a   :  { %918 = vmatpush1.bf16.msra.mxu1 %v2195_v10  ;;  %v2158_v10 = vcombine.high %v94_v4, %v98_v5  ;;  %v103_v13 = vld [vmem:[%s3455_s1 + $0x258] sm:$0xff] }
  0x7b   :  { %919 = vmatprep.subr.bf16.mxu1 %v2204_v14  ;;  %v2157_v14 = vcombine.low %v94_v4, %v98_v5  ;;  %v87_v4 = vld [vmem:[%s3455_s1 + $0x1d8] sm:$0xff] }
  0x7c   :  { %v91_v5 = vld [vmem:[%s3455_s1 + $0x1f8] sm:$0xff] }
  0x7d   :  { %v2151_v11 = vcombine.low %v87_v4, %v91_v5 }
  0x7e   :  { %920 = vmatpush1.bf16.msra.mxu1 %v2203_v16  ;;  %v110_v16 = vld [vmem:[%s3455_s1 + $0x290] sm:$0xff] }
  0x7f   :  { %921 = vmatprep.subr.bf16.mxu1 %v2212_v21  ;;  %v2174_v19 = vcombine.high %v110_v16, %v114_v17  ;;  %v118_v21 = vld [vmem:[%s3455_s1 + $0x2d0] sm:$0xff] }
  0x80   :  { %v2182_v24 = vcombine.high %v118_v21, %v122_v22 }
  0x82   :  { %922 = vmatpush1.bf16.msra.mxu1 %v2211_v23  ;;  %v2173_v23 = vcombine.low %v110_v16, %v114_v17  ;;  %v111_v17 = vld [vmem:[%s3455_s1 + $0x298] sm:$0xff] }
  0x83   :  { %934 = vmatprep.subr.bf16.mxu1 %v2094_v27  ;;  %v2181_v27 = vcombine.low %v118_v21, %v122_v22  ;;  %v119_v22 = vld [vmem:[%s3455_s1 + $0x2d8] sm:$0xff] }
  0x85   :  { %924 = vmatmul.mubr.bf16.vlgmr.msra.gmra.mrb[4].mxu1 %v2730_v8 }
  0x86   :  { %935 = vmatpush1.bf16.msra.mxu1 %v2093_v29  ;;  %966 = vmatprep.mubr.bf16.mxu1 %v2647_v20  ;;  %v134_v29 = vld [vmem:[%s3455_s1 + $0x350] sm:$0xff] }
  0x87   :  { %936 = vmatprep.subr.bf16.mxu1 %v2102_v33  ;;  %v2198_v32 = vcombine.high %v134_v29, %v138_v30  ;;  %v142_v33 = vld [vmem:[%s3455_s1 + $0x390] sm:$0xff]  ;;  %v2197_v35 = vcombine.low %v134_v29, %v138_v30  ;;  %v135_v30 = vld [vmem:[%s3455_s1 + $0x358] sm:$0xff] }
  0x88   :  { %v2206_v36 = vcombine.high %v142_v33, %v146_v34  ;;  %v2205_v39 = vcombine.low %v142_v33, %v146_v34  ;;  %v143_v34 = vld [vmem:[%s3455_s1 + $0x398] sm:$0xff] }
  0x8a   :  { %937 = vmatpush1.bf16.msra.mxu1 %v2101_v37  ;;  %v150_v37 = vld [vmem:[%s3455_s1 + $0x3d0] sm:$0xff] }
  0x8b   :  { %938 = vmatprep.subr.bf16.mxu1 %v2110_v38  ;;  %v154_v38 = vld [vmem:[%s3455_s1 + $0x3f0] sm:$0xff] }
  0x8c   :  { %v2214_v40 = vcombine.high %v150_v37, %v154_v38 }
  0x8e   :  { %939 = vmatpush1.bf16.msra.mxu1 %v2109_v43  ;;  %v2213_v43 = vcombine.low %v150_v37, %v154_v38  ;;  %v151_v38 = vld [vmem:[%s3455_s1 + $0x3d8] sm:$0xff] }
  0x8f   :  { %940 = vmatprep.subr.bf16.mxu1 %v2118_v47  ;;  %v2095_v47 = vcombine.low %v31_v41, %v35_v42 }
  0x92   :  { %941 = vmatpush1.bf16.msra.mxu1 %v2117_v49  ;;  %v47_v49 = vld [vmem:[%s3455_s1 + $0x98] sm:$0xff] }
  0x93   :  { %942 = vmatprep.subr.bf16.mxu1 %v2126_v53  ;;  %v2112_v52 = vcombine.high %v47_v49, %v51_v50  ;;  %v55_v53 = vld [vmem:[%s3455_s1 + $0xd8] sm:$0xff] }
  0x94   :  { %v2120_v56 = vcombine.high %v55_v53, %v59_v54 }
  0x96   :  { %943 = vmatpush1.bf16.msra.mxu1 %v2125_v55  ;;  %v2111_v55 = vcombine.low %v47_v49, %v51_v50 }
  0x97   :  { %944 = vmatprep.subr.bf16.mxu1 %v2134_v58  ;;  %v2119_v58 = vcombine.low %v55_v53, %v59_v54 }
  0x9a   :  { %945 = vmatpush1.bf16.msra.mxu1 %v2133_v59 }
  0x9b   :  { %946 = vmatprep.subr.bf16.mxu1 %v2142_v63  ;;  %v2136_v63 = vcombine.high %v71_v60, %v75_v61 }
  0x9e   :  { %947 = vmatpush1.bf16.msra.mxu1 %v2141_v1  ;;  %v83_v1 = vld [vmem:[%s3455_s1 + $0x1b8] sm:$0xff] }
  0x9f   :  { %948 = vmatprep.subr.bf16.mxu1 %v2150_v3  ;;  %v2144_v3 = vcombine.high %v79_v0, %v83_v1  ;;  %v2143_v6 = vcombine.low %v79_v0, %v83_v1  ;;  %v2418_v0 = vld [vmem:[%s3457_s3 + $0x110] ss:$8 sps:$4 sm:$0xff]   ;;  %v2423_v1 = vld [vmem:[%s3457_s3 + $0x124] ss:$8 sps:$4 sm:$0xff]  }
  0xa2   :  { %949 = vmatpush1.bf16.msra.mxu1 %v2149_v7  ;;  %v2152_v7 = vcombine.high %v87_v4, %v91_v5  ;;  %v2424_v4 = vld [vmem:[%s3457_s3 + $0x130] ss:$8 sps:$4 sm:$0xff]   ;;  %v2429_v5 = vld [vmem:[%s3457_s3 + $0x144] ss:$8 sps:$4 sm:$0xff]  }
  0xa3   :  { %950 = vmatprep.subr.bf16.mxu1 %v2158_v10  ;;  %v99_v10 = vld [vmem:[%s3455_s1 + $0x238] sm:$0xff] }
  0xa4   :  { %v2160_v12 = vcombine.high %v95_v9, %v99_v10 }
  0xa6   :  { %951 = vmatpush1.bf16.msra.mxu1 %v2157_v14  ;;  %v107_v14 = vld [vmem:[%s3455_s1 + $0x278] sm:$0xff] }
  0xa7   :  { %952 = vmatprep.subr.bf16.mxu1 %v2166_v15  ;;  %v2159_v15 = vcombine.low %v95_v9, %v99_v10  ;;  %v2168_v16 = vcombine.high %v103_v13, %v107_v14  ;;  %v2430_v9 = vld [vmem:[%s3457_s3 + $0x150] ss:$8 sps:$4 sm:$0xff]   ;;  %v2435_v10 = vld [vmem:[%s3457_s3 + $0x164] ss:$8 sps:$4 sm:$0xff]  }
  0xaa   :  { %953 = vmatpush1.bf16.msra.mxu1 %v2165_v18  ;;  %v115_v18 = vld [vmem:[%s3455_s1 + $0x2b8] sm:$0xff] }
  0xab   :  { %954 = vmatprep.subr.bf16.mxu1 %v2174_v19  ;;  %v2167_v19 = vcombine.low %v103_v13, %v107_v14  ;;  %v2176_v21 = vcombine.high %v111_v17, %v115_v18  ;;  %v2436_v13 = vld [vmem:[%s3457_s3 + $0x170] ss:$8 sps:$4 sm:$0xff]   ;;  %v2441_v14 = vld [vmem:[%s3457_s3 + $0x184] ss:$8 sps:$4 sm:$0xff]  }
  0xae   :  { %955 = vmatpush1.bf16.msra.mxu1 %v2173_v23  ;;  %v123_v23 = vld [vmem:[%s3455_s1 + $0x2f8] sm:$0xff] }
  0xaf   :  { %956 = vmatprep.subr.bf16.mxu1 %v2182_v24  ;;  %v2175_v24 = vcombine.low %v111_v17, %v115_v18  ;;  %v2184_v25 = vcombine.high %v119_v22, %v123_v23  ;;  %v2442_v17 = vld [vmem:[%s3457_s3 + $0x190] ss:$8 sps:$4 sm:$0xff]   ;;  %v2447_v18 = vld [vmem:[%s3457_s3 + $0x1a4] ss:$8 sps:$4 sm:$0xff]  }
  0xb2   :  { %957 = vmatpush1.bf16.msra.mxu1 %v2181_v27  ;;  %v131_v27 = vld [vmem:[%s3455_s1 + $0x338] sm:$0xff] }
  0xb3   :  { %958 = vmatprep.subr.bf16.mxu1 %v2190_v28  ;;  %v2183_v28 = vcombine.low %v119_v22, %v123_v23  ;;  %v2192_v29 = vcombine.high %v127_v26, %v131_v27  ;;  %v2448_v22 = vld [vmem:[%s3457_s3 + $0x1b0] ss:$8 sps:$4 sm:$0xff]   ;;  %v2453_v23 = vld [vmem:[%s3457_s3 + $0x1c4] ss:$8 sps:$4 sm:$0xff]  }
  0xb6   :  { %959 = vmatpush1.bf16.msra.mxu1 %v2189_v31  ;;  %v139_v31 = vld [vmem:[%s3455_s1 + $0x378] sm:$0xff] }
  0xb7   :  { %960 = vmatprep.subr.bf16.mxu1 %v2198_v32  ;;  %v2191_v32 = vcombine.low %v127_v26, %v131_v27  ;;  %v2200_v33 = vcombine.high %v135_v30, %v139_v31 }
  0xba   :  { %961 = vmatpush1.bf16.msra.mxu1 %v2197_v35  ;;  %v147_v35 = vld [vmem:[%s3455_s1 + $0x3b8] sm:$0xff] }
  0xbb   :  { %962 = vmatprep.subr.bf16.mxu1 %v2206_v36  ;;  %v2199_v36 = vcombine.low %v135_v30, %v139_v31  ;;  %v2208_v37 = vcombine.high %v143_v34, %v147_v35  ;;  %v2459_v30 = vld [vmem:[%s3457_s3 + $0x1e4] ss:$8 sps:$4 sm:$0xff]  }
  0xbe   :  { %963 = vmatpush1.bf16.msra.mxu1 %v2205_v39  ;;  %v155_v39 = vld [vmem:[%s3455_s1 + $0x3f8] sm:$0xff] }
  0xbf   :  { %964 = vmatprep.subr.bf16.mxu1 %v2214_v40  ;;  %v2207_v40 = vcombine.low %v143_v34, %v147_v35  ;;  %v2216_v41 = vcombine.high %v151_v38, %v155_v39  ;;  %v2215_v42 = vcombine.low %v151_v38, %v155_v39 }
  0xc2   :  { %965 = vmatpush1.bf16.msra.mxu1 %v2213_v43  ;;  %v158_v43 = vlaneseq }
  0xc3   :  { %977 = vmatprep.subr.bf16.mxu1 %v2096_v44 }
  0xc4   :  { %v3114_v44 = vshrl.u32 %v158_v43, 7  ;;  %v2460_v43 = vld [vmem:[%s3457_s3 + $0x1f0] ss:$8 sps:$4 sm:$0xff]  }
  0xc5   :  { %967 = vmatmul.mubr.bf16.vlgmr.msra.gmra.mrb[8].mxu1 %v2730_v8 }
  0xc6   :  { %978 = vmatpush1.bf16.msra.mxu1 %v2095_v47  ;;  %1009 = vmatprep.mubr.bf16.mxu1 %v2647_v20  ;;  %v67_v20 = vld [vmem:[%s3455_s1 + $0x138] sm:$0xff]  ;;  %v3117_v45 = vsub.s32 0, %v3114_v44  ;;  %v3125_v47 = vsub.s32 1, %v3114_v44  ;;  %v168_v26 = vsub.s32 2, %v3114_v44  ;;  %v172_v27 = vsub.s32 3, %v3114_v44 }
  0xc7   :  { %979 = vmatprep.subr.bf16.mxu1 %v2104_v48  ;;  %v2128_v59 = vcombine.high %v63_v57, %v67_v20  ;;  %v2127_v62 = vcombine.low %v63_v57, %v67_v20 }
  0xc8   :  { %v161_v48 = vrot.slane %v3122_v46, %v3117_v45  ;;  %v173_v31 = vrot.slane %v3122_v46, %v172_v27 }
  0xca   :  { %980 = vmatpush1.bf16.msra.mxu1 %v2103_v51 }
  0xcb   :  { %981 = vmatprep.subr.bf16.mxu1 %v2112_v52 }
  0xce   :  { %982 = vmatpush1.bf16.msra.mxu1 %v2111_v55 }
  0xcf   :  { %983 = vmatprep.subr.bf16.mxu1 %v2120_v56 }
  0xd2   :  { %984 = vmatpush1.bf16.msra.mxu1 %v2119_v58 }
  0xd3   :  { %985 = vmatprep.subr.bf16.mxu1 %v2128_v59 }
  0xd6   :  { %986 = vmatpush1.bf16.msra.mxu1 %v2127_v62  ;;  %v2415_v62 = vld [vmem:[%s3457_s3 + $0x100] ss:$8 sps:$4 sm:$0xff]  }
  0xd7   :  { %987 = vmatprep.subr.bf16.mxu1 %v2136_v63  ;;  %v2420_v63 = vld [vmem:[%s3457_s3 + $0x114] ss:$8 sps:$4 sm:$0xff]  }
  0xda   :  { %988 = vmatpush1.bf16.msra.mxu1 %v2135_v2  ;;  %v2421_v2 = vld [vmem:[%s3457_s3 + $0x120] ss:$8 sps:$4 sm:$0xff]  }
  0xdb   :  { %989 = vmatprep.subr.bf16.mxu1 %v2144_v3  ;;  %v2426_v3 = vld [vmem:[%s3457_s3 + $0x134] ss:$8 sps:$4 sm:$0xff]  }
  0xde   :  { %990 = vmatpush1.bf16.msra.mxu1 %v2143_v6  ;;  %v2427_v6 = vld [vmem:[%s3457_s3 + $0x140] ss:$8 sps:$4 sm:$0xff]  }
  0xdf   :  { %991 = vmatprep.subr.bf16.mxu1 %v2152_v7  ;;  %v2432_v7 = vld [vmem:[%s3457_s3 + $0x154] ss:$8 sps:$4 sm:$0xff]  }
  0xe2   :  { %992 = vmatpush1.bf16.msra.mxu1 %v2151_v11  ;;  %v2433_v11 = vld [vmem:[%s3457_s3 + $0x160] ss:$8 sps:$4 sm:$0xff]  }
  0xe3   :  { %993 = vmatprep.subr.bf16.mxu1 %v2160_v12  ;;  %v2438_v12 = vld [vmem:[%s3457_s3 + $0x174] ss:$8 sps:$4 sm:$0xff]  }
  0xe6   :  { %994 = vmatpush1.bf16.msra.mxu1 %v2159_v15  ;;  %v2439_v15 = vld [vmem:[%s3457_s3 + $0x180] ss:$8 sps:$4 sm:$0xff]  }
  0xe7   :  { %995 = vmatprep.subr.bf16.mxu1 %v2168_v16  ;;  %v2444_v16 = vld [vmem:[%s3457_s3 + $0x194] ss:$8 sps:$4 sm:$0xff]  }
  0xea   :  { %996 = vmatpush1.bf16.msra.mxu1 %v2167_v19  ;;  %v2445_v19 = vld [vmem:[%s3457_s3 + $0x1a0] ss:$8 sps:$4 sm:$0xff]  }
  0xeb   :  { %997 = vmatprep.subr.bf16.mxu1 %v2176_v21  ;;  %v2450_v21 = vld [vmem:[%s3457_s3 + $0x1b4] ss:$8 sps:$4 sm:$0xff]  }
  0xee   :  { %998 = vmatpush1.bf16.msra.mxu1 %v2175_v24  ;;  %v2451_v24 = vld [vmem:[%s3457_s3 + $0x1c0] ss:$8 sps:$4 sm:$0xff]  }
  0xef   :  { %999 = vmatprep.subr.bf16.mxu1 %v2184_v25  ;;  %v2456_v25 = vld [vmem:[%s3457_s3 + $0x1d4] ss:$8 sps:$4 sm:$0xff]  }
  0xf2   :  { %1000 = vmatpush1.bf16.msra.mxu1 %v2183_v28  ;;  %v2454_v28 = vld [vmem:[%s3457_s3 + $0x1d0] ss:$8 sps:$4 sm:$0xff]  }
  0xf3   :  { %1001 = vmatprep.subr.bf16.mxu1 %v2192_v29  ;;  %v169_v29 = vrot.slane %v3122_v46, %v168_v26  ;;  %v2510_v26 = vld [vmem:[%s3457_s3 + $0x2f4] ss:$8 sps:$4 sm:$0xff]  }
  0xf6   :  { %1002 = vmatpush1.bf16.msra.mxu1 %v2191_v32 }
  0xf7   :  { %1003 = vmatprep.subr.bf16.mxu1 %v2200_v33  ;;  %v2457_v33 = vld [vmem:[%s3457_s3 + $0x1e0] ss:$8 sps:$4 sm:$0xff]  }
  0xfa   :  { %1004 = vmatpush1.bf16.msra.mxu1 %v2199_v36  ;;  %v2462_v36 = vld [vmem:[%s3457_s3 + $0x1f4] ss:$8 sps:$4 sm:$0xff]  }
  0xfb   :  { %1005 = vmatprep.subr.bf16.mxu1 %v2208_v37 }
  0xfe   :  { %1006 = vmatpush1.bf16.msra.mxu1 %v2207_v40 }
  0xff   :  { %1007 = vmatprep.subr.bf16.mxu1 %v2216_v41 }
 0x102   :  { %1008 = vmatpush1.bf16.msra.mxu1 %v2215_v42 }
 0x105   :  { %1010 = vmatmul.mubr.bf16.vlgmr.msra.gmra.mrb[12].mxu1 %v2730_v8  ;;  %v165_v8 = vrot.slane %v3122_v46, %v3125_v47 }
 0x118   :  { %v882_v49 = vpop.f32.mrb[0].mxu1 }
 0x119   :  { %v883_v50 = vadd.f32 %v882_v49, %v161_v48  ;;  %v884_v51 = vpop.f32.mrb[1].mxu1 }
 0x11a   :  { %v885_v52 = vadd.f32 %v884_v51, %v165_v8  ;;  %v886_v53 = vpop.f32.mrb[2].mxu1 }
 0x11b   :  { %v1020_v54 = vmax.f32 %v883_v50, 0.0  ;;  %v887_v55 = vadd.f32 %v886_v53, %v161_v48  ;;  %v888_v56 = vpop.f32.mrb[3].mxu1  ;;  %v2463_v53 = vld [vmem:[%s3457_s3 + $0x200] ss:$8 sps:$4 sm:$0xff]  }
 0x11c   :  { %v889_v57 = vadd.f32 %v888_v56, %v165_v8  ;;  %v1021_v58 = vmax.f32 %v885_v52, 0.0  ;;  %v2465_v8 = vld [vmem:[%s3457_s3 + $0x204] ss:$8 sps:$4 sm:$0xff]  }
 0x11d   :  { %v1028_v20 = vmax.f32 %v887_v55, 0.0  ;;  %v2466_v55 = vld [vmem:[%s3457_s3 + $0x210] ss:$8 sps:$4 sm:$0xff]   ;;  %v2471_v56 = vld [vmem:[%s3457_s3 + $0x224] ss:$8 sps:$4 sm:$0xff]  }
 0x11e   :  { %v1029_v59 = vmax.f32 %v889_v57, 0.0  ;;  %v2469_v57 = vld [vmem:[%s3457_s3 + $0x220] ss:$8 sps:$4 sm:$0xff]  }
 0x11f   :  { %v1036_v60 = vpack.c.bf16 %v1028_v20, %v1020_v54  ;;  %v2468_v54 = vld [vmem:[%s3457_s3 + $0x214] ss:$8 sps:$4 sm:$0xff]  }
 0x120   :  { %v1037_v61 = vpack.c.bf16 %v1029_v59, %v1021_v58  ;;  %v2474_v20 = vld [vmem:[%s3457_s3 + $0x234] ss:$8 sps:$4 sm:$0xff]   ;;  %v2472_v58 = vld [vmem:[%s3457_s3 + $0x230] ss:$8 sps:$4 sm:$0xff]   ;;  %v2477_v59 = vld [vmem:[%s3457_s3 + $0x244] ss:$8 sps:$4 sm:$0xff]  }
 0x122   :  { %1856 = vmatprep.mubr.bf16.mxu0 %v1037_v61  ;;  %v2480_v61 = vld [vmem:[%s3457_s3 + $0x254] ss:$8 sps:$4 sm:$0xff]  }
 0x123   :  { %1857 = vmatmul.mubr.bf16.vlgmr.msra.gmra.mrb[0].mxu0 %v1036_v60  ;;  %v2475_v60 = vld [vmem:[%s3457_s3 + $0x240] ss:$8 sps:$4 sm:$0xff]  }
 0x124   :  { %1868 = vmatpush1.bf16.msra.mxu0 %v2415_v62  ;;  %v2478_v62 = vld [vmem:[%s3457_s3 + $0x250] ss:$8 sps:$4 sm:$0xff]  }
 0x125   :  { %1869 = vmatprep.subr.bf16.mxu0 %v2420_v63  ;;  %v2483_v63 = vld [vmem:[%s3457_s3 + $0x264] ss:$8 sps:$4 sm:$0xff]  }
 0x128   :  { %1870 = vmatpush1.bf16.msra.mxu0 %v2418_v0  ;;  %v2481_v0 = vld [vmem:[%s3457_s3 + $0x260] ss:$8 sps:$4 sm:$0xff]  }
 0x129   :  { %1871 = vmatprep.subr.bf16.mxu0 %v2423_v1  ;;  %v2486_v1 = vld [vmem:[%s3457_s3 + $0x274] ss:$8 sps:$4 sm:$0xff]  }
 0x12c   :  { %1872 = vmatpush1.bf16.msra.mxu0 %v2421_v2  ;;  %v2484_v2 = vld [vmem:[%s3457_s3 + $0x270] ss:$8 sps:$4 sm:$0xff]  }
 0x12d   :  { %1873 = vmatprep.subr.bf16.mxu0 %v2426_v3  ;;  %v2489_v3 = vld [vmem:[%s3457_s3 + $0x284] ss:$8 sps:$4 sm:$0xff]  }
 0x130   :  { %1874 = vmatpush1.bf16.msra.mxu0 %v2424_v4  ;;  %v2487_v4 = vld [vmem:[%s3457_s3 + $0x280] ss:$8 sps:$4 sm:$0xff]  }
 0x131   :  { %1875 = vmatprep.subr.bf16.mxu0 %v2429_v5  ;;  %v2492_v5 = vld [vmem:[%s3457_s3 + $0x294] ss:$8 sps:$4 sm:$0xff]  }
 0x134   :  { %1876 = vmatpush1.bf16.msra.mxu0 %v2427_v6  ;;  %v2490_v6 = vld [vmem:[%s3457_s3 + $0x290] ss:$8 sps:$4 sm:$0xff]  }
 0x135   :  { %1877 = vmatprep.subr.bf16.mxu0 %v2432_v7  ;;  %v2495_v7 = vld [vmem:[%s3457_s3 + $0x2a4] ss:$8 sps:$4 sm:$0xff]  }
 0x138   :  { %1878 = vmatpush1.bf16.msra.mxu0 %v2430_v9  ;;  %v2493_v9 = vld [vmem:[%s3457_s3 + $0x2a0] ss:$8 sps:$4 sm:$0xff]  }
 0x139   :  { %1879 = vmatprep.subr.bf16.mxu0 %v2435_v10  ;;  %v2498_v10 = vld [vmem:[%s3457_s3 + $0x2b4] ss:$8 sps:$4 sm:$0xff]  }
 0x13c   :  { %1880 = vmatpush1.bf16.msra.mxu0 %v2433_v11  ;;  %v2496_v11 = vld [vmem:[%s3457_s3 + $0x2b0] ss:$8 sps:$4 sm:$0xff]  }
 0x13d   :  { %1881 = vmatprep.subr.bf16.mxu0 %v2438_v12  ;;  %v2501_v12 = vld [vmem:[%s3457_s3 + $0x2c4] ss:$8 sps:$4 sm:$0xff]  }
 0x140   :  { %1882 = vmatpush1.bf16.msra.mxu0 %v2436_v13  ;;  %v2499_v13 = vld [vmem:[%s3457_s3 + $0x2c0] ss:$8 sps:$4 sm:$0xff]  }
 0x141   :  { %1883 = vmatprep.subr.bf16.mxu0 %v2441_v14  ;;  %v2504_v14 = vld [vmem:[%s3457_s3 + $0x2d4] ss:$8 sps:$4 sm:$0xff]  }
 0x144   :  { %1884 = vmatpush1.bf16.msra.mxu0 %v2439_v15  ;;  %v176_v15 = vsub.s32 4, %v3114_v44 }
 0x145   :  { %1885 = vmatprep.subr.bf16.mxu0 %v2444_v16  ;;  %v180_v16 = vsub.s32 5, %v3114_v44 }
 0x148   :  { %1886 = vmatpush1.bf16.msra.mxu0 %v2442_v17  ;;  %v2502_v17 = vld [vmem:[%s3457_s3 + $0x2d0] ss:$8 sps:$4 sm:$0xff]  }
 0x149   :  { %1887 = vmatprep.subr.bf16.mxu0 %v2447_v18  ;;  %v177_v18 = vrot.slane %v3122_v46, %v176_v15 }
 0x14c   :  { %1888 = vmatpush1.bf16.msra.mxu0 %v2445_v19  ;;  %v2507_v19 = vld [vmem:[%s3457_s3 + $0x2e4] ss:$8 sps:$4 sm:$0xff]  }
 0x14d   :  { %1889 = vmatprep.subr.bf16.mxu0 %v2450_v21  ;;  %v181_v21 = vrot.slane %v3122_v46, %v180_v16 }
 0x150   :  { %1890 = vmatpush1.bf16.msra.mxu0 %v2448_v22 }
 0x151   :  { %1891 = vmatprep.subr.bf16.mxu0 %v2453_v23  ;;  %v2505_v23 = vld [vmem:[%s3457_s3 + $0x2e0] ss:$8 sps:$4 sm:$0xff]  }
 0x154   :  { %1892 = vmatpush1.bf16.msra.mxu0 %v2451_v24 }
 0x155   :  { %1893 = vmatprep.subr.bf16.mxu0 %v2456_v25 }
 0x158   :  { %v925_v32 = vpop.f32.mrb[4].mxu1  ;;  %1894 = vmatpush1.bf16.msra.mxu0 %v2454_v28 }
 0x159   :  { %v926_v34 = vadd.f32 %v925_v32, %v169_v29  ;;  %v927_v35 = vpop.f32.mrb[5].mxu1  ;;  %1895 = vmatprep.subr.bf16.mxu0 %v2459_v30 }
 0x15a   :  { %v928_v37 = vadd.f32 %v927_v35, %v173_v31  ;;  %v929_v38 = vpop.f32.mrb[6].mxu1  ;;  %v2513_v35 = vld [vmem:[%s3457_s3 + $0x304] ss:$8 sps:$4 sm:$0xff]  }
 0x15b   :  { %v1022_v39 = vmax.f32 %v926_v34, 0.0  ;;  %v930_v40 = vadd.f32 %v929_v38, %v169_v29  ;;  %v931_v41 = vpop.f32.mrb[7].mxu1 }
 0x15c   :  { %v932_v42 = vadd.f32 %v931_v41, %v173_v31  ;;  %1896 = vmatpush1.bf16.msra.mxu0 %v2457_v33  ;;  %v1023_v49 = vmax.f32 %v928_v37, 0.0  ;;  %v2508_v33 = vld [vmem:[%s3457_s3 + $0x2f0] ss:$8 sps:$4 sm:$0xff]   ;;  %v2516_v41 = vld [vmem:[%s3457_s3 + $0x314] ss:$8 sps:$4 sm:$0xff]  }
 0x15d   :  { %v1030_v48 = vmax.f32 %v930_v40, 0.0  ;;  %1897 = vmatprep.subr.bf16.mxu0 %v2462_v36  ;;  %v2511_v40 = vld [vmem:[%s3457_s3 + $0x300] ss:$8 sps:$4 sm:$0xff]  }
 0x15e   :  { %v1031_v50 = vmax.f32 %v932_v42, 0.0  ;;  %v2514_v42 = vld [vmem:[%s3457_s3 + $0x310] ss:$8 sps:$4 sm:$0xff]  }
 0x15f   :  { %v1038_v51 = vpack.c.bf16 %v1030_v48, %v1022_v39  ;;  %v2517_v48 = vld [vmem:[%s3457_s3 + $0x320] ss:$8 sps:$4 sm:$0xff]  }
 0x160   :  { %v1039_v52 = vpack.c.bf16 %v1031_v50, %v1023_v49  ;;  %1898 = vmatpush1.bf16.msra.mxu0 %v2460_v43  ;;  %v2519_v43 = vld [vmem:[%s3457_s3 + $0x324] ss:$8 sps:$4 sm:$0xff]   ;;  %v2520_v49 = vld [vmem:[%s3457_s3 + $0x330] ss:$8 sps:$4 sm:$0xff]  }
 0x161   :  { %1910 = vmatprep.subr.bf16.mxu0 %v2465_v8  ;;  %v2522_v8 = vld [vmem:[%s3457_s3 + $0x334] ss:$8 sps:$4 sm:$0xff]   ;;  %v2525_v50 = vld [vmem:[%s3457_s3 + $0x344] ss:$8 sps:$4 sm:$0xff]  }
 0x162   :  { %1899 = vmatprep.mubr.bf16.mxu0 %v1039_v52  ;;  %v2528_v52 = vld [vmem:[%s3457_s3 + $0x354] ss:$8 sps:$4 sm:$0xff]  }
 0x163   :  { %1900 = vmatmul.mubr.bf16.vlgmr.msra.gmra.mrb[0].mxu0 %v1038_v51  ;;  %v2523_v51 = vld [vmem:[%s3457_s3 + $0x340] ss:$8 sps:$4 sm:$0xff]  }
 0x164   :  { %1911 = vmatpush1.bf16.msra.mxu0 %v2463_v53  ;;  %v2526_v53 = vld [vmem:[%s3457_s3 + $0x350] ss:$8 sps:$4 sm:$0xff]  }
 0x165   :  { %1912 = vmatprep.subr.bf16.mxu0 %v2468_v54  ;;  %v2531_v54 = vld [vmem:[%s3457_s3 + $0x364] ss:$8 sps:$4 sm:$0xff]  }
 0x168   :  { %1913 = vmatpush1.bf16.msra.mxu0 %v2466_v55  ;;  %v2529_v55 = vld [vmem:[%s3457_s3 + $0x360] ss:$8 sps:$4 sm:$0xff]  }
 0x169   :  { %1914 = vmatprep.subr.bf16.mxu0 %v2471_v56  ;;  %v2534_v56 = vld [vmem:[%s3457_s3 + $0x374] ss:$8 sps:$4 sm:$0xff]  }
 0x16c   :  { %1915 = vmatpush1.bf16.msra.mxu0 %v2469_v57  ;;  %v2532_v57 = vld [vmem:[%s3457_s3 + $0x370] ss:$8 sps:$4 sm:$0xff]  }
 0x16d   :  { %1916 = vmatprep.subr.bf16.mxu0 %v2474_v20  ;;  %v2537_v20 = vld [vmem:[%s3457_s3 + $0x384] ss:$8 sps:$4 sm:$0xff]  }
 0x170   :  { %1917 = vmatpush1.bf16.msra.mxu0 %v2472_v58  ;;  %v2535_v58 = vld [vmem:[%s3457_s3 + $0x380] ss:$8 sps:$4 sm:$0xff]  }
 0x171   :  { %1918 = vmatprep.subr.bf16.mxu0 %v2477_v59  ;;  %v2540_v59 = vld [vmem:[%s3457_s3 + $0x394] ss:$8 sps:$4 sm:$0xff]  }
 0x174   :  { %1919 = vmatpush1.bf16.msra.mxu0 %v2475_v60  ;;  %v2538_v60 = vld [vmem:[%s3457_s3 + $0x390] ss:$8 sps:$4 sm:$0xff]  }
 0x175   :  { %1920 = vmatprep.subr.bf16.mxu0 %v2480_v61  ;;  %v2543_v61 = vld [vmem:[%s3457_s3 + $0x3a4] ss:$8 sps:$4 sm:$0xff]  }
 0x178   :  { %1921 = vmatpush1.bf16.msra.mxu0 %v2478_v62  ;;  %v2541_v62 = vld [vmem:[%s3457_s3 + $0x3a0] ss:$8 sps:$4 sm:$0xff]  }
 0x179   :  { %1922 = vmatprep.subr.bf16.mxu0 %v2483_v63  ;;  %v2546_v63 = vld [vmem:[%s3457_s3 + $0x3b4] ss:$8 sps:$4 sm:$0xff]  }
 0x17c   :  { %1923 = vmatpush1.bf16.msra.mxu0 %v2481_v0  ;;  %v2544_v0 = vld [vmem:[%s3457_s3 + $0x3b0] ss:$8 sps:$4 sm:$0xff]  }
 0x17d   :  { %1924 = vmatprep.subr.bf16.mxu0 %v2486_v1  ;;  %v2549_v1 = vld [vmem:[%s3457_s3 + $0x3c4] ss:$8 sps:$4 sm:$0xff]  }
 0x180   :  { %1925 = vmatpush1.bf16.msra.mxu0 %v2484_v2  ;;  %v2547_v2 = vld [vmem:[%s3457_s3 + $0x3c0] ss:$8 sps:$4 sm:$0xff]  }
 0x181   :  { %1926 = vmatprep.subr.bf16.mxu0 %v2489_v3  ;;  %v2552_v3 = vld [vmem:[%s3457_s3 + $0x3d4] ss:$8 sps:$4 sm:$0xff]  }
 0x184   :  { %1927 = vmatpush1.bf16.msra.mxu0 %v2487_v4  ;;  %v184_v4 = vsub.s32 6, %v3114_v44 }
 0x185   :  { %1928 = vmatprep.subr.bf16.mxu0 %v2492_v5  ;;  %v188_v5 = vsub.s32 7, %v3114_v44  ;;  %v2553_v44 = vld [vmem:[%s3457_s3 + $0x3e0] ss:$8 sps:$4 sm:$0xff]  }
 0x188   :  { %1929 = vmatpush1.bf16.msra.mxu0 %v2490_v6  ;;  %v2550_v6 = vld [vmem:[%s3457_s3 + $0x3d0] ss:$8 sps:$4 sm:$0xff]  }
 0x189   :  { %1930 = vmatprep.subr.bf16.mxu0 %v2495_v7  ;;  %v185_v7 = vrot.slane %v3122_v46, %v184_v4 }
 0x18c   :  { %1931 = vmatpush1.bf16.msra.mxu0 %v2493_v9  ;;  %v2555_v9 = vld [vmem:[%s3457_s3 + $0x3e4] ss:$8 sps:$4 sm:$0xff]  }
 0x18d   :  { %1932 = vmatprep.subr.bf16.mxu0 %v2498_v10  ;;  %v189_v10 = vrot.slane %v3122_v46, %v188_v5  ;;  %v2556_v46 = vld [vmem:[%s3457_s3 + $0x3f0] ss:$8 sps:$4 sm:$0xff]  }
 0x190   :  { %1933 = vmatpush1.bf16.msra.mxu0 %v2496_v11 }
 0x191   :  { %1934 = vmatprep.subr.bf16.mxu0 %v2501_v12 }
 0x194   :  { %1935 = vmatpush1.bf16.msra.mxu0 %v2499_v13 }
 0x195   :  { %1936 = vmatprep.subr.bf16.mxu0 %v2504_v14  ;;  %v2558_v14 = vld [vmem:[%s3457_s3 + $0x3f4] ss:$8 sps:$4 sm:$0xff]  }
 0x198   :  { %v968_v22 = vpop.f32.mrb[8].mxu1  ;;  %1937 = vmatpush1.bf16.msra.mxu0 %v2502_v17 }
 0x199   :  { %v969_v24 = vadd.f32 %v968_v22, %v177_v18  ;;  %v970_v25 = vpop.f32.mrb[9].mxu1  ;;  %1938 = vmatprep.subr.bf16.mxu0 %v2507_v19 }
 0x19a   :  { %v971_v27 = vadd.f32 %v970_v25, %v181_v21  ;;  %v972_v28 = vpop.f32.mrb[10].mxu1 }
 0x19b   :  { %v1024_v29 = vmax.f32 %v969_v24, 0.0  ;;  %v973_v30 = vadd.f32 %v972_v28, %v177_v18  ;;  %v974_v31 = vpop.f32.mrb[11].mxu1 }
 0x19c   :  { %v975_v32 = vadd.f32 %v974_v31, %v181_v21  ;;  %1939 = vmatpush1.bf16.msra.mxu0 %v2505_v23  ;;  %v1025_v36 = vmax.f32 %v971_v27, 0.0  ;;  %v1172_v27 = vld [vmem:[%s3459_s4] sm:$0x3] }
 0x19d   :  { %v1032_v34 = vmax.f32 %v973_v30, 0.0  ;;  %1940 = vmatprep.subr.bf16.mxu0 %v2510_v26  ;;  %v1177_v28 = vrot.slane %v1172_v27, %v3117_v45  ;;  %v2563_v30 = vld [vmem:[%s3456_s0] sm:$0xff] }
 0x19e   :  { %v1033_v37 = vmax.f32 %v975_v32, 0.0  ;;  %v1996_v31 = vunpack.c.l.bf16 %v2563_v30 }
 0x19f   :  { %v1040_v38 = vpack.c.bf16 %v1032_v34, %v1024_v29  ;;  %v1181_v29 = vrot.slane %v1172_v27, %v3125_v47 }
 0x1a0   :  { %v1041_v39 = vpack.c.bf16 %v1033_v37, %v1025_v36  ;;  %1941 = vmatpush1.bf16.msra.mxu0 %v2508_v33  ;;  %v1997_v33 = vunpack.c.h.bf16 %v2563_v30 }
 0x1a1   :  { %1953 = vmatprep.subr.bf16.mxu0 %v2513_v35 }
 0x1a2   :  { %1942 = vmatprep.mubr.bf16.mxu0 %v1041_v39 }
 0x1a3   :  { %1943 = vmatmul.mubr.bf16.vlgmr.msra.gmra.mrb[0].mxu0 %v1040_v38  ;;  %v2564_v38 = vld [vmem:[%s3456_s0 + $0x8] sm:$0xff] }
 0x1a4   :  { %1954 = vmatpush1.bf16.msra.mxu0 %v2511_v40  ;;  %v1998_v39 = vunpack.c.l.bf16 %v2564_v38  ;;  %v1999_v40 = vunpack.c.h.bf16 %v2564_v38 }
 0x1a5   :  { %1955 = vmatprep.subr.bf16.mxu0 %v2516_v41 }
 0x1a8   :  { %1956 = vmatpush1.bf16.msra.mxu0 %v2514_v42 }
 0x1a9   :  { %1957 = vmatprep.subr.bf16.mxu0 %v2519_v43 }
 0x1ac   :  { %1958 = vmatpush1.bf16.msra.mxu0 %v2517_v48 }
 0x1ad   :  { %1959 = vmatprep.subr.bf16.mxu0 %v2522_v8 }
 0x1b0   :  { %1960 = vmatpush1.bf16.msra.mxu0 %v2520_v49 }
 0x1b1   :  { %1961 = vmatprep.subr.bf16.mxu0 %v2525_v50 }
 0x1b4   :  { %1962 = vmatpush1.bf16.msra.mxu0 %v2523_v51 }
 0x1b5   :  { %1963 = vmatprep.subr.bf16.mxu0 %v2528_v52 }
 0x1b8   :  { %1964 = vmatpush1.bf16.msra.mxu0 %v2526_v53 }
 0x1b9   :  { %1965 = vmatprep.subr.bf16.mxu0 %v2531_v54 }
 0x1bc   :  { %1966 = vmatpush1.bf16.msra.mxu0 %v2529_v55 }
 0x1bd   :  { %1967 = vmatprep.subr.bf16.mxu0 %v2534_v56 }
 0x1c0   :  { %1968 = vmatpush1.bf16.msra.mxu0 %v2532_v57 }
 0x1c1   :  { %1969 = vmatprep.subr.bf16.mxu0 %v2537_v20 }
 0x1c4   :  { %1970 = vmatpush1.bf16.msra.mxu0 %v2535_v58 }
 0x1c5   :  { %1971 = vmatprep.subr.bf16.mxu0 %v2540_v59 }
 0x1c8   :  { %1972 = vmatpush1.bf16.msra.mxu0 %v2538_v60 }
 0x1c9   :  { %1973 = vmatprep.subr.bf16.mxu0 %v2543_v61 }
 0x1cc   :  { %1974 = vmatpush1.bf16.msra.mxu0 %v2541_v62 }
 0x1cd   :  { %1975 = vmatprep.subr.bf16.mxu0 %v2546_v63 }
 0x1d0   :  { %1976 = vmatpush1.bf16.msra.mxu0 %v2544_v0 }
 0x1d1   :  { %1977 = vmatprep.subr.bf16.mxu0 %v2549_v1 }
 0x1d4   :  { %1978 = vmatpush1.bf16.msra.mxu0 %v2547_v2 }
 0x1d5   :  { %1979 = vmatprep.subr.bf16.mxu0 %v2552_v3 }
 0x1d8   :  { %v1011_v11 = vpop.f32.mrb[12].mxu1  ;;  %1980 = vmatpush1.bf16.msra.mxu0 %v2550_v6 }
 0x1d9   :  { %v1012_v12 = vadd.f32 %v1011_v11, %v185_v7  ;;  %v1013_v13 = vpop.f32.mrb[13].mxu1  ;;  %1981 = vmatprep.subr.bf16.mxu0 %v2555_v9  ;;  %v2037_v9 = vld [vmem:[%s3460_s5] sm:$0x3] }
 0x1da   :  { %v1014_v15 = vadd.f32 %v1013_v13, %v189_v10  ;;  %v1015_v16 = vpop.f32.mrb[14].mxu1  ;;  %v2042_v11 = vrot.slane %v2037_v9, %v3117_v45 }
 0x1db   :  { %v1016_v17 = vadd.f32 %v1015_v16, %v185_v7  ;;  %v1017_v18 = vpop.f32.mrb[15].mxu1  ;;  %v1026_v21 = vmax.f32 %v1012_v12, 0.0 }
 0x1dc   :  { %v1018_v19 = vadd.f32 %v1017_v18, %v189_v10  ;;  %1982 = vmatpush1.bf16.msra.mxu0 %v2553_v44  ;;  %v1027_v23 = vmax.f32 %v1014_v15, 0.0  ;;  %v2053_v10 = vld [vmem:[%s3461_s6] sm:$0x3]  ;;  %v2046_v44 = vrot.slane %v2037_v9, %v3125_v47 }
 0x1dd   :  { %v1034_v22 = vmax.f32 %v1016_v17, 0.0  ;;  %1983 = vmatprep.subr.bf16.mxu0 %v2558_v14  ;;  %v2058_v13 = vrot.slane %v2053_v10, %v3117_v45  ;;  %v2062_v14 = vrot.slane %v2053_v10, %v3125_v47 }
 0x1de   :  { %v1035_v24 = vmax.f32 %v1018_v19, 0.0 }
 0x1df   :  { %v1042_v25 = vpack.c.bf16 %v1034_v22, %v1026_v21 }
 0x1e0   :  { %v1043_v26 = vpack.c.bf16 %v1035_v24, %v1027_v23  ;;  %1984 = vmatpush1.bf16.msra.mxu0 %v2556_v46 }
 0x1e2   :  { %1985 = vmatprep.mubr.bf16.mxu0 %v1043_v26 }
 0x1e3   :  { %1986 = vmatmul.mubr.bf16.vlgmr.msra.gmra.mrb[0].mxu0 %v1042_v25 }
 0x2b6   :  { %v1987_v32 = vpop.f32.mrb[0].mxu0 }
 0x2b7   :  { %v2349_v34 = vadd.f32 %v1987_v32, %v1177_v28  ;;  %v1989_v35 = vpop.f32.mrb[1].mxu0 }
 0x2b8   :  { %v2350_v36 = vadd.f32 %v1989_v35, %v1181_v29  ;;  %v1991_v37 = vpop.f32.mrb[2].mxu0 }
 0x2b9   :  { %v2351_v41 = vadd.f32 %v1991_v37, %v1177_v28  ;;  %v1993_v42 = vpop.f32.mrb[3].mxu0  ;;  %v2000_v43 = vadd.f32 %v2349_v34, %v1996_v31 }
 0x2ba   :  { %v2352_v48 = vadd.f32 %v1993_v42, %v1181_v29  ;;  %v2001_v8 = vadd.f32 %v2350_v36, %v1997_v33 }
 0x2bb   :  { %v2002_v49 = vadd.f32 %v2351_v41, %v1998_v39 }
 0x2bc   :  { %v2003_v50 = vadd.f32 %v2352_v48, %v1999_v40  ;;  %v2004_v51 = vadd.f32 %v2001_v8, %v2000_v43 }
 0x2be   :  { %2005 = vadd.xlane.f32.xlu0 %v2004_v51  ;;  %v2007_v52 = vadd.f32 %v2003_v50, %v2002_v49 }
 0x2c2   :  { %2008 = vadd.xlane.f32.xlu0 %v2007_v52 }
 0x34b   :  { %v2006_v53 = vpop.xlane.xlu0 %2005 }
 0x34c   :  { %v2011_v54 = vmul.f32 0.00390625, %v2006_v53 }
 0x34e   :  { %v2013_v55 = vsub.f32 %v2000_v43, %v2011_v54  ;;  %v2014_v56 = vsub.f32 %v2001_v8, %v2011_v54 }
 0x34f   :  { %v2009_v57 = vpop.xlane.xlu0 %2008 }
 0x350   :  { %v2012_v20 = vmul.f32 0.00390625, %v2009_v57  ;;  %v2017_v58 = vmul.f32 %v2013_v55, %v2013_v55  ;;  %v2018_v59 = vmul.f32 %v2014_v56, %v2014_v56 }
 0x352   :  { %v2015_v60 = vsub.f32 %v2002_v49, %v2012_v20  ;;  %v2016_v61 = vsub.f32 %v2003_v50, %v2012_v20  ;;  %v2021_v62 = vadd.f32 %v2018_v59, %v2017_v58 }
 0x354   :  { %2022 = vadd.xlane.f32.xlu1 %v2021_v62  ;;  %v2019_v63 = vmul.f32 %v2015_v60, %v2015_v60  ;;  %v2020_v0 = vmul.f32 %v2016_v61, %v2016_v61 }
 0x356   :  { %v2024_v1 = vadd.f32 %v2020_v0, %v2019_v63 }
 0x358   :  { %2025 = vadd.xlane.f32.xlu1 %v2024_v1 }
 0x3e1   :  { %v2023_v2 = vpop.xlane.xlu1 %2022 }
 0x3e2   :  { %v2027_v3 = vmul.f32 0.00390625, %v2023_v2 }
 0x3e4   :  { %v2029_v4 = vadd.f32 1e-05, %v2027_v3 }
 0x3e5   :  { %v2026_v5 = vpop.xlane.xlu1 %2025 }
 0x3e6   :  { %2559 = vrsqrt.f32 %v2029_v4  ;;  %v2028_v6 = vmul.f32 0.00390625, %v2026_v5 }
 0x3e8   :  { %v2030_v7 = vadd.f32 1e-05, %v2028_v6 }
 0x3ea   :  { %2561 = vrsqrt.f32 %v2030_v7 }
 0x3f0   :  { %v2560_v12 = vpop.eup %2559 }
 0x3f1   :  { %v2033_v15 = vmul.f32 %v2560_v12, %v2013_v55  ;;  %v2034_v16 = vmul.f32 %v2560_v12, %v2014_v56 }
 0x3f3   :  { %v2049_v17 = vmul.f32 %v2042_v11, %v2033_v15  ;;  %v2050_v18 = vmul.f32 %v2046_v44, %v2034_v16 }
 0x3f4   :  { %v2562_v19 = vpop.eup %2561 }
 0x3f5   :  { %v2065_v46 = vadd.f32 %v2058_v13, %v2049_v17  ;;  %v2066_v21 = vadd.f32 %v2062_v14, %v2050_v18  ;;  %v2035_v22 = vmul.f32 %v2562_v19, %v2015_v60  ;;  %v2036_v23 = vmul.f32 %v2562_v19, %v2016_v61 }
 0x3f7   :  { %v2347_v24 = vpack.c.bf16 %v2066_v21, %v2065_v46  ;;  %v2051_v25 = vmul.f32 %v2042_v11, %v2035_v22  ;;  %v2052_v26 = vmul.f32 %v2046_v44, %v2036_v23 }
 0x3f9   :  { %2081 = vst [vmem:[%s3462_s7] sm:$0xff] %v2347_v24  ;;  %v2067_v27 = vadd.f32 %v2058_v13, %v2051_v25  ;;  %v2068_v45 = vadd.f32 %v2062_v14, %v2052_v26 }
 0x3fb   :  { %v2348_v28 = vpack.c.bf16 %v2068_v45, %v2067_v27 }
 0x3fd   :  { %2082 = vst [vmem:[%s3462_s7 + $0x8] sm:$0xff] %v2348_v28 }

// kernel: encoder_classifier_forward.9
= control target key start
LH: loop header
LB: loop body
LE: loop exit
PB: predicated region body
PF: predicated region fallthrough
CT: control target
= control target key end

     0   :  { %s4770_s21 = smov 0   ;;  %s4772_s22 = smov 0   ;;  %s5637_s0 = inlined_call_operand.vmem [shape: bf16[2,8,256], index: 0, kind: input, shape index: {}, may-alias: {0,1}]   ;;  %s5638_s1 = inlined_call_operand.vmem [shape: bf16[2,8,256], index: 1, kind: input, shape index: {}, may-alias: {0,1}]   ;;  %s5639_s2 = inlined_call_operand.vmem [shape: bf16[4,256,64], index: 2, kind: input, shape index: {}]   ;;  %s5640_s3 = inlined_call_operand.vmem [shape: bf16[4,256,64], index: 3, kind: input, shape index: {}]   ;;  %s5641_s4 = inlined_call_operand.vmem [shape: bf16[4,256,64], index: 4, kind: input, shape index: {}]   ;;  %s5642_s5 = inlined_call_operand.vmem [shape: f32[4,1,64], index: 5, kind: input, shape index: {}]   ;;  %s5643_s6 = inlined_call_operand.vmem [shape: f32[4,1,64], index: 6, kind: input, shape index: {}]   ;;  %s5644_s7 = inlined_call_operand.vmem [shape: f32[4,1,64], index: 7, kind: input, shape index: {}]   ;;  %s5645_s8 = inlined_call_operand.vmem [shape: bf16[256,256], index: 8, kind: input, shape index: {}]   ;;  %s5646_s9 = inlined_call_operand.vmem [shape: f32[1,256], index: 9, kind: input, shape index: {}]   ;;  %s5647_s10 = inlined_call_operand.vmem [shape: f32[1,256], index: 10, kind: input, shape index: {}]   ;;  %s5648_s11 = inlined_call_operand.vmem [shape: f32[1,256], index: 11, kind: input, shape index: {}]   ;;  %s5649_s12 = inlined_call_operand.vmem [shape: bf16[2,8,256], index: 12, kind: output, shape index: {}]  }
   0x1   :  { %s4774_s23 = smov 0  }
   0x2 LB: > { %s34_s24 = sadd.s32 1, %s4696_s22  ;;  %p3496_p0 = scmp.ge.s32.totalorder %s4700_s23, 1  ;;  %s4700_s23 = sphi %s4774_s23, %s22_s23   ;;  %s4696_s22 = sphi %s4772_s22, %s5651_s22   ;;  %s4692_s21 = sphi %s4770_s21, %s5650_s21  }
   0x3   : > { %p36_p1 = scmp.ge.s32.totalorder %s34_s24, 2  ;;  %p392_p2 = scmp.lt.s32.totalorder %s4700_s23, 3 }
   0x5   : > { %s5653_s24 = smov (%p36_p1, %s34_s24), 0  ;;  %p393_p3 = pnand %p3496_p0, %p392_p2 }
   0x6   : > { %v4415_v0 = vld [vmem:[%s5640_s3 + $0xc0] sm:$0xff] (!%p393_p3)   ;;  %v4417_v2 = vld [vmem:[%s5640_s3 + $0xc8] sm:$0xff] (!%p393_p3)   ;;  %p447_p4 = scmp.lt.s32.totalorder (!%p393_p3), %s4692_s21, 1  ;;  %v4419_v4 = vld [vmem:[%s5640_s3 + $0xd0] sm:$0xff] (!%p393_p3)   ;;  %vm4703_vm0 = vmmov (!%p393_p3), 0   ;;  %vm834_vm1 = vcmask (!%p393_p3), 519168  }
   0x7   : > { %396 = sbr.rel (%p393_p3) target bundleno = 4097 (0x1001), region = 68  ;;  %v4416_v1 = vld [vmem:[%s5640_s3 + $0x80] sm:$0xff] (!%p393_p3)   ;;  %4099 = vmatprep.subr.bf16.mxu0 (!%p393_p3), %v4415_v0  ;;  %v4418_v3 = vld [vmem:[%s5640_s3 + $0x88] sm:$0xff] (!%p393_p3)   ;;  %v4420_v5 = vld [vmem:[%s5640_s3 + $0x90] sm:$0xff] (!%p393_p3)   ;;  %vm2104_vm2 = vcmask (!%p393_p3), 523264   ;;  %vm2168_vm3 = vcmask (!%p393_p3), 1043456  }
   0x8   : > { %4100 = vmatpush3.bf16.msra.mxu0 (!%p393_p3), %v4416_v1  ;;  %v4421_v6 = vld [vmem:[%s5640_s3 + $0xd8] sm:$0xff] (!%p393_p3)   ;;  %v4423_v8 = vld [vmem:[%s5640_s3 + $0xe0] sm:$0xff] (!%p393_p3)   ;;  %v4425_v10 = vld [vmem:[%s5640_s3 + $0xe8] sm:$0xff] (!%p393_p3)   ;;  %vm2151_vm4 = vcmask (!%p393_p3), 64512   ;;  %s4704_s20 = smov (!%p393_p3), 64  }
   0x9   : > { %4101 = vmatprep.subr.bf16.mxu0 (!%p393_p3), %v4417_v2  ;;  %v4422_v7 = vld [vmem:[%s5640_s3 + $0x98] sm:$0xff] (!%p393_p3)   ;;  %v4424_v9 = vld [vmem:[%s5640_s3 + $0xa0] sm:$0xff] (!%p393_p3)   ;;  %v4426_v13 = vld [vmem:[%s5640_s3 + $0xa8] sm:$0xff] (!%p393_p3)  }
   0xa   : > { %v4427_v14 = vld [vmem:[%s5640_s3 + $0xf0] sm:$0xff] (!%p393_p3)   ;;  %v4429_v16 = vld [vmem:[%s5640_s3 + $0xf8] sm:$0xff] (!%p393_p3)   ;;  %v4433_v18 = vld [vmem:[%s5640_s3 + $0x140] sm:$0xff] (!%p393_p3)  }
   0xb   : > { %v4428_v15 = vld [vmem:[%s5640_s3 + $0xb0] sm:$0xff] (!%p393_p3)   ;;  %v4430_v17 = vld [vmem:[%s5640_s3 + $0xb8] sm:$0xff] (!%p393_p3)   ;;  %v4434_v20 = vld [vmem:[%s5640_s3 + $0x100] sm:$0xff] (!%p393_p3)  }
   0xc   : > { %4102 = vmatpush3.bf16.msra.mxu0 (!%p393_p3), %v4418_v3  ;;  %v4435_v21 = vld [vmem:[%s5640_s3 + $0x148] sm:$0xff] (!%p393_p3)   ;;  %v4437_v23 = vld [vmem:[%s5640_s3 + $0x150] sm:$0xff] (!%p393_p3)   ;;  %v4439_v25 = vld [vmem:[%s5640_s3 + $0x158] sm:$0xff] (!%p393_p3)  }
   0xd   : > { %4103 = vmatprep.subr.bf16.mxu0 (!%p393_p3), %v4419_v4  ;;  %v4436_v22 = vld [vmem:[%s5640_s3 + $0x108] sm:$0xff] (!%p393_p3)   ;;  %v4438_v24 = vld [vmem:[%s5640_s3 + $0x110] sm:$0xff] (!%p393_p3)   ;;  %v4457_v26 = vld [vmem:[%s5640_s3 + $0x40] sm:$0xff] (!%p393_p3)  }
   0xe   : > { %s5655_s21 = smov (!%p447_p4, %s4692_s21), 1  ;;  %v4458_v27 = vld [vmem:[%s5640_s3] sm:$0xff]   ;;  %v4440_v28 = vld [vmem:[%s5640_s3 + $0x118] sm:$0xff]   ;;  %4055 = vmatprep.subr.bf16.mxu1 %v4457_v26  ;;  %v4461_v30 = vld [vmem:[%s5640_s3 + $0x48] sm:$0xff]  }
   0xf   : > { %s4809_s25 = sshll.u32 %s5655_s21, 3  ;;  %v4441_v29 = vld [vmem:[%s5640_s3 + $0x160] sm:$0xff]   ;;  %4056 = vmatpush3.bf16.msra.mxu1 %v4458_v27  ;;  %v4462_v31 = vld [vmem:[%s5640_s3 + $0x8] sm:$0xff]   ;;  %v4465_v34 = vld [vmem:[%s5640_s3 + $0x50] sm:$0xff]  }
  0x10   : > { %4104 = vmatpush3.bf16.msra.mxu0 %v4420_v5  ;;  %s451_s14 = scalar_lea.vmem %s5637_s0, %s4809_s25  ;;  %v4442_v32 = vld [vmem:[%s5640_s3 + $0x120] sm:$0xff]   ;;  %4057 = vmatprep.subr.bf16.mxu1 %v4461_v30  ;;  %v4443_v33 = vld [vmem:[%s5640_s3 + $0x168] sm:$0xff]   ;;  %v4466_v35 = vld [vmem:[%s5640_s3 + $0x10] sm:$0xff]   ;;  %s5014_s27 = scalar_lea.vmem %s5638_s1, %s4809_s25 }
  0x11   : > { %4105 = vmatprep.subr.bf16.mxu0 %v4421_v6  ;;  %v475_v11 = vld [vmem:[%s451_s14] sm:$0xff]  ;;  %v4444_v36 = vld [vmem:[%s5640_s3 + $0x128] sm:$0xff]   ;;  %v4445_v37 = vld [vmem:[%s5640_s3 + $0x170] sm:$0xff]   ;;  %s469_s16 = scalar_lea.vmem %s5649_s12, %s4809_s25 }
  0x12   : > { %v4827_v12 = vcombine.high %v475_v11, %v475_v11  ;;  %v4849_v19 = vcombine.low %v475_v11, %v475_v11  ;;  %v4469_v38 = vld [vmem:[%s5640_s3 + $0x58] sm:$0xff]   ;;  %v4446_v40 = vld [vmem:[%s5640_s3 + $0x130] sm:$0xff]   ;;  %v4473_v42 = vld [vmem:[%s5640_s3 + $0x60] sm:$0xff]  }
  0x13   : > { %4058 = vmatpush3.bf16.msra.mxu1 %v4462_v31  ;;  %v4470_v39 = vld [vmem:[%s5640_s3 + $0x18] sm:$0xff]   ;;  %v4474_v43 = vld [vmem:[%s5640_s3 + $0x20] sm:$0xff]   ;;  %v4477_v46 = vld [vmem:[%s5640_s3 + $0x68] sm:$0xff]  }
  0x14   : > { %4106 = vmatpush3.bf16.msra.mxu0 %v4422_v7  ;;  %1007 = vmatprep.mubr.bf16.mxu0 %v4827_v12  ;;  %v4447_v41 = vld [vmem:[%s5640_s3 + $0x178] sm:$0xff]   ;;  %v4449_v45 = vld [vmem:[%s5640_s3 + $0x1c0] sm:$0xff]   ;;  %v4478_v47 = vld [vmem:[%s5640_s3 + $0x28] sm:$0xff]  }
  0x15   : > { %4107 = vmatprep.subr.bf16.mxu0 %v4423_v8  ;;  %650 = vmatprep.mubr.bf16.mxu1 %v4827_v12  ;;  %v4448_v44 = vld [vmem:[%s5640_s3 + $0x138] sm:$0xff]   ;;  %v4450_v48 = vld [vmem:[%s5640_s3 + $0x180] sm:$0xff]   ;;  %v4451_v49 = vld [vmem:[%s5640_s3 + $0x1c8] sm:$0xff]  }
  0x16   : > { %4059 = vmatprep.subr.bf16.mxu1 %v4465_v34  ;;  %v4481_v50 = vld [vmem:[%s5640_s3 + $0x70] sm:$0xff]   ;;  %v4452_v52 = vld [vmem:[%s5640_s3 + $0x188] sm:$0xff]   ;;  %v4485_v54 = vld [vmem:[%s5640_s3 + $0x78] sm:$0xff]  }
  0x17   : > { %4060 = vmatpush3.bf16.msra.mxu1 %v4466_v35  ;;  %v4482_v51 = vld [vmem:[%s5640_s3 + $0x30] sm:$0xff]   ;;  %v4486_v55 = vld [vmem:[%s5640_s3 + $0x38] sm:$0xff]   ;;  %v4459_v59 = vld [vmem:[%s5640_s3 + $0x1e0] sm:$0xff]  }
  0x18   : > { %4108 = vmatpush3.bf16.msra.mxu0 %v4424_v9  ;;  %4061 = vmatprep.subr.bf16.mxu1 %v4469_v38  ;;  %v4453_v53 = vld [vmem:[%s5640_s3 + $0x1d0] sm:$0xff]   ;;  %v4455_v57 = vld [vmem:[%s5640_s3 + $0x1d8] sm:$0xff]   ;;  %v4460_v60 = vld [vmem:[%s5640_s3 + $0x1a0] sm:$0xff]  }
  0x19   : > { %4109 = vmatprep.subr.bf16.mxu0 %v4425_v10  ;;  %v4454_v56 = vld [vmem:[%s5640_s3 + $0x190] sm:$0xff]   ;;  %v4456_v58 = vld [vmem:[%s5640_s3 + $0x198] sm:$0xff]   ;;  %v4463_v61 = vld [vmem:[%s5640_s3 + $0x1e8] sm:$0xff]  }
  0x1a   : > { %v4464_v62 = vld [vmem:[%s5640_s3 + $0x1a8] sm:$0xff]   ;;  %v4499_v63 = vld [vmem:[%s5641_s4 + $0x40] sm:$0xff]   ;;  %v4467_v0 = vld [vmem:[%s5640_s3 + $0x1f0] sm:$0xff]  }
  0x1b   : > { %4062 = vmatpush3.bf16.msra.mxu1 %v4470_v39  ;;  %v4500_v1 = vld [vmem:[%s5641_s4] sm:$0xff]   ;;  %v4501_v2 = vld [vmem:[%s5641_s4 + $0x48] sm:$0xff]   ;;  %v4503_v4 = vld [vmem:[%s5641_s4 + $0x50] sm:$0xff]  }
  0x1c   : > { %4110 = vmatpush3.bf16.msra.mxu0 %v4426_v13  ;;  %4063 = vmatprep.subr.bf16.mxu1 %v4473_v42  ;;  %v4502_v3 = vld [vmem:[%s5641_s4 + $0x8] sm:$0xff]   ;;  %v4468_v5 = vld [vmem:[%s5640_s3 + $0x1b0] sm:$0xff]   ;;  %v4471_v6 = vld [vmem:[%s5640_s3 + $0x1f8] sm:$0xff]  }
  0x1d   : > { %4111 = vmatprep.subr.bf16.mxu0 %v4427_v14  ;;  %v4504_v7 = vld [vmem:[%s5641_s4 + $0x10] sm:$0xff]   ;;  %v4472_v8 = vld [vmem:[%s5640_s3 + $0x1b8] sm:$0xff]   ;;  %v4475_v10 = vld [vmem:[%s5639_s2 + $0x40] sm:$0xff]  }
  0x1e   : > { %v4505_v9 = vld [vmem:[%s5641_s4 + $0x58] sm:$0xff]   ;;  %v5029_v11 = vld [vmem:[%s5014_s27] sm:$0xff]  ;;  %v4512_v27 = vld [vmem:[%s5641_s4 + $0x30] sm:$0xff]  }
  0x1f   : > { %4064 = vmatpush3.bf16.msra.mxu1 %v4474_v43  ;;  %v4506_v13 = vld [vmem:[%s5641_s4 + $0x18] sm:$0xff]   ;;  %v4507_v14 = vld [vmem:[%s5641_s4 + $0x60] sm:$0xff]   ;;  %v4491_v34 = vld [vmem:[%s5639_s2 + $0x68] sm:$0xff]  }
  0x20   : > { %4112 = vmatpush3.bf16.msra.mxu0 %v4428_v15  ;;  %4065 = vmatprep.subr.bf16.mxu1 %v4477_v46  ;;  %v4476_v15 = vld [vmem:[%s5639_s2] sm:$0xff]   ;;  %v4487_v26 = vld [vmem:[%s5639_s2 + $0x58] sm:$0xff]   ;;  %v4493_v38 = vld [vmem:[%s5639_s2 + $0x70] sm:$0xff]  }
  0x21   : > { %4113 = vmatprep.subr.bf16.mxu0 %v4429_v16  ;;  %v4479_v16 = vld [vmem:[%s5639_s2 + $0x48] sm:$0xff]   ;;  %v4489_v30 = vld [vmem:[%s5639_s2 + $0x60] sm:$0xff]   ;;  %v4514_v31 = vld [vmem:[%s5641_s4 + $0x38] sm:$0xff]  }
  0x22   : > { %v4516_v35 = vld [vmem:[%s5641_s4 + $0x80] sm:$0xff]   ;;  %v4518_v39 = vld [vmem:[%s5641_s4 + $0x88] sm:$0xff]   ;;  %v4519_v42 = vld [vmem:[%s5641_s4 + $0xd0] sm:$0xff]  }
  0x23   : > { %4066 = vmatpush3.bf16.msra.mxu1 %v4478_v47  ;;  %v4520_v43 = vld [vmem:[%s5641_s4 + $0x90] sm:$0xff]   ;;  %v4522_v46 = vld [vmem:[%s5641_s4 + $0x98] sm:$0xff]   ;;  %v4523_v47 = vld [vmem:[%s5641_s4 + $0xe0] sm:$0xff]  }
  0x24   : > { %4114 = vmatpush3.bf16.msra.mxu0 %v4430_v17  ;;  %4067 = vmatprep.subr.bf16.mxu1 %v4481_v50  ;;  %v5045_v17 = vcombine.high %v5029_v11, %v5029_v11  ;;  %v4525_v50 = vld [vmem:[%s5641_s4 + $0xe8] sm:$0xff]  }
  0x25   : > { %4143 = vmatprep.subr.bf16.mxu0 %v4433_v18  ;;  %v4508_v18 = vld [vmem:[%s5641_s4 + $0x20] sm:$0xff]  }
  0x27   : > { %1008 = vmatmul.mubr.bf16.vlgmr.msra.gmra.mrb[0].mxu0 %v4849_v19  ;;  %4068 = vmatpush3.bf16.msra.mxu1 %v4482_v51  ;;  %v4702_v51 = vmov 0.0  }
  0x28   : > { %4144 = vmatpush3.bf16.msra.mxu0 %v4434_v20  ;;  %1367 = vmatprep.mubr.bf16.mxu0 %v4827_v12  ;;  %v4480_v20 = vld [vmem:[%s5639_s2 + $0x8] sm:$0xff]  }
  0x29   : > { %4145 = vmatprep.subr.bf16.mxu0 %v4435_v21  ;;  %4069 = vmatprep.subr.bf16.mxu1 %v4485_v54  ;;  %v4509_v21 = vld [vmem:[%s5641_s4 + $0x68] sm:$0xff]   ;;  %v4528_v54 = vld [vmem:[%s5641_s4 + $0xb0] sm:$0xff]  }
  0x2b   : > { %4070 = vmatpush3.bf16.msra.mxu1 %v4486_v55  ;;  %v4529_v55 = vld [vmem:[%s5641_s4 + $0xf8] sm:$0xff]  }
  0x2c   : > { %4146 = vmatpush3.bf16.msra.mxu0 %v4436_v22  ;;  %4077 = vmatprep.subr.bf16.mxu1 %v4499_v63  ;;  %v4483_v22 = vld [vmem:[%s5639_s2 + $0x50] sm:$0xff]   ;;  %v4537_v63 = vld [vmem:[%s5641_s4 + $0x158] sm:$0xff]  }
  0x2d   : > { %4147 = vmatprep.subr.bf16.mxu0 %v4437_v23  ;;  %v4510_v23 = vld [vmem:[%s5641_s4 + $0x28] sm:$0xff]  }
  0x2e   : > { %651 = vmatmul.mubr.bf16.vlgmr.msra.gmra.mrb[0].mxu1 %v4849_v19 }
  0x2f   : > { %825 = vmatprep.mubr.bf16.mxu1 %v4827_v12  ;;  %4078 = vmatpush3.bf16.msra.mxu1 %v4500_v1  ;;  %v4539_v1 = vld [vmem:[%s5641_s4 + $0x160] sm:$0xff]  }
  0x30   : > { %4148 = vmatpush3.bf16.msra.mxu0 %v4438_v24  ;;  %4079 = vmatprep.subr.bf16.mxu1 %v4501_v2  ;;  %v4511_v24 = vld [vmem:[%s5641_s4 + $0x70] sm:$0xff]   ;;  %v4540_v2 = vld [vmem:[%s5641_s4 + $0x120] sm:$0xff]  }
  0x31   : > { %4149 = vmatprep.subr.bf16.mxu0 %v4439_v25  ;;  %v4484_v25 = vld [vmem:[%s5639_s2 + $0x10] sm:$0xff]  }
  0x33   : > { %4080 = vmatpush3.bf16.msra.mxu1 %v4502_v3  ;;  %v4541_v3 = vld [vmem:[%s5641_s4 + $0x168] sm:$0xff]  }
  0x34   : > { %4150 = vmatpush3.bf16.msra.mxu0 %v4440_v28  ;;  %4081 = vmatprep.subr.bf16.mxu1 %v4503_v4  ;;  %v4513_v28 = vld [vmem:[%s5641_s4 + $0x78] sm:$0xff]   ;;  %v4542_v4 = vld [vmem:[%s5641_s4 + $0x128] sm:$0xff]  }
  0x35   : > { %4151 = vmatprep.subr.bf16.mxu0 %v4441_v29  ;;  %v4488_v29 = vld [vmem:[%s5639_s2 + $0x18] sm:$0xff]  }
  0x37   : > { %4082 = vmatpush3.bf16.msra.mxu1 %v4504_v7  ;;  %v4545_v7 = vld [vmem:[%s5641_s4 + $0x178] sm:$0xff]  }
  0x38   : > { %4152 = vmatpush3.bf16.msra.mxu0 %v4442_v32  ;;  %4083 = vmatprep.subr.bf16.mxu1 %v4505_v9  ;;  %v4515_v32 = vld [vmem:[%s5641_s4 + $0xc0] sm:$0xff]  }
  0x39   : > { %4153 = vmatprep.subr.bf16.mxu0 %v4443_v33  ;;  %v4490_v33 = vld [vmem:[%s5639_s2 + $0x20] sm:$0xff]  }
  0x3a   : > { %v4547_v9 = vld [vmem:[%s5641_s4 + $0x1c0] sm:$0xff]  }
  0x3b   : > { %4084 = vmatpush3.bf16.msra.mxu1 %v4506_v13  ;;  %v4550_v13 = vld [vmem:[%s5641_s4 + $0x188] sm:$0xff]  }
  0x3c   : > { %4154 = vmatpush3.bf16.msra.mxu0 %v4444_v36  ;;  %4085 = vmatprep.subr.bf16.mxu1 %v4507_v14  ;;  %v4517_v36 = vld [vmem:[%s5641_s4 + $0xc8] sm:$0xff]   ;;  %v4551_v14 = vld [vmem:[%s5641_s4 + $0x1d0] sm:$0xff]  }
  0x3d   : > { %4155 = vmatprep.subr.bf16.mxu0 %v4445_v37  ;;  %v4492_v37 = vld [vmem:[%s5639_s2 + $0x28] sm:$0xff]  }
  0x3f   : > { %4086 = vmatpush3.bf16.msra.mxu1 %v4508_v18  ;;  %v4555_v18 = vld [vmem:[%s5641_s4 + $0x1e0] sm:$0xff]  }
  0x40   : > { %4156 = vmatpush3.bf16.msra.mxu0 %v4446_v40  ;;  %4087 = vmatprep.subr.bf16.mxu1 %v4509_v21  ;;  %v4494_v40 = vld [vmem:[%s5639_s2 + $0x30] sm:$0xff]   ;;  %v4557_v21 = vld [vmem:[%s5641_s4 + $0x1e8] sm:$0xff]  }
  0x41   : > { %4157 = vmatprep.subr.bf16.mxu0 %v4447_v41  ;;  %v4495_v41 = vld [vmem:[%s5639_s2 + $0x78] sm:$0xff]  }
  0x43   : > { %4088 = vmatpush3.bf16.msra.mxu1 %v4510_v23  ;;  %v4559_v23 = vld [vmem:[%s5641_s4 + $0x1f0] sm:$0xff]  }
  0x44   : > { %4158 = vmatpush3.bf16.msra.mxu0 %v4448_v44  ;;  %4089 = vmatprep.subr.bf16.mxu1 %v4511_v24  ;;  %v4496_v44 = vld [vmem:[%s5639_s2 + $0x38] sm:$0xff]   ;;  %v4560_v24 = vld [vmem:[%s5641_s4 + $0x1b0] sm:$0xff]  }
  0x45   : > { %4187 = vmatprep.subr.bf16.mxu0 %v4449_v45  ;;  %v4521_v45 = vld [vmem:[%s5641_s4 + $0xd8] sm:$0xff]  }
  0x47   : > { %1368 = vmatmul.mubr.bf16.vlgmr.msra.gmra.mrb[4].mxu0 %v4849_v19  ;;  %4090 = vmatpush3.bf16.msra.mxu1 %v4512_v27 }
  0x48   : > { %4188 = vmatpush3.bf16.msra.mxu0 %v4450_v48  ;;  %1727 = vmatprep.mubr.bf16.mxu0 %v4827_v12  ;;  %v5140_v48 = vcombine.low %v5029_v11, %v5029_v11  ;;  %v4549_v11 = vld [vmem:[%s5641_s4 + $0x1c8] sm:$0xff]  }
  0x49   : > { %4189 = vmatprep.subr.bf16.mxu0 %v4451_v49  ;;  %4091 = vmatprep.subr.bf16.mxu1 %v4513_v28  ;;  %v4524_v49 = vld [vmem:[%s5641_s4 + $0xa0] sm:$0xff]  }
  0x4a   : > { %v3572_v28 = vld [vmem:[%s5643_s6 + $0x1] ss:$0 sm:$0xff] }
  0x4b   : > { %4092 = vmatpush3.bf16.msra.mxu1 %v4514_v31 }
  0x4c   : > { %4190 = vmatpush3.bf16.msra.mxu0 %v4452_v52  ;;  %4121 = vmatprep.subr.bf16.mxu1 %v4515_v32  ;;  %v4526_v52 = vld [vmem:[%s5641_s4 + $0xa8] sm:$0xff]  }
  0x4d   : > { %4191 = vmatprep.subr.bf16.mxu0 %v4453_v53  ;;  %v4527_v53 = vld [vmem:[%s5641_s4 + $0xf0] sm:$0xff]  }
  0x4e   : > { %826 = vmatmul.mubr.bf16.vlgmr.msra.gmra.mrb[4].mxu1 %v4849_v19 }
  0x4f   : > { %4122 = vmatpush3.bf16.msra.mxu1 %v4516_v35  ;;  %1184 = vmatprep.mubr.bf16.mxu1 %v4827_v12 }
  0x50   : > { %4192 = vmatpush3.bf16.msra.mxu0 %v4454_v56  ;;  %4123 = vmatprep.subr.bf16.mxu1 %v4517_v36  ;;  %v4530_v56 = vld [vmem:[%s5641_s4 + $0xb8] sm:$0xff]  }
  0x51   : > { %4193 = vmatprep.subr.bf16.mxu0 %v4455_v57  ;;  %v4531_v57 = vld [vmem:[%s5641_s4 + $0x140] sm:$0xff]  }
  0x53   : > { %4124 = vmatpush3.bf16.msra.mxu1 %v4518_v39 }
  0x54   : > { %4194 = vmatpush3.bf16.msra.mxu0 %v4456_v58  ;;  %4125 = vmatprep.subr.bf16.mxu1 %v4519_v42  ;;  %v4532_v58 = vld [vmem:[%s5641_s4 + $0x100] sm:$0xff]  }
  0x55   : > { %4195 = vmatprep.subr.bf16.mxu0 %v4459_v59  ;;  %v4533_v59 = vld [vmem:[%s5641_s4 + $0x148] sm:$0xff]  }
  0x57   : > { %4126 = vmatpush3.bf16.msra.mxu1 %v4520_v43 }
  0x58   : > { %4196 = vmatpush3.bf16.msra.mxu0 %v4460_v60  ;;  %4127 = vmatprep.subr.bf16.mxu1 %v4521_v45  ;;  %v4534_v60 = vld [vmem:[%s5641_s4 + $0x108] sm:$0xff]   ;;  %v3503_v45 = vld [vmem:[%s5643_s6] ss:$0 sm:$0xff] }
  0x59   : > { %4197 = vmatprep.subr.bf16.mxu0 %v4463_v61  ;;  %v4535_v61 = vld [vmem:[%s5641_s4 + $0x150] sm:$0xff]  }
  0x5b   : > { %4128 = vmatpush3.bf16.msra.mxu1 %v4522_v46 }
  0x5c   : > { %4198 = vmatpush3.bf16.msra.mxu0 %v4464_v62  ;;  %4129 = vmatprep.subr.bf16.mxu1 %v4523_v47  ;;  %v4536_v62 = vld [vmem:[%s5641_s4 + $0x110] sm:$0xff]  }
  0x5d   : > { %4199 = vmatprep.subr.bf16.mxu0 %v4467_v0  ;;  %v4538_v0 = vld [vmem:[%s5641_s4 + $0x118] sm:$0xff]  }
  0x5f   : > { %4130 = vmatpush3.bf16.msra.mxu1 %v4524_v49 }
  0x60   : > { %4200 = vmatpush3.bf16.msra.mxu0 %v4468_v5  ;;  %4131 = vmatprep.subr.bf16.mxu1 %v4525_v50  ;;  %v4543_v5 = vld [vmem:[%s5641_s4 + $0x170] sm:$0xff]  }
  0x61   : > { %4201 = vmatprep.subr.bf16.mxu0 %v4471_v6  ;;  %v4544_v6 = vld [vmem:[%s5641_s4 + $0x130] sm:$0xff]  }
  0x63   : > { %4132 = vmatpush3.bf16.msra.mxu1 %v4526_v52 }
  0x64   : > { %4202 = vmatpush3.bf16.msra.mxu0 %v4472_v8  ;;  %4133 = vmatprep.subr.bf16.mxu1 %v4527_v53  ;;  %v4546_v8 = vld [vmem:[%s5641_s4 + $0x138] sm:$0xff]  }
  0x65   : > { %4231 = vmatprep.subr.bf16.mxu0 %v4475_v10  ;;  %v4548_v10 = vld [vmem:[%s5641_s4 + $0x180] sm:$0xff]  }
  0x67   : > { %1728 = vmatmul.mubr.bf16.vlgmr.msra.gmra.mrb[8].mxu0 %v4849_v19  ;;  %4134 = vmatpush3.bf16.msra.mxu1 %v4528_v54 }
  0x68   : > { %4232 = vmatpush3.bf16.msra.mxu0 %v4476_v15  ;;  %2093 = vmatprep.mubr.bf16.mxu0 %v5045_v17  ;;  %v4552_v15 = vld [vmem:[%s5641_s4 + $0x190] sm:$0xff]  }
  0x69   : > { %4233 = vmatprep.subr.bf16.mxu0 %v4479_v16  ;;  %4135 = vmatprep.subr.bf16.mxu1 %v4529_v55  ;;  %v4553_v16 = vld [vmem:[%s5641_s4 + $0x1d8] sm:$0xff]  }
  0x6b   : > { %4136 = vmatpush3.bf16.msra.mxu1 %v4530_v56 }
  0x6c   : > { %4234 = vmatpush3.bf16.msra.mxu0 %v4480_v20  ;;  %4165 = vmatprep.subr.bf16.mxu1 %v4531_v57  ;;  %v4556_v20 = vld [vmem:[%s5641_s4 + $0x1a0] sm:$0xff]  }
  0x6d   : > { %4235 = vmatprep.subr.bf16.mxu0 %v4483_v22  ;;  %v4558_v22 = vld [vmem:[%s5641_s4 + $0x1a8] sm:$0xff]   ;;  %v3772_v57 = vld [vmem:[%s5643_s6 + $0x3] ss:$0 sm:$0xff] }
  0x6e   : > { %1185 = vmatmul.mubr.bf16.vlgmr.msra.gmra.mrb[8].mxu1 %v4849_v19 }
  0x6f   : > { %4166 = vmatpush3.bf16.msra.mxu1 %v4532_v58  ;;  %1544 = vmatprep.mubr.bf16.mxu1 %v4827_v12 }
  0x70   : > { %4236 = vmatpush3.bf16.msra.mxu0 %v4484_v25  ;;  %4167 = vmatprep.subr.bf16.mxu1 %v4533_v59  ;;  %v4561_v25 = vld [vmem:[%s5641_s4 + $0x1f8] sm:$0xff]  }
  0x71   : > { %4237 = vmatprep.subr.bf16.mxu0 %v4487_v26  ;;  %v4562_v26 = vld [vmem:[%s5641_s4 + $0x1b8] sm:$0xff]  }
  0x73   : > { %4168 = vmatpush3.bf16.msra.mxu1 %v4534_v60 }
  0x74   : > { %4238 = vmatpush3.bf16.msra.mxu0 %v4488_v29  ;;  %4169 = vmatprep.subr.bf16.mxu1 %v4535_v61 }
  0x75   : > { %4239 = vmatprep.subr.bf16.mxu0 %v4489_v30 }
  0x77   : > { %4170 = vmatpush3.bf16.msra.mxu1 %v4536_v62 }
  0x78   : > { %4240 = vmatpush3.bf16.msra.mxu0 %v4490_v33  ;;  %4171 = vmatprep.subr.bf16.mxu1 %v4537_v63 }
  0x79   : > { %4241 = vmatprep.subr.bf16.mxu0 %v4491_v34 }
  0x7b   : > { %4172 = vmatpush3.bf16.msra.mxu1 %v4538_v0 }
  0x7c   : > { %4242 = vmatpush3.bf16.msra.mxu0 %v4492_v37  ;;  %4173 = vmatprep.subr.bf16.mxu1 %v4539_v1  ;;  %v3672_v37 = vld [vmem:[%s5643_s6 + $0x2] ss:$0 sm:$0xff]  ;;  %v3522_v1 = vld [vmem:[%s5644_s7] ss:$0 sm:$0xff] }
  0x7d   : > { %4243 = vmatprep.subr.bf16.mxu0 %v4493_v38 }
  0x7f   : > { %4174 = vmatpush3.bf16.msra.mxu1 %v4540_v2 }
  0x80   : > { %4244 = vmatpush3.bf16.msra.mxu0 %v4494_v40  ;;  %4175 = vmatprep.subr.bf16.mxu1 %v4541_v3 }
  0x81   : > { %4245 = vmatprep.subr.bf16.mxu0 %v4495_v41 }
  0x83   : > { %4176 = vmatpush3.bf16.msra.mxu1 %v4542_v4 }
  0x84   : > { %4246 = vmatpush3.bf16.msra.mxu0 %v4496_v44  ;;  %4177 = vmatprep.subr.bf16.mxu1 %v4543_v5 }
  0x85   : > { %4347 = vmatprep.subr.bf16.mxu0 %v4702_v51 }
  0x87   : > { %2094 = vmatmul.mubr.bf16.vlgmr.msra.gmra.mrb[12].mxu0 %v5140_v48  ;;  %4178 = vmatpush3.bf16.msra.mxu1 %v4544_v6 }
  0x88   : > { %4179 = vmatprep.subr.bf16.mxu1 %v4545_v7  ;;  %4349 = vmatprep.mubr.msk.bf16.mxu0 %vm4703_vm0, %v4702_v51 }
  0x8b   : > { %4180 = vmatpush3.bf16.msra.mxu1 %v4546_v8 }
  0x8c   : > { %4209 = vmatprep.subr.bf16.mxu1 %v4547_v9  ;;  %v3839_v9 = vld [vmem:[%s5642_s5] ss:$0 sm:$0xff] }
  0x8e   : > { %1545 = vmatmul.mubr.bf16.vlgmr.msra.gmra.mrb[12].mxu1 %v4849_v19 }
  0x8f   : > { %4210 = vmatpush3.bf16.msra.mxu1 %v4548_v10  ;;  %1904 = vmatprep.mubr.bf16.mxu1 %v4827_v12  ;;  %v4554_v12 = vld [vmem:[%s5641_s4 + $0x198] sm:$0xff]  }
  0x90   : > { %4211 = vmatprep.subr.bf16.mxu1 %v4549_v11 }
  0x93   : > { %4212 = vmatpush3.bf16.msra.mxu1 %v4550_v13 }
  0x94   : > { %4213 = vmatprep.subr.bf16.mxu1 %v4551_v14 }
  0x97   : > { %4214 = vmatpush3.bf16.msra.mxu1 %v4552_v15 }
  0x98   : > { %4215 = vmatprep.subr.bf16.mxu1 %v4553_v16 }
  0x9b   : > { %4216 = vmatpush3.bf16.msra.mxu1 %v4554_v12 }
  0x9c   : > { %4217 = vmatprep.subr.bf16.mxu1 %v4555_v18 }
  0x9f   : > { %4218 = vmatpush3.bf16.msra.mxu1 %v4556_v20 }
  0xa0   : > { %4219 = vmatprep.subr.bf16.mxu1 %v4557_v21 }
  0xa3   : > { %4220 = vmatpush3.bf16.msra.mxu1 %v4558_v22  ;;  %v3622_v22 = vld [vmem:[%s5644_s7 + $0x1] ss:$0 sm:$0xff] }
  0xa4   : > { %4221 = vmatprep.subr.bf16.mxu1 %v4559_v23 }
  0xa7   : > { %4222 = vmatpush3.bf16.msra.mxu1 %v4560_v24 }
  0xa8   : > { %4223 = vmatprep.subr.bf16.mxu1 %v4561_v25 }
  0xab   : > { %4224 = vmatpush3.bf16.msra.mxu1 %v4562_v26 }
  0xac   : > { %4335 = vmatprep.subr.bf16.mxu1 %v4702_v51 }
  0xae   : > { %1905 = vmatmul.mubr.bf16.vlgmr.msra.gmra.mrb[16].mxu1 %v4849_v19 }
  0xaf   : > { %4337 = vmatprep.mubr.msk.bf16.mxu1 %vm4703_vm0, %v4702_v51 }
  0xfa   : > { %v4115_v27 = vpop.f32.mrb[0].mxu0 }
  0xfb   : > { %v4116_v29 = vpop.f32.mrb[1].mxu0 }
  0xfc   : > { %v4117_v30 = vadd.f32 %v4116_v29, %v4115_v27  ;;  %v4118_v31 = vpop.f32.mrb[2].mxu0 }
  0xfd   : > { %v4119_v32 = vpop.f32.mrb[3].mxu0 }
  0xfe   : > { %v1010_v33 = vadd.f32 %v4117_v30, %v3572_v28  ;;  %v3722_v30 = vld [vmem:[%s5644_s7 + $0x2] ss:$0 sm:$0xff] }
 0x100   : > { %v1192_v34 = vpack.c.bf16 %v1010_v33, %v1010_v33 }
 0x101   : > { %v4071_v44 = vpop.f32.mrb[0].mxu1 }
 0x102   : > { %1194 = vst.msk [vmem:[#allocation2 + $0x4] sm:$0xf] %vm834_vm1, %v1192_v34  ;;  %v4072_v46 = vpop.f32.mrb[1].mxu1 }
 0x103   : > { %v4073_v47 = vadd.f32 %v4072_v46, %v4071_v44  ;;  %v4074_v49 = vpop.f32.mrb[2].mxu1 }
 0x104   : > { %v4075_v50 = vpop.f32.mrb[3].mxu1 }
 0x105   : > { %v653_v52 = vadd.f32 %v4073_v47, %v3503_v45 }
 0x107   : > { %v833_v53 = vpack.c.bf16 %v653_v52, %v653_v52 }
 0x109   : > { %v2392_v19 = vld [vmem:[#allocation2 + $0x4] sm:$0xf]  ;;  %835 = vst.msk [vmem:[#allocation2] sm:$0xf] %vm834_vm1, %v833_v53 }
 0x10a   : > { %v2397_v35 = vsel %vm2104_vm2, %v2392_v19, 0 }
 0x10b   : > { %4348 = vmatpush3.bf16.xpose.msra.mxu0 %v2397_v35 }
 0x10c   : > { %4353 = vmatprep.subr.bf16.mxu0 %v4702_v51 }
 0x110   : > { %v2103_v54 = vld [vmem:[#allocation2] sm:$0xf] }
 0x111   : > { %v2109_v55 = vsel %vm2104_vm2, %v2103_v54, 0 }
 0x112   : > { %4336 = vmatpush3.bf16.xpose.msra.mxu1 %v2109_v55 }
 0x113   : > { %4341 = vmatprep.subr.bf16.mxu1 %v4702_v51 }
 0x11a   : > { %v4159_v36 = vpop.f32.mrb[4].mxu0 }
 0x11b   : > { %v4160_v38 = vpop.f32.mrb[5].mxu0 }
 0x11c   : > { %v4161_v39 = vadd.f32 %v4160_v38, %v4159_v36  ;;  %v4162_v40 = vpop.f32.mrb[6].mxu0 }
 0x11d   : > { %v4163_v41 = vpop.f32.mrb[7].mxu0 }
 0x11e   : > { %v1370_v42 = vadd.f32 %v4161_v39, %v3672_v37  ;;  %v3822_v37 = vld [vmem:[%s5644_s7 + $0x3] ss:$0 sm:$0xff] }
 0x120   : > { %v1552_v43 = vpack.c.bf16 %v1370_v42, %v1370_v42 }
 0x121   : > { %v4093_v0 = vpop.f32.mrb[4].mxu1 }
 0x122   : > { %1554 = vst.msk [vmem:[#allocation2 + $0x8] sm:$0xf] %vm834_vm1, %v1552_v43  ;;  %v4094_v2 = vpop.f32.mrb[5].mxu1 }
 0x123   : > { %v4095_v3 = vadd.f32 %v4094_v2, %v4093_v0  ;;  %v4096_v4 = vpop.f32.mrb[6].mxu1  ;;  %v4567_v0 = vld [vmem:[%s5639_s2 + $0xd0] sm:$0xff]   ;;  %v4569_v2 = vld [vmem:[%s5639_s2 + $0xd8] sm:$0xff]  }
 0x124   : > { %v4097_v5 = vpop.f32.mrb[7].mxu1  ;;  %v4571_v4 = vld [vmem:[%s5639_s2 + $0xe0] sm:$0xff]  }
 0x125   : > { %v828_v6 = vadd.f32 %v4095_v3, %v3522_v1  ;;  %v4568_v1 = vld [vmem:[%s5639_s2 + $0x90] sm:$0xff]   ;;  %v4570_v3 = vld [vmem:[%s5639_s2 + $0x98] sm:$0xff]   ;;  %v4572_v5 = vld [vmem:[%s5639_s2 + $0xa0] sm:$0xff]  }
 0x127   : > { %v836_v7 = vpack.c.bf16 %v828_v6, %v828_v6  ;;  %v4573_v6 = vld [vmem:[%s5639_s2 + $0xe8] sm:$0xff]  }
 0x129   : > { %837 = vst.msk [vmem:[#allocation3] sm:$0xf] %vm834_vm1, %v836_v7  ;;  %v4574_v7 = vld [vmem:[%s5639_s2 + $0xa8] sm:$0xff]  }
 0x130   : > { %v2164_v16 = vld [vmem:[#allocation3] sm:$0xf] }
 0x131   : > { %v2170_v20 = vsel %vm2168_vm3, %v2164_v16, 0 }
 0x13a   : > { %v4203_v56 = vpop.f32.mrb[8].mxu0 }
 0x13b   : > { %v4204_v58 = vpop.f32.mrb[9].mxu0 }
 0x13c   : > { %v4205_v59 = vadd.f32 %v4204_v58, %v4203_v56  ;;  %v4206_v60 = vpop.f32.mrb[10].mxu0  ;;  %v4563_v56 = vld [vmem:[%s5639_s2 + $0xc0] sm:$0xff]  }
 0x13d   : > { %v4207_v61 = vpop.f32.mrb[11].mxu0  ;;  %v4564_v60 = vld [vmem:[%s5639_s2 + $0x80] sm:$0xff]  }
 0x13e   : > { %v1730_v62 = vadd.f32 %v4205_v59, %v3772_v57 }
 0x140   : > { %v1912_v63 = vpack.c.bf16 %v1730_v62, %v1730_v62  ;;  %v4565_v62 = vld [vmem:[%s5639_s2 + $0xc8] sm:$0xff]  }
 0x141   : > { %v4137_v21 = vpop.f32.mrb[8].mxu1 }
 0x142   : > { %1914 = vst.msk [vmem:[#allocation2 + $0xc] sm:$0xf] %vm834_vm1, %v1912_v63  ;;  %v4138_v23 = vpop.f32.mrb[9].mxu1  ;;  %v4566_v63 = vld [vmem:[%s5639_s2 + $0x88] sm:$0xff]  }
 0x143   : > { %v4139_v24 = vadd.f32 %v4138_v23, %v4137_v21  ;;  %v4140_v25 = vpop.f32.mrb[10].mxu1  ;;  %v3893_v21 = vld [vmem:[%s5642_s5 + $0x1] ss:$0 sm:$0xff] }
 0x144   : > { %v4141_v26 = vpop.f32.mrb[11].mxu1 }
 0x145   : > { %v1187_v27 = vadd.f32 %v4139_v24, %v3622_v22 }
 0x147   : > { %v1195_v28 = vpack.c.bf16 %v1187_v27, %v1187_v27 }
 0x149   : > { %1197 = vst.msk [vmem:[#allocation3 + $0x4] sm:$0xf] %vm834_vm1, %v1195_v28 }
 0x150   : > { %v2452_v28 = vld [vmem:[#allocation3 + $0x4] sm:$0xf] }
 0x15a   : > { %v4247_v8 = vpop.f32.mrb[12].mxu0 }
 0x15b   : > { %v4248_v10 = vpop.f32.mrb[13].mxu0 }
 0x15c   : > { %v4249_v11 = vadd.f32 %v4248_v10, %v4247_v8  ;;  %v4250_v13 = vpop.f32.mrb[14].mxu0  ;;  %v4575_v8 = vld [vmem:[%s5639_s2 + $0xf0] sm:$0xff]   ;;  %v4577_v10 = vld [vmem:[%s5639_s2 + $0xf8] sm:$0xff]  }
 0x15d   : > { %v4251_v14 = vpop.f32.mrb[15].mxu0  ;;  %v2679_v13 = vld [vmem:[#allocation2 + $0x8] sm:$0xf] }
 0x15e   : > { %v2096_v15 = vadd.f32 %v4249_v11, %v3839_v9  ;;  %v4576_v9 = vld [vmem:[%s5639_s2 + $0xb0] sm:$0xff]   ;;  %v4578_v11 = vld [vmem:[%s5639_s2 + $0xb8] sm:$0xff]   ;;  %v2684_v14 = vsel %vm2104_vm2, %v2679_v13, 0 }
 0x160   : > { %v2101_v12 = vmul.f32 0.125, %v2096_v15 }
 0x161   : > { %v4181_v29 = vpop.f32.mrb[12].mxu1 }
 0x162   : > { %v2102_v18 = vpack.c.bf16 %v2101_v12, %v2101_v12  ;;  %v4182_v31 = vpop.f32.mrb[13].mxu1 }
 0x163   : > { %v4183_v32 = vadd.f32 %v4182_v31, %v4181_v29  ;;  %v4184_v33 = vpop.f32.mrb[14].mxu1 }
 0x164   : > { %4338 = vmatmul.mubr.msk.bf16.vlgmr.msra.gmra.mrb[20].mxu1 %vm2104_vm2, %v2102_v18  ;;  %v4185_v34 = vpop.f32.mrb[15].mxu1 }
 0x165   : > { %4342 = vmatpush3.bf16.msra.mxu1 %v2170_v20  ;;  %4343 = vmatprep.mubr.msk.bf16.mxu1 %vm4703_vm0, %v4702_v51  ;;  %v1547_v19 = vadd.f32 %v4183_v32, %v3722_v30  ;;  %v2457_v30 = vsel %vm2168_vm3, %v2452_v28, 0  ;;  %v4595_v28 = vld [vmem:[%s5639_s2 + $0x1c0] sm:$0xff]  }
 0x166   : > { %4257 = vmatprep.subr.bf16.mxu1 %v4563_v56  ;;  %v4589_v56 = vld [vmem:[%s5639_s2 + $0x168] sm:$0xff]  }
 0x167   : > { %v1555_v35 = vpack.c.bf16 %v1547_v19, %v1547_v19 }
 0x169   : > { %1557 = vst.msk [vmem:[#allocation3 + $0x8] sm:$0xf] %vm834_vm1, %v1555_v35 }
 0x170   : > { %v2739_v13 = vld [vmem:[#allocation3 + $0x8] sm:$0xf] }
 0x181   : > { %v4225_v36 = vpop.f32.mrb[16].mxu1 }
 0x182   : > { %v4226_v38 = vpop.f32.mrb[17].mxu1 }
 0x183   : > { %v4227_v39 = vadd.f32 %v4226_v38, %v4225_v36  ;;  %v4228_v40 = vpop.f32.mrb[18].mxu1 }
 0x184   : > { %v4229_v41 = vpop.f32.mrb[19].mxu1  ;;  %v4579_v40 = vld [vmem:[%s5639_s2 + $0x140] sm:$0xff]  }
 0x185   : > { %v1907_v42 = vadd.f32 %v4227_v39, %v3822_v37 }
 0x187   : > { %v1915_v43 = vpack.c.bf16 %v1907_v42, %v1907_v42 }
 0x189   : > { %1917 = vst.msk [vmem:[#allocation3 + $0xc] sm:$0xf] %vm834_vm1, %v1915_v43 }
 0x237   : > { %v2145_v44 = vpop.f32.mrb[20].mxu1 }
 0x238   : > { %v4339_v45 = vpop.f32.mrb[21].mxu1  ;;  %v2152_v46 = vsel %vm2151_vm4, %v2145_v44, -inf }
 0x239   : > { %2153 = vmax.xlane.f32.xlu0 %v2152_v46  ;;  %v2148_v47 = vpop.f32.mrb[22].mxu1  ;;  %v4581_v46 = vld [vmem:[%s5639_s2 + $0x148] sm:$0xff]  }
 0x23a   : > { %v4340_v49 = vpop.f32.mrb[23].mxu1  ;;  %v4582_v47 = vld [vmem:[%s5639_s2 + $0x108] sm:$0xff]  }
 0x23b   : > { %v4583_v49 = vld [vmem:[%s5639_s2 + $0x150] sm:$0xff]  }
 0x2c6   : > { %v2154_v50 = vpop.xlane.xlu0 %2153 }
 0x2c7   : > { %v2155_v52 = vsub.f32 %v2145_v44, %v2154_v50  ;;  %v4580_v44 = vld [vmem:[%s5639_s2 + $0x100] sm:$0xff]   ;;  %v4584_v50 = vld [vmem:[%s5639_s2 + $0x110] sm:$0xff]  }
 0x2c9   : > { %v2156_v53 = vmul.f32 1.442695, %v2155_v52  ;;  %v4585_v52 = vld [vmem:[%s5639_s2 + $0x158] sm:$0xff]  }
 0x2cb   : > { %4659 = vpow2.f32 %v2156_v53  ;;  %v4586_v53 = vld [vmem:[%s5639_s2 + $0x118] sm:$0xff]  }
 0x2d5   : > { %v4660_v54 = vpop.eup %4659 }
 0x2d6   : > { %v2158_v55 = vsel %vm2151_vm4, %v4660_v54, 0.0 }
 0x2d7   : > { %2159 = vadd.xlane.f32.xlu0 %v2158_v55  ;;  %v4588_v55 = vld [vmem:[%s5639_s2 + $0x120] sm:$0xff]  }
 0x364   : > { %v2160_v57 = vpop.xlane.xlu0 %2159 }
 0x365   : > { %4661 = vrcp.f32 %v2160_v57  ;;  %v4590_v57 = vld [vmem:[%s5639_s2 + $0x128] sm:$0xff]  }
 0x36f   : > { %v4662_v58 = vpop.eup %4661 }
 0x370   : > { %v2162_v59 = vmul.f32 %v4662_v58, %v4660_v54  ;;  %v4587_v54 = vld [vmem:[%s5639_s2 + $0x160] sm:$0xff]   ;;  %v4591_v58 = vld [vmem:[%s5639_s2 + $0x170] sm:$0xff]  }
 0x372   : > { %v2163_v61 = vpack.c.bf16 %v2162_v59, %v2162_v59  ;;  %v4592_v59 = vld [vmem:[%s5639_s2 + $0x130] sm:$0xff]  }
 0x374   : > { %4344 = vmatmul.mubr.msk.bf16.vlgmr.msra.gmra.mrb[24].mxu1 %vm2151_vm4, %v2163_v61  ;;  %v4594_v61 = vld [vmem:[%s5639_s2 + $0x138] sm:$0xff]  }
 0x375   : > { %4258 = vmatpush3.bf16.msra.mxu1 %v4564_v60  ;;  %2381 = vmatprep.mubr.bf16.mxu1 %v5045_v17  ;;  %v4593_v60 = vld [vmem:[%s5639_s2 + $0x178] sm:$0xff]  }
 0x376   : > { %4259 = vmatprep.subr.bf16.mxu1 %v4565_v62  ;;  %v2966_v62 = vld [vmem:[#allocation2 + $0xc] sm:$0xf] }
 0x379   : > { %4260 = vmatpush3.bf16.msra.mxu1 %v4566_v63  ;;  %v2971_v63 = vsel %vm2104_vm2, %v2966_v62, 0 }
 0x37a   : > { %4261 = vmatprep.subr.bf16.mxu1 %v4567_v0 }
 0x37d   : > { %4262 = vmatpush3.bf16.msra.mxu1 %v4568_v1 }
 0x37e   : > { %4263 = vmatprep.subr.bf16.mxu1 %v4569_v2 }
 0x381   : > { %4264 = vmatpush3.bf16.msra.mxu1 %v4570_v3 }
 0x382   : > { %4265 = vmatprep.subr.bf16.mxu1 %v4571_v4 }
 0x385   : > { %4266 = vmatpush3.bf16.msra.mxu1 %v4572_v5  ;;  %v3945_v5 = vld [vmem:[%s5642_s5 + $0x2] ss:$0 sm:$0xff] }
 0x386   : > { %4267 = vmatprep.subr.bf16.mxu1 %v4573_v6 }
 0x389   : > { %4268 = vmatpush3.bf16.msra.mxu1 %v4574_v7 }
 0x38a   : > { %4269 = vmatprep.subr.bf16.mxu1 %v4575_v8 }
 0x38d   : > { %4270 = vmatpush3.bf16.msra.mxu1 %v4576_v9 }
 0x38e   : > { %4271 = vmatprep.subr.bf16.mxu1 %v4577_v10 }
 0x391   : > { %4272 = vmatpush3.bf16.msra.mxu1 %v4578_v11 }
 0x392   : > { %4359 = vmatprep.subr.bf16.mxu1 %v4702_v51 }
 0x394   : > { %2382 = vmatmul.mubr.bf16.vlgmr.msra.gmra.mrb[28].mxu1 %v5140_v48 }
 0x395   : > { %4361 = vmatprep.mubr.msk.bf16.mxu1 %vm4703_vm0, %v4702_v51 }
 0x39a   : > { %4360 = vmatpush3.bf16.xpose.msra.mxu1 %v2684_v14 }
 0x39b   : > { %4365 = vmatprep.subr.bf16.mxu1 %v4702_v51 }
 0x447   : > { %v5372_v15 = vpop.f32.mrb[24].mxu1 }
 0x448   : > { %v4345_v16 = vpop.f32.mrb[25].mxu1 }
 0x449   : > { %v2209_v12 = vpop.f32.mrb[26].mxu1  ;;  %v2744_v16 = vsel %vm2168_vm3, %v2739_v13, 0  ;;  %v4611_v13 = vld [vmem:[%s5645_s8] ss:$8 sps:$4 sm:$0xff]  }
 0x44a   : > { %v4346_v18 = vpop.f32.mrb[27].mxu1 }
 0x467   : > { %v4273_v20 = vpop.f32.mrb[28].mxu1 }
 0x468   : > { %v4274_v22 = vpop.f32.mrb[29].mxu1 }
 0x469   : > { %v4275_v23 = vadd.f32 %v4274_v22, %v4273_v20  ;;  %v4276_v24 = vpop.f32.mrb[30].mxu1 }
 0x46a   : > { %v4277_v25 = vpop.f32.mrb[31].mxu1 }
 0x46b   : > { %v2384_v26 = vadd.f32 %v4275_v23, %v3893_v21 }
 0x46d   : > { %v2389_v27 = vmul.f32 0.125, %v2384_v26 }
 0x46f   : > { %v2390_v29 = vpack.c.bf16 %v2389_v27, %v2389_v27 }
 0x471   : > { %4350 = vmatmul.mubr.msk.bf16.vlgmr.msra.gmra.mrb[16].mxu0 %vm2104_vm2, %v2390_v29 }
 0x472   : > { %4354 = vmatpush3.bf16.msra.mxu0 %v2457_v30  ;;  %4355 = vmatprep.mubr.msk.bf16.mxu0 %vm4703_vm0, %v4702_v51 }
 0x473   : > { %4283 = vmatprep.subr.bf16.mxu0 %v4579_v40  ;;  %v4605_v40 = vld [vmem:[%s5639_s2 + $0x1e8] sm:$0xff]  }
 0x544   : > { %v2433_v31 = vpop.f32.mrb[16].mxu0 }
 0x545   : > { %v4351_v32 = vpop.f32.mrb[17].mxu0  ;;  %v2439_v33 = vsel %vm2151_vm4, %v2433_v31, -inf }
 0x546   : > { %2440 = vmax.xlane.f32.xlu1 %v2439_v33  ;;  %v2436_v34 = vpop.f32.mrb[18].mxu0  ;;  %v4596_v32 = vld [vmem:[%s5639_s2 + $0x180] sm:$0xff]  }
 0x547   : > { %v4352_v19 = vpop.f32.mrb[19].mxu0  ;;  %v4597_v34 = vld [vmem:[%s5639_s2 + $0x1c8] sm:$0xff]  }
 0x548   : > { %v4598_v19 = vld [vmem:[%s5639_s2 + $0x188] sm:$0xff]  }
 0x5d3   : > { %v2441_v35 = vpop.xlane.xlu1 %2440 }
 0x5d4   : > { %v2442_v36 = vsub.f32 %v2433_v31, %v2441_v35  ;;  %v4599_v35 = vld [vmem:[%s5639_s2 + $0x1d0] sm:$0xff]  }
 0x5d6   : > { %v2443_v37 = vmul.f32 1.442695, %v2442_v36  ;;  %v4600_v36 = vld [vmem:[%s5639_s2 + $0x190] sm:$0xff]  }
 0x5d8   : > { %4663 = vpow2.f32 %v2443_v37  ;;  %v4601_v37 = vld [vmem:[%s5639_s2 + $0x1d8] sm:$0xff]  }
 0x5e2   : > { %v4664_v38 = vpop.eup %4663 }
 0x5e3   : > { %v2445_v39 = vsel %vm2151_vm4, %v4664_v38, 0.0 }
 0x5e4   : > { %2446 = vadd.xlane.f32.xlu1 %v2445_v39  ;;  %v4604_v39 = vld [vmem:[%s5639_s2 + $0x1a0] sm:$0xff]  }
 0x671   : > { %v2447_v41 = vpop.xlane.xlu1 %2446 }
 0x672   : > { %4665 = vrcp.f32 %v2447_v41  ;;  %v4606_v41 = vld [vmem:[%s5639_s2 + $0x1a8] sm:$0xff]  }
 0x67c   : > { %v4666_v42 = vpop.eup %4665 }
 0x67d   : > { %v2449_v43 = vmul.f32 %v4666_v42, %v4664_v38  ;;  %v4603_v38 = vld [vmem:[%s5639_s2 + $0x1e0] sm:$0xff]   ;;  %v4607_v42 = vld [vmem:[%s5639_s2 + $0x1f0] sm:$0xff]  }
 0x67f   : > { %v2450_v45 = vpack.c.bf16 %v2449_v43, %v2449_v43  ;;  %v4608_v43 = vld [vmem:[%s5639_s2 + $0x1b0] sm:$0xff]  }
 0x681   : > { %4356 = vmatmul.mubr.msk.bf16.vlgmr.msra.gmra.mrb[20].mxu0 %vm2151_vm4, %v2450_v45  ;;  %v4610_v45 = vld [vmem:[%s5639_s2 + $0x1b8] sm:$0xff]  }
 0x682   : > { %4284 = vmatpush3.bf16.msra.mxu0 %v4580_v44  ;;  %2668 = vmatprep.mubr.bf16.mxu0 %v5045_v17  ;;  %v4609_v44 = vld [vmem:[%s5639_s2 + $0x1f8] sm:$0xff]  }
 0x683   : > { %4285 = vmatprep.subr.bf16.mxu0 %v4581_v46 }
 0x686   : > { %4286 = vmatpush3.bf16.msra.mxu0 %v4582_v47 }
 0x687   : > { %4287 = vmatprep.subr.bf16.mxu0 %v4583_v49 }
 0x68a   : > { %4288 = vmatpush3.bf16.msra.mxu0 %v4584_v50 }
 0x68b   : > { %4289 = vmatprep.subr.bf16.mxu0 %v4585_v52 }
 0x68e   : > { %4290 = vmatpush3.bf16.msra.mxu0 %v4586_v53  ;;  %v3997_v53 = vld [vmem:[%s5642_s5 + $0x3] ss:$0 sm:$0xff] }
 0x68f   : > { %4291 = vmatprep.subr.bf16.mxu0 %v4587_v54 }
 0x692   : > { %4292 = vmatpush3.bf16.msra.mxu0 %v4588_v55 }
 0x693   : > { %4293 = vmatprep.subr.bf16.mxu0 %v4589_v56 }
 0x696   : > { %4294 = vmatpush3.bf16.msra.mxu0 %v4590_v57 }
 0x697   : > { %4295 = vmatprep.subr.bf16.mxu0 %v4591_v58 }
 0x69a   : > { %4296 = vmatpush3.bf16.msra.mxu0 %v4592_v59 }
 0x69b   : > { %4297 = vmatprep.subr.bf16.mxu0 %v4593_v60  ;;  %v3026_v60 = vld [vmem:[#allocation3 + $0xc] sm:$0xf] }
 0x69e   : > { %4298 = vmatpush3.bf16.msra.mxu0 %v4594_v61 }
 0x69f   : > { %4371 = vmatprep.subr.bf16.mxu0 %v4702_v51 }
 0x6a1   : > { %2669 = vmatmul.mubr.bf16.vlgmr.msra.gmra.mrb[24].mxu0 %v5140_v48 }
 0x6a2   : > { %4373 = vmatprep.mubr.msk.bf16.mxu0 %vm4703_vm0, %v4702_v51 }
 0x6a7   : > { %4372 = vmatpush3.bf16.xpose.msra.mxu0 %v2971_v63 }
 0x6a8   : > { %4377 = vmatprep.subr.bf16.mxu0 %v4702_v51 }
 0x754   : > { %v5439_v0 = vpop.f32.mrb[20].mxu0 }
 0x755   : > { %v4357_v1 = vpop.f32.mrb[21].mxu0 }
 0x756   : > { %v2496_v2 = vpop.f32.mrb[22].mxu0 }
 0x757   : > { %v4358_v3 = vpop.f32.mrb[23].mxu0 }
 0x774   : > { %v4299_v4 = vpop.f32.mrb[24].mxu0 }
 0x775   : > { %v4300_v6 = vpop.f32.mrb[25].mxu0 }
 0x776   : > { %v4301_v7 = vadd.f32 %v4300_v6, %v4299_v4  ;;  %v4302_v8 = vpop.f32.mrb[26].mxu0 }
 0x777   : > { %v4303_v9 = vpop.f32.mrb[27].mxu0 }
 0x778   : > { %v2671_v10 = vadd.f32 %v4301_v7, %v3945_v5 }
 0x77a   : > { %v2676_v11 = vmul.f32 0.125, %v2671_v10 }
 0x77c   : > { %v2677_v14 = vpack.c.bf16 %v2676_v11, %v2676_v11 }
 0x77e   : > { %4362 = vmatmul.mubr.msk.bf16.vlgmr.msra.gmra.mrb[32].mxu1 %vm2104_vm2, %v2677_v14  ;;  %v4613_v14 = vld [vmem:[%s5645_s8 + $0x4] ss:$8 sps:$4 sm:$0xff]  }
 0x77f   : > { %4366 = vmatpush3.bf16.msra.mxu1 %v2744_v16  ;;  %4367 = vmatprep.mubr.msk.bf16.mxu1 %vm4703_vm0, %v4702_v51  ;;  %v4616_v16 = vld [vmem:[%s5645_s8 + $0x14] ss:$8 sps:$4 sm:$0xff]  }
 0x780   : > { %4309 = vmatprep.subr.bf16.mxu1 %v4595_v28  ;;  %v4629_v28 = vld [vmem:[%s5645_s8 + $0x60] ss:$8 sps:$4 sm:$0xff]  }
 0x851   : > { %v2720_v12 = vpop.f32.mrb[32].mxu1 }
 0x852   : > { %v4363_v18 = vpop.f32.mrb[33].mxu1  ;;  %v2726_v20 = vsel %vm2151_vm4, %v2720_v12, -inf }
 0x853   : > { %2727 = vmax.xlane.f32.xlu0 %v2726_v20  ;;  %v2723_v21 = vpop.f32.mrb[34].mxu1  ;;  %v4619_v18 = vld [vmem:[%s5645_s8 + $0x24] ss:$8 sps:$4 sm:$0xff]   ;;  %v4617_v20 = vld [vmem:[%s5645_s8 + $0x20] ss:$8 sps:$4 sm:$0xff]  }
 0x854   : > { %v4364_v22 = vpop.f32.mrb[35].mxu1  ;;  %v4622_v21 = vld [vmem:[%s5645_s8 + $0x34] ss:$8 sps:$4 sm:$0xff]  }
 0x855   : > { %v4620_v22 = vld [vmem:[%s5645_s8 + $0x30] ss:$8 sps:$4 sm:$0xff]  }
 0x8e0   : > { %v2728_v23 = vpop.xlane.xlu0 %2727 }
 0x8e1   : > { %v2729_v24 = vsub.f32 %v2720_v12, %v2728_v23  ;;  %v4614_v12 = vld [vmem:[%s5645_s8 + $0x10] ss:$8 sps:$4 sm:$0xff]   ;;  %v4625_v23 = vld [vmem:[%s5645_s8 + $0x44] ss:$8 sps:$4 sm:$0xff]  }
 0x8e3   : > { %v2730_v25 = vmul.f32 1.442695, %v2729_v24  ;;  %v4623_v24 = vld [vmem:[%s5645_s8 + $0x40] ss:$8 sps:$4 sm:$0xff]  }
 0x8e5   : > { %4667 = vpow2.f32 %v2730_v25  ;;  %v4628_v25 = vld [vmem:[%s5645_s8 + $0x54] ss:$8 sps:$4 sm:$0xff]  }
 0x8ef   : > { %v4668_v26 = vpop.eup %4667 }
 0x8f0   : > { %v2732_v27 = vsel %vm2151_vm4, %v4668_v26, 0.0 }
 0x8f1   : > { %2733 = vadd.xlane.f32.xlu1 %v2732_v27  ;;  %v4631_v27 = vld [vmem:[%s5645_s8 + $0x64] ss:$8 sps:$4 sm:$0xff]  }
 0x97e   : > { %v2734_v29 = vpop.xlane.xlu1 %2733 }
 0x97f   : > { %4669 = vrcp.f32 %v2734_v29  ;;  %v4634_v29 = vld [vmem:[%s5645_s8 + $0x74] ss:$8 sps:$4 sm:$0xff]  }
 0x989   : > { %v4670_v30 = vpop.eup %4669 }
 0x98a   : > { %v2736_v31 = vmul.f32 %v4670_v30, %v4668_v26  ;;  %v4626_v26 = vld [vmem:[%s5645_s8 + $0x50] ss:$8 sps:$4 sm:$0xff]  }
 0x98b   : > { %v4632_v30 = vld [vmem:[%s5645_s8 + $0x70] ss:$8 sps:$4 sm:$0xff]  }
 0x98c   : > { %v2737_v33 = vpack.c.bf16 %v2736_v31, %v2736_v31  ;;  %v4637_v31 = vld [vmem:[%s5645_s8 + $0x84] ss:$8 sps:$4 sm:$0xff]  }
 0x98e   : > { %4368 = vmatmul.mubr.msk.bf16.vlgmr.msra.gmra.mrb[36].mxu1 %vm2151_vm4, %v2737_v33  ;;  %v4640_v33 = vld [vmem:[%s5645_s8 + $0x94] ss:$8 sps:$4 sm:$0xff]  }
 0x98f   : > { %4310 = vmatpush3.bf16.msra.mxu1 %v4596_v32  ;;  %2955 = vmatprep.mubr.bf16.mxu1 %v5045_v17  ;;  %v4602_v17 = vld [vmem:[%s5639_s2 + $0x198] sm:$0xff]   ;;  %v4635_v32 = vld [vmem:[%s5645_s8 + $0x80] ss:$8 sps:$4 sm:$0xff]  }
 0x990   : > { %4311 = vmatprep.subr.bf16.mxu1 %v4597_v34  ;;  %v4638_v34 = vld [vmem:[%s5645_s8 + $0x90] ss:$8 sps:$4 sm:$0xff]  }
 0x993   : > { %4312 = vmatpush3.bf16.msra.mxu1 %v4598_v19  ;;  %v4643_v19 = vld [vmem:[%s5645_s8 + $0xa4] ss:$8 sps:$4 sm:$0xff]  }
 0x994   : > { %4313 = vmatprep.subr.bf16.mxu1 %v4599_v35  ;;  %v4641_v35 = vld [vmem:[%s5645_s8 + $0xa0] ss:$8 sps:$4 sm:$0xff]  }
 0x997   : > { %4314 = vmatpush3.bf16.msra.mxu1 %v4600_v36  ;;  %v4646_v36 = vld [vmem:[%s5645_s8 + $0xb4] ss:$8 sps:$4 sm:$0xff]  }
 0x998   : > { %4315 = vmatprep.subr.bf16.mxu1 %v4601_v37  ;;  %v4644_v37 = vld [vmem:[%s5645_s8 + $0xb0] ss:$8 sps:$4 sm:$0xff]  }
 0x99b   : > { %4316 = vmatpush3.bf16.msra.mxu1 %v4602_v17  ;;  %v4649_v17 = vld [vmem:[%s5645_s8 + $0xc4] ss:$8 sps:$4 sm:$0xff]  }
 0x99c   : > { %4317 = vmatprep.subr.bf16.mxu1 %v4603_v38  ;;  %v4647_v38 = vld [vmem:[%s5645_s8 + $0xc0] ss:$8 sps:$4 sm:$0xff]  }
 0x99f   : > { %4318 = vmatpush3.bf16.msra.mxu1 %v4604_v39  ;;  %v4652_v39 = vld [vmem:[%s5645_s8 + $0xd4] ss:$8 sps:$4 sm:$0xff]  }
 0x9a0   : > { %4319 = vmatprep.subr.bf16.mxu1 %v4605_v40  ;;  %v4650_v40 = vld [vmem:[%s5645_s8 + $0xd0] ss:$8 sps:$4 sm:$0xff]  }
 0x9a3   : > { %4320 = vmatpush3.bf16.msra.mxu1 %v4606_v41  ;;  %v4655_v41 = vld [vmem:[%s5645_s8 + $0xe4] ss:$8 sps:$4 sm:$0xff]  }
 0x9a4   : > { %4321 = vmatprep.subr.bf16.mxu1 %v4607_v42  ;;  %v4653_v42 = vld [vmem:[%s5645_s8 + $0xe0] ss:$8 sps:$4 sm:$0xff]  }
 0x9a7   : > { %4322 = vmatpush3.bf16.msra.mxu1 %v4608_v43  ;;  %v4658_v43 = vld [vmem:[%s5645_s8 + $0xf4] ss:$8 sps:$4 sm:$0xff]  }
 0x9a8   : > { %4323 = vmatprep.subr.bf16.mxu1 %v4609_v44  ;;  %v4656_v44 = vld [vmem:[%s5645_s8 + $0xf0] ss:$8 sps:$4 sm:$0xff]  }
 0x9ab   : > { %4324 = vmatpush3.bf16.msra.mxu1 %v4610_v45 }
 0x9ae   : > { %2956 = vmatmul.mubr.bf16.vlgmr.msra.gmra.mrb[40].mxu1 %v5140_v48  ;;  %v3031_v48 = vsel %vm2168_vm3, %v3026_v60, 0 }
 0xa61   : > { %v5501_v46 = vpop.f32.mrb[36].mxu1 }
 0xa62   : > { %v4369_v47 = vpop.f32.mrb[37].mxu1 }
 0xa63   : > { %v2783_v49 = vpop.f32.mrb[38].mxu1 }
 0xa64   : > { %v4370_v50 = vpop.f32.mrb[39].mxu1 }
 0xa81   : > { %v4325_v52 = vpop.f32.mrb[40].mxu1 }
 0xa82   : > { %v4326_v54 = vpop.f32.mrb[41].mxu1 }
 0xa83   : > { %v4327_v55 = vadd.f32 %v4326_v54, %v4325_v52  ;;  %v4328_v56 = vpop.f32.mrb[42].mxu1 }
 0xa84   : > { %v4329_v57 = vpop.f32.mrb[43].mxu1 }
 0xa85   : > { %v2958_v58 = vadd.f32 %v4327_v55, %v3997_v53 }
 0xa87   : > { %v2963_v59 = vmul.f32 0.125, %v2958_v58 }
 0xa89   : > { %v2964_v61 = vpack.c.bf16 %v2963_v59, %v2963_v59 }
 0xa8b   : > { %4374 = vmatmul.mubr.msk.bf16.vlgmr.msra.gmra.mrb[28].mxu0 %vm2104_vm2, %v2964_v61 }
 0xa8c   : > { %4378 = vmatpush3.bf16.msra.mxu0 %v3031_v48  ;;  %4379 = vmatprep.mubr.msk.bf16.mxu0 %vm4703_vm0, %v4702_v51  ;;  %v3117_v48 = vld [vmem:[%s5646_s9] sm:$0x3] }
 0xa8d   : > { %3289 = vmatprep.subr.bf16.mxu0 %v4613_v14 }
 0xb5e   : > { %v3007_v62 = vpop.f32.mrb[28].mxu0 }
 0xb5f   : > { %v4375_v63 = vpop.f32.mrb[29].mxu0  ;;  %v3013_v1 = vsel %vm2151_vm4, %v3007_v62, -inf }
 0xb60   : > { %3014 = vmax.xlane.f32.xlu0 %v3013_v1  ;;  %v3010_v2 = vpop.f32.mrb[30].mxu0 }
 0xb61   : > { %v4376_v3 = vpop.f32.mrb[31].mxu0  ;;  %v4677_v2 = vld [vmem:[%s5014_s27] sm:$0xff] }
 0xb62   : > { %v3330_v3 = vunpack.c.l.bf16 %v4677_v2 }
 0xbed   : > { %v3015_v4 = vpop.xlane.xlu0 %3014 }
 0xbee   : > { %v3016_v5 = vsub.f32 %v3007_v62, %v3015_v4  ;;  %v3331_v4 = vunpack.c.h.bf16 %v4677_v2 }
 0xbf0   : > { %v3017_v6 = vmul.f32 1.442695, %v3016_v5 }
 0xbf2   : > { %4671 = vpow2.f32 %v3017_v6 }
 0xbfc   : > { %v4672_v7 = vpop.eup %4671 }
 0xbfd   : > { %v3019_v8 = vsel %vm2151_vm4, %v4672_v7, 0.0 }
 0xbfe   : > { %3020 = vadd.xlane.f32.xlu1 %v3019_v8 }
 0xc8b   : > { %v3021_v9 = vpop.xlane.xlu1 %3020 }
 0xc8c   : > { %4673 = vrcp.f32 %v3021_v9 }
 0xc96   : > { %v4674_v10 = vpop.eup %4673 }
 0xc97   : > { %v3023_v11 = vmul.f32 %v4674_v10, %v4672_v7 }
 0xc99   : > { %v3024_v51 = vpack.c.bf16 %v3023_v11, %v3023_v11 }
 0xc9b   : > { %4380 = vmatmul.mubr.msk.bf16.vlgmr.msra.gmra.mrb[32].mxu0 %vm2151_vm4, %v3024_v51 }
 0xc9c   : > { %3290 = vmatpush1.bf16.msra.mxu0 %v4611_v13 }
 0xc9d   : > { %3291 = vmatprep.subr.bf16.mxu0 %v4616_v16 }
 0xca0   : > { %3292 = vmatpush1.bf16.msra.mxu0 %v4614_v12 }
 0xca1   : > { %3293 = vmatprep.subr.bf16.mxu0 %v4619_v18 }
 0xca4   : > { %3294 = vmatpush1.bf16.msra.mxu0 %v4617_v20 }
 0xca5   : > { %3295 = vmatprep.subr.bf16.mxu0 %v4622_v21 }
 0xca8   : > { %3296 = vmatpush1.bf16.msra.mxu0 %v4620_v22 }
 0xca9   : > { %3297 = vmatprep.subr.bf16.mxu0 %v4625_v23 }
 0xcac   : > { %3298 = vmatpush1.bf16.msra.mxu0 %v4623_v24  ;;  %v3351_v24 = vld [vmem:[%s5647_s10] sm:$0x3] }
 0xcad   : > { %3299 = vmatprep.subr.bf16.mxu0 %v4628_v25  ;;  %v3365_v25 = vld [vmem:[%s5648_s11] sm:$0x3] }
 0xcb0   : > { %3300 = vmatpush1.bf16.msra.mxu0 %v4626_v26 }
 0xcb1   : > { %3301 = vmatprep.subr.bf16.mxu0 %v4631_v27 }
 0xcb4   : > { %3302 = vmatpush1.bf16.msra.mxu0 %v4629_v28 }
 0xcb5   : > { %3303 = vmatprep.subr.bf16.mxu0 %v4634_v29 }
 0xcb8   : > { %3304 = vmatpush1.bf16.msra.mxu0 %v4632_v30 }
 0xcb9   : > { %3305 = vmatprep.subr.bf16.mxu0 %v4637_v31 }
 0xcbc   : > { %3306 = vmatpush1.bf16.msra.mxu0 %v4635_v32 }
 0xcbd   : > { %3307 = vmatprep.subr.bf16.mxu0 %v4640_v33 }
 0xcc0   : > { %3308 = vmatpush1.bf16.msra.mxu0 %v4638_v34 }
 0xcc1   : > { %3309 = vmatprep.subr.bf16.mxu0 %v4643_v19 }
 0xcc4   : > { %3310 = vmatpush1.bf16.msra.mxu0 %v4641_v35 }
 0xcc5   : > { %3311 = vmatprep.subr.bf16.mxu0 %v4646_v36 }
 0xcc8   : > { %3312 = vmatpush1.bf16.msra.mxu0 %v4644_v37 }
 0xcc9   : > { %3313 = vmatprep.subr.bf16.mxu0 %v4649_v17 }
 0xccc   : > { %3314 = vmatpush1.bf16.msra.mxu0 %v4647_v38 }
 0xccd   : > { %3315 = vmatprep.subr.bf16.mxu0 %v4652_v39 }
 0xcd0   : > { %3316 = vmatpush1.bf16.msra.mxu0 %v4650_v40 }
 0xcd1   : > { %3317 = vmatprep.subr.bf16.mxu0 %v4655_v41 }
 0xcd4   : > { %3318 = vmatpush1.bf16.msra.mxu0 %v4653_v42 }
 0xcd5   : > { %3319 = vmatprep.subr.bf16.mxu0 %v4658_v43 }
 0xcd8   : > { %3320 = vmatpush1.bf16.msra.mxu0 %v4656_v44 }
 0xd6e   : > { %v3067_v45 = vpop.f32.mrb[32].mxu0 }
 0xd6f   : > { %v4410_v47 = vpack.i.bf16 %v5439_v0, %v3067_v45  ;;  %v4381_v49 = vpop.f32.mrb[33].mxu0  ;;  %v3119_v0 = vlaneseq }
 0xd70   : > { %v3070_v50 = vpop.f32.mrb[34].mxu0 }
 0xd71   : > { %4411 = vrot.lane.b32.xlu0 %v4410_v47, %s4704_s20  ;;  %v4382_v52 = vpop.f32.mrb[35].mxu0  ;;  %v3120_v60 = vshrl.u32 %v3119_v0, 7 }
 0xd73   : > { %v3121_v61 = vsub.s32 0, %v3120_v60  ;;  %v3125_v62 = vsub.s32 1, %v3120_v60 }
 0xd75   : > { %v3122_v63 = vrot.slane %v3117_v48, %v3121_v61  ;;  %v3126_v1 = vrot.slane %v3117_v48, %v3125_v62  ;;  %v3356_v26 = vrot.slane %v3351_v24, %v3121_v61  ;;  %v3360_v27 = vrot.slane %v3351_v24, %v3125_v62 }
 0xd76   : > { %v3370_v29 = vrot.slane %v3365_v25, %v3121_v61  ;;  %v3374_v30 = vrot.slane %v3365_v25, %v3125_v62 }
 0xde3   : > { %v4412_v53 = vpop.permute.xlu0 %4411 }
 0xde4   : > { %v4414_v54 = vunpack.i.h.bf16 %v4412_v53  ;;  %v4413_v55 = vunpack.i.l.bf16 %v4412_v53 }
 0xde6   : > { %v3081_v56 = vsel %vm2104_vm2, %v5372_v15, %v4414_v54  ;;  %v3082_v57 = vsel %vm2104_vm2, %v5501_v46, %v4413_v55 }
 0xde7   : > { %v3083_v58 = vpack.c.bf16 %v3081_v56, %v3081_v56  ;;  %v3084_v59 = vpack.c.bf16 %v3082_v57, %v3082_v57 }
 0xde9   : > { %3321 = vmatprep.mubr.bf16.mxu0 %v3084_v59 }
 0xdea   : > { %3322 = vmatmul.mubr.bf16.vlgmr.msra.gmra.mrb[36].mxu0 %v3083_v58 }
 0xebd   : > { %v3323_v15 = vpop.f32.mrb[36].mxu0 }
 0xebe   : > { %v3324_v5 = vadd.f32 %v3323_v15, %v3122_v63  ;;  %v3325_v46 = vpop.f32.mrb[37].mxu0 }
 0xebf   : > { %v3326_v6 = vadd.f32 %v3325_v46, %v3126_v1  ;;  %v3327_v7 = vpop.f32.mrb[38].mxu0 }
 0xec0   : > { %v3332_v8 = vadd.f32 %v3330_v3, %v3324_v5  ;;  %v3328_v9 = vpop.f32.mrb[39].mxu0 }
 0xec1   : > { %v3333_v10 = vadd.f32 %v3331_v4, %v3326_v6 }
 0xec3   : > { %v3334_v11 = vadd.f32 %v3333_v10, %v3332_v8 }
 0xec5   : > { %3335 = vadd.xlane.f32.xlu1 %v3334_v11 }
 0xf52   : > { %v3336_v51 = vpop.xlane.xlu1 %3335 }
 0xf53   : > { %v3338_v13 = vmul.f32 0.00390625, %v3336_v51 }
 0xf55   : > { %v3339_v14 = vsub.f32 %v3332_v8, %v3338_v13  ;;  %v3340_v16 = vsub.f32 %v3333_v10, %v3338_v13 }
 0xf57   : > { %v3341_v12 = vmul.f32 %v3339_v14, %v3339_v14  ;;  %v3342_v18 = vmul.f32 %v3340_v16, %v3340_v16 }
 0xf59   : > { %v3343_v20 = vadd.f32 %v3342_v18, %v3341_v12 }
 0xf5b   : > { %3344 = vadd.xlane.f32.xlu1 %v3343_v20 }
 0xfe8   : > { %v3345_v21 = vpop.xlane.xlu1 %3344 }
 0xfe9   : > { %v3346_v22 = vmul.f32 0.00390625, %v3345_v21 }
 0xfeb   : > { %v3347_v23 = vadd.f32 1e-05, %v3346_v22 }
 0xfed   : > { %4675 = vrsqrt.f32 %v3347_v23 }
 0xff7   : > { %v4676_v28 = vpop.eup %4675 }
 0xff8   : > { %v3349_v31 = vmul.f32 %v4676_v28, %v3339_v14  ;;  %v3350_v32 = vmul.f32 %v4676_v28, %v3340_v16 }
 0xffa   : > { %v3363_v33 = vmul.f32 %v3356_v26, %v3349_v31  ;;  %v3364_v34 = vmul.f32 %v3360_v27, %v3350_v32 }
 0xffc   : > { %v3377_v19 = vadd.f32 %v3370_v29, %v3363_v33  ;;  %v3378_v35 = vadd.f32 %v3374_v30, %v3364_v34 }
 0xffe   : > { %v4054_v36 = vpack.c.bf16 %v3378_v35, %v3377_v19 }
0x1000   : > { %3387 = vst [vmem:[%s469_s16] sm:$0xff] %v4054_v36 }
0x1001 PF: > { %s22_s23 = sadd.s32 1, %s4700_s23   ;;  %s5650_s21 = smov %s4696_s22 }
0x1002   : > { %p19_p5 = scmp.ge.s32.totalorder %s22_s23, 4   ;;  %s5651_s22 = smov %s5653_s24 }
0x1004   :  { %21 = sbr.rel (!%p19_p5) target bundleno = 2 (0x2), region = 135 }

</bundles_post_ra>
